<compile_context>
chip_gen: v6e
topology: v6e:2x2x1
jax: 0.10.0
libtpu: 0.0.40
codegen_flags: <defaults>
</compile_context>

<pallas_src>
import functools

import jax
import jax.numpy as jnp
from jax import lax
from jax.experimental import pallas as pl
from jax.experimental.pallas import tpu as pltpu


_LANE = 128  # TPU lane width; out-channel / conv-K dims are padded to this.


def _round_up(n, m):
    return (n + m - 1) // m * m


def _hswish(v):
    # swish(x) = x * relu6(x + 3) / 6   (hard-swish)
    return v * jnp.clip(v + 3.0, 0.0, 6.0) * (1.0 / 6.0)


def _device_kind():
    try:
        return jax.devices()[0].device_kind.lower()
    except Exception:
        return ""


def _lublock_kernel(x_ref, w1_ref, w2_ref, *rest,
                    Bt, Hp, Wp, Ci, Cp, Cop, fuse):
    """Fused pool -> conv3x3 -> conv3x3 (+ 1x1 shortcut) -> hard-swish.

    x_ref : (Bt, 2, 2, Hp+2, Wh, Ci) f32   2x2-pool taps, spatial halo pre-padded
    w1_ref: (9*Cp, Cop) or (9*Cp, 2*Cop) bf16   conv1 (+fused shortcut) weights
    w2_ref: (9*Cop, Cop) bf16   conv2 weights (BN scale folded in)
    ws_ref: (Cp, Cop) bf16      1x1 shortcut weights (only when fuse=False)
    b_ref : (3, Cop) f32        per-channel biases (BN offsets, shortcut bias)
    o_ref : (Bt, Hp, Wp, Cop) f32
    y1p_ref: (Bt, Hp+2, Wh, Cop) bf16 persistent conv2 halo scratch
    """
    if fuse:
        b_ref, o_ref, y1p_ref = rest
        ws_ref = None
    else:
        ws_ref, b_ref, o_ref, y1p_ref = rest

    f32, bf16 = jnp.float32, jnp.bfloat16
    M = Bt * Hp * Wp

    # Zero the persistent conv2 halo scratch once; the 1-wide border stays zero
    # across grid steps while the interior is overwritten below every step.
    @pl.when(pl.program_id(0) == 0)
    def _():
        y1p_ref[...] = jnp.zeros_like(y1p_ref)

    # --- MaxPool2d(2): read the 4 taps straight from the ref ----------------
    # The spatial halo is zero-padded in the wrapper and max(0,0,0,0)=0, so the
    # pooled tensor already carries its SAME-conv halo.
    xp = jnp.maximum(jnp.maximum(x_ref[:, 0, 0], x_ref[:, 0, 1]),
                     jnp.maximum(x_ref[:, 1, 0], x_ref[:, 1, 1]))
    xp = xp.astype(bf16)                                    # (Bt, Hp+2, Wh, Ci)
    if Cp != Ci:                                            # lane-pad in VMEM only
        xp = jnp.concatenate(
            [xp, jnp.zeros(xp.shape[:-1] + (Cp - Ci,), bf16)], axis=-1)

    def im2col(src, C):
        # (Bt, Hp+2, Wh, C) array/ref -> ((M, 9*C) bf16, center tap (M, C) bf16)
        cols, ctr = [], None
        for dh in range(3):
            for dw in range(3):
                t = src[:, dh:dh + Hp, dw:dw + Wp, :].reshape(M, C)
                if dh == 1 and dw == 1:
                    ctr = t
                cols.append(t)
        return jnp.concatenate(cols, axis=-1), ctr

    b = b_ref[...]                                          # (3, Cop) f32

    # --- block[0]: conv3x3 as ONE K=9*Cp matmul (+ fused shortcut columns) --
    cols1, ctr1 = im2col(xp, Cp)
    if fuse:
        y = jnp.dot(cols1, w1_ref[...], preferred_element_type=f32)  # (M, 2*Cop)
        y1 = _hswish(y[:, :Cop] + b[0])
        sc = y[:, Cop:] + b[2]
    else:
        y1 = _hswish(jnp.dot(cols1, w1_ref[...],
                             preferred_element_type=f32) + b[0])
        sc = jnp.dot(ctr1, ws_ref[...], preferred_element_type=f32) + b[2]

    # --- block[1]: conv3x3; write y1 (bf16) into the pre-zeroed halo scratch -
    y1p_ref[:, 1:Hp + 1, 1:Wp + 1, :] = y1.astype(bf16).reshape(Bt, Hp, Wp, Cop)
    cols2, _ = im2col(y1p_ref, Cop)
    y2 = _hswish(jnp.dot(cols2, w2_ref[...], preferred_element_type=f32) + b[1])

    o_ref[...] = _hswish(y2 + sc).reshape(Bt, Hp, Wp, Cop)


def lublock_forward(x_nchw, params):
    w1, w2, ws, b = params["w1"], params["w2"], params["ws"], params["b"]
    Co = params["out_channels"]
    B, Ci, H, W = x_nchw.shape
    assert H % 2 == 0 and W % 2 == 0, "MaxPool2d(2) needs even H, W"
    Hp, Wp = H // 2, W // 2
    Cp = w1.shape[0] // 9            # lane-padded in-channels (conv1 K layout)
    Cop = w1.shape[1]                # lane-padded out-channels
    assert Cp == _round_up(Ci, _LANE) and Cop == _round_up(Co, _LANE)

    Wh = _round_up(Wp + 2, 8)        # sublane-aligned pooled-W halo extent

    kind = _device_kind()
    fuse = ("v6" in kind) or ("v7" in kind)   # 256-wide MXU: widen conv1's N
    vmem_limit = 48 * 1024 * 1024 if "v7" in kind else 64 * 1024 * 1024

    # --- layout glue: split the 2x2 pool window, zero-pad the pooled halo ----
    # NCHW -> (B, 2, 2, Hp, Wp, Ci); pooled spatial padded by 1 (+ W alignment).
    # NO channel padding in HBM: lane-pad happens inside the kernel.
    x = x_nchw.astype(jnp.float32).reshape(B, Ci, Hp, 2, Wp, 2)
    x = jnp.transpose(x, (0, 3, 5, 2, 4, 1))                  # (B,2,2,Hp,Wp,Ci)
    x = jnp.pad(x, ((0, 0), (0, 0), (0, 0),
                    (1, 1), (1, Wh - Wp - 1), (0, 0)))

    if fuse:
        # shortcut -> extra N columns of w1; ws sits at the center-tap K rows.
        ws_blk = jnp.zeros((9 * Cp, Cop), w1.dtype).at[4 * Cp:5 * Cp, :].set(ws)
        w1 = jnp.concatenate([w1, ws_blk], axis=1)             # (9*Cp, 2*Cop)

    # --- batch tile: largest divisor of B whose real VMEM footprint fits -----
    n1 = w1.shape[1]
    # weights/bias double-buffered by the pipeline (constant index_map keeps
    # them resident; single-buffering via pl.Buffered(1) skipped for compile
    # safety -- they are small here).
    weight_bytes = 2 * (2 * (w1.size + w2.size + (0 if fuse else ws.size))
                        + 4 * b.size)

    def step_bytes(bt):
        m = bt * Hp * Wp
        return (2 * bt * 4 * (Hp + 2) * Wh * Ci * 4      # x block (2 buffers, f32)
                + 2 * bt * Hp * Wp * Cop * 4             # out block (2 buffers, f32)
                + bt * (Hp + 2) * Wh * Cp * 2            # lane-padded pooled acts
                + m * 9 * (Cp + Cop) * 2                 # both im2col matrices (bf16)
                + m * (n1 + 3 * Cop) * 4                 # f32 conv outputs / temps
                + bt * (Hp + 2) * Wh * Cop * 2)          # conv2 halo scratch (bf16)

    budget = int(0.6 * vmem_limit) - weight_bytes
    Bt = 1
    for bt in range(1, B + 1):
        if B % bt == 0 and step_bytes(bt) <= budget:
            Bt = bt

    kernel = functools.partial(_lublock_kernel, Bt=Bt, Hp=Hp, Wp=Wp,
                               Ci=Ci, Cp=Cp, Cop=Cop, fuse=fuse)

    in_specs = [
        pl.BlockSpec((Bt, 2, 2, Hp + 2, Wh, Ci),
                     lambda i: (i, 0, 0, 0, 0, 0)),
        # constant index maps -> weight/bias blocks stay resident across steps
        pl.BlockSpec(w1.shape, lambda i: (0, 0)),
        pl.BlockSpec(w2.shape, lambda i: (0, 0)),
    ]
    args = [x, w1, w2]
    if not fuse:
        in_specs.append(pl.BlockSpec(ws.shape, lambda i: (0, 0)))
        args.append(ws)
    in_specs.append(pl.BlockSpec(b.shape, lambda i: (0, 0)))
    args.append(b)

    out_nhwc = pl.pallas_call(
        kernel,
        out_shape=jax.ShapeDtypeStruct((B, Hp, Wp, Cop), jnp.float32),
        grid_spec=pltpu.PrefetchScalarGridSpec(
            num_scalar_prefetch=0,
            grid=(B // Bt,),
            in_specs=in_specs,
            out_specs=pl.BlockSpec((Bt, Hp, Wp, Cop), lambda i: (i, 0, 0, 0)),
            scratch_shapes=[pltpu.VMEM((Bt, Hp + 2, Wh, Cop), jnp.bfloat16)],
        ),
        # "arbitrary": the halo scratch is zeroed only at step 0, which is only
        # safe if all grid steps run sequentially on the same core.
        compiler_params=pltpu.CompilerParams(
            dimension_semantics=("arbitrary",),
            vmem_limit_bytes=vmem_limit,
        ),
    )(*args)
    # drop the channel padding, back to NCHW
    return jnp.transpose(out_nhwc[..., :Co], (0, 3, 1, 2))


def make_params(key, Ci, Co, eps=1e-5):
    """Deterministic synthetic parameters (matching the PyTorch layer shapes),
    pre-folded into the kernel's lane-dense, BN-folded, bf16 layout."""
    ks = jax.random.split(key, 7)
    w1_oihw = 0.2 * jax.random.normal(ks[0], (Co, Ci, 3, 3), jnp.float32)
    w2_oihw = 0.2 * jax.random.normal(ks[1], (Co, Co, 3, 3), jnp.float32)
    ws_oi = 0.2 * jax.random.normal(ks[2], (Co, Ci), jnp.float32)   # 1x1 conv
    bs = 0.1 * jax.random.normal(ks[3], (Co,), jnp.float32)          # its bias

    def bn_fold(k):
        k1, k2, k3, k4 = jax.random.split(k, 4)
        gamma = 1.0 + 0.1 * jax.random.normal(k1, (Co,), jnp.float32)
        beta = 0.1 * jax.random.normal(k2, (Co,), jnp.float32)
        mean = 0.1 * jax.random.normal(k3, (Co,), jnp.float32)
        var = 1.0 + 0.5 * jax.random.uniform(k4, (Co,), jnp.float32)
        s = gamma / jnp.sqrt(var + eps)
        return s, beta - mean * s

    s1, o1 = bn_fold(ks[4])
    s2, o2 = bn_fold(ks[5])
    s3, o3 = bn_fold(ks[6])

    Cp, Cop = _round_up(Ci, _LANE), _round_up(Co, _LANE)

    # BN scale folded into the weights; kernel layout (Kh*Kw*Cin_pad, Cout_pad).
    w1 = jnp.transpose(w1_oihw, (2, 3, 1, 0)) * s1             # (3,3,Ci,Co)
    w1 = jnp.pad(w1, ((0, 0), (0, 0), (0, Cp - Ci), (0, Cop - Co)))
    w1 = w1.reshape(9 * Cp, Cop).astype(jnp.bfloat16)
    w2 = jnp.transpose(w2_oihw, (2, 3, 1, 0)) * s2             # (3,3,Co,Co)
    w2 = jnp.pad(w2, ((0, 0), (0, 0), (0, Cop - Co), (0, Cop - Co)))
    w2 = w2.reshape(9 * Cop, Cop).astype(jnp.bfloat16)
    ws = jnp.transpose(ws_oi, (1, 0)) * s3                     # (Ci, Co)
    ws = jnp.pad(ws, ((0, Cp - Ci), (0, Cop - Co))).astype(jnp.bfloat16)

    # per-channel biases: BN offsets; shortcut conv bias folded into b[2].
    b = jnp.stack([o1, o2, o3 + bs * s3])                      # (3, Co) f32
    b = jnp.pad(b, ((0, 0), (0, Cop - Co)))

    params = dict(w1=w1, w2=w2, ws=ws, b=b, out_channels=Co)
    raw = dict(w1_oihw=w1_oihw, w2_oihw=w2_oihw, ws_oi=ws_oi, bs=bs,
               bn1=(s1, o1), bn2=(s2, o2), bn3=(s3, o3))
    return params, raw


def lublock_reference(x_nchw, raw):
    """Pure-JAX reference of the PyTorch forward (eval mode)."""
    hs = lambda v: v * jnp.clip(v + 3.0, 0.0, 6.0) / 6.0
    x = jnp.transpose(x_nchw, (0, 2, 3, 1)).astype(jnp.float32)    # NHWC
    xp = lax.reduce_window(x, -jnp.inf, lax.max,
                           (1, 2, 2, 1), (1, 2, 2, 1), 'VALID')    # MaxPool2d(2)

    def conv(a, w_oihw, pad):
        w_hwio = jnp.transpose(w_oihw, (2, 3, 1, 0))
        return lax.conv_general_dilated(
            a, w_hwio, (1, 1), ((pad, pad), (pad, pad)),
            dimension_numbers=('NHWC', 'HWIO', 'NHWC'))

    s1, o1 = raw["bn1"]; s2, o2 = raw["bn2"]; s3, o3 = raw["bn3"]
    y = hs(conv(xp, raw["w1_oihw"], 1) * s1 + o1)
    y = hs(conv(y, raw["w2_oihw"], 1) * s2 + o2)
    sc = jnp.einsum('bhwc,oc->bhwo', xp, raw["ws_oi"]) + raw["bs"]
    sc = sc * s3 + o3
    out = hs(y + sc)
    return jnp.transpose(out, (0, 3, 1, 2))


if __name__ == "__main__":
    B, Ci, H, W = 2, 4, 16, 16
    Co = 8
    key = jax.random.PRNGKey(0)
    kx, kp = jax.random.split(key)
    x = jax.random.normal(kx, (B, Ci, H, W), jnp.float32)
    params, raw = make_params(kp, Ci, Co)

    out = jax.block_until_ready(lublock_forward(x, params))
    ref = jax.block_until_ready(lublock_reference(x, raw))

    assert out.shape == (B, Co, H // 2, W // 2), out.shape
    # bf16 MXU operands (with BN scale folded into the weights) vs. an f32
    # reference -> re-baselined tolerance (normalized max-abs error).
    err = float(jnp.max(jnp.abs(out - ref) / (1.0 + jnp.abs(ref))))
    if not err < 3e-2:
        raise AssertionError(f"mismatch vs reference: normalized max err {err}")
    print("KERNEL_OK")
</pallas_src>

<mosaic_0001>
module attributes {stable_mosaic.version = 11 : i64} {
  func.func @_lublock_kernel(%arg0: i32, %arg1: memref<2x2x2x10x16x4xf32, #tpu.memory_space<vmem>>, %arg2: memref<1152x128xbf16, #tpu.memory_space<vmem>>, %arg3: memref<1152x128xbf16, #tpu.memory_space<vmem>>, %arg4: memref<128x128xbf16, #tpu.memory_space<vmem>>, %arg5: memref<3x128xf32, #tpu.memory_space<vmem>>, %arg6: memref<2x8x8x128xf32, #tpu.memory_space<vmem>>, %arg7: memref<2x10x16x128xbf16, #tpu.memory_space<vmem>>) attributes {dimension_semantics = [#tpu.dimension_semantics<arbitrary>], iteration_bounds = array<i64: 1>, scalar_prefetch = 0 : i64, scratch_operands = 1 : i64, tpu.core_type = #tpu.core_type<tc>, window_params = [{transform_indices = @transform_0, window_bounds = array<i64: 2, 2, 2, 10, 16, 4>}, {pipeline_mode = #tpu.pipeline_mode<synchronous>, transform_indices = @transform_1, window_bounds = array<i64: 1152, 128>}, {pipeline_mode = #tpu.pipeline_mode<synchronous>, transform_indices = @transform_2, window_bounds = array<i64: 1152, 128>}, {pipeline_mode = #tpu.pipeline_mode<synchronous>, transform_indices = @transform_3, window_bounds = array<i64: 128, 128>}, {pipeline_mode = #tpu.pipeline_mode<synchronous>, transform_indices = @transform_4, window_bounds = array<i64: 3, 128>}, {transform_indices = @transform_5, window_bounds = array<i64: 2, 8, 8, 128>}]} {
    %c0_i32 = arith.constant 0 : i32
    %0 = arith.cmpi eq, %arg0, %c0_i32 : i32
    %1 = arith.extui %0 : i1 to i32
    %c0_i32_0 = arith.constant 0 : i32
    %2 = arith.cmpi ne, %1, %c0_i32_0 : i32
    scf.if %2 {
      %cst_89 = arith.constant 0.000000e+00 : bf16
      %110 = vector.broadcast %cst_89 : bf16 to vector<2x10x16x128xbf16>
      %c0_90 = arith.constant 0 : index
      %c0_91 = arith.constant 0 : index
      %c0_92 = arith.constant 0 : index
      %c0_93 = arith.constant 0 : index
      %111 = vector.load %arg7[%c0_90, %c0_91, %c0_92, %c0_93] : memref<2x10x16x128xbf16, #tpu.memory_space<vmem>>, vector<2x10x16x128xbf16>
      tpu.vector_store %arg7[%c0_90, %c0_91, %c0_92, %c0_93], %110 {strides = array<i32>} : memref<2x10x16x128xbf16, #tpu.memory_space<vmem>>, vector<2x10x16x128xbf16>,
    } else {
    }
    %c0 = arith.constant 0 : index
    %c0_1 = arith.constant 0 : index
    %c0_2 = arith.constant 0 : index
    %c0_3 = arith.constant 0 : index
    %c0_4 = arith.constant 0 : index
    %c0_5 = arith.constant 0 : index
    %3 = vector.load %arg1[%c0, %c0_1, %c0_2, %c0_3, %c0_4, %c0_5] : memref<2x2x2x10x16x4xf32, #tpu.memory_space<vmem>>, vector<2x1x1x10x16x4xf32>
    %4 = vector.shape_cast %3 : vector<2x1x1x10x16x4xf32> to vector<2x10x16x4xf32>
    %c0_6 = arith.constant 0 : index
    %c0_7 = arith.constant 0 : index
    %c1 = arith.constant 1 : index
    %c0_8 = arith.constant 0 : index
    %c0_9 = arith.constant 0 : index
    %c0_10 = arith.constant 0 : index
    %5 = vector.load %arg1[%c0_6, %c0_7, %c1, %c0_8, %c0_9, %c0_10] : memref<2x2x2x10x16x4xf32, #tpu.memory_space<vmem>>, vector<2x1x1x10x16x4xf32>
    %6 = vector.shape_cast %5 : vector<2x1x1x10x16x4xf32> to vector<2x10x16x4xf32>
    %7 = arith.maximumf %4, %6 : vector<2x10x16x4xf32>
    %c0_11 = arith.constant 0 : index
    %c1_12 = arith.constant 1 : index
    %c0_13 = arith.constant 0 : index
    %c0_14 = arith.constant 0 : index
    %c0_15 = arith.constant 0 : index
    %c0_16 = arith.constant 0 : index
    %8 = vector.load %arg1[%c0_11, %c1_12, %c0_13, %c0_14, %c0_15, %c0_16] : memref<2x2x2x10x16x4xf32, #tpu.memory_space<vmem>>, vector<2x1x1x10x16x4xf32>
    %9 = vector.shape_cast %8 : vector<2x1x1x10x16x4xf32> to vector<2x10x16x4xf32>
    %c0_17 = arith.constant 0 : index
    %c1_18 = arith.constant 1 : index
    %c1_19 = arith.constant 1 : index
    %c0_20 = arith.constant 0 : index
    %c0_21 = arith.constant 0 : index
    %c0_22 = arith.constant 0 : index
    %10 = vector.load %arg1[%c0_17, %c1_18, %c1_19, %c0_20, %c0_21, %c0_22] : memref<2x2x2x10x16x4xf32, #tpu.memory_space<vmem>>, vector<2x1x1x10x16x4xf32>
    %11 = vector.shape_cast %10 : vector<2x1x1x10x16x4xf32> to vector<2x10x16x4xf32>
    %12 = arith.maximumf %9, %11 : vector<2x10x16x4xf32>
    %13 = arith.maximumf %7, %12 : vector<2x10x16x4xf32>
    %14 = arith.truncf %13 : vector<2x10x16x4xf32> to vector<2x10x16x4xbf16>
    %cst = arith.constant 0.000000e+00 : bf16
    %15 = vector.broadcast %cst : bf16 to vector<2x10x16x124xbf16>
    %16 = tpu.concatenate %14, %15 in 3 : vector<2x10x16x4xbf16>, vector<2x10x16x124xbf16> -> vector<2x10x16x128xbf16>
    %c0_23 = arith.constant 0 : index
    %c0_24 = arith.constant 0 : index
    %17 = vector.load %arg5[%c0_23, %c0_24] : memref<3x128xf32, #tpu.memory_space<vmem>>, vector<3x128xf32>
    %18 = vector.extract_strided_slice %16 {offsets = [0, 0, 0, 0], sizes = [2, 8, 8, 128], strides = [1, 1, 1, 1]} : vector<2x10x16x128xbf16> to vector<2x8x8x128xbf16>
    %19 = vector.shape_cast %18 : vector<2x8x8x128xbf16> to vector<128x128xbf16>
    %20 = vector.extract_strided_slice %16 {offsets = [0, 0, 1, 0], sizes = [2, 8, 8, 128], strides = [1, 1, 1, 1]} : vector<2x10x16x128xbf16> to vector<2x8x8x128xbf16>
    %21 = vector.shape_cast %20 : vector<2x8x8x128xbf16> to vector<128x128xbf16>
    %22 = vector.extract_strided_slice %16 {offsets = [0, 0, 2, 0], sizes = [2, 8, 8, 128], strides = [1, 1, 1, 1]} : vector<2x10x16x128xbf16> to vector<2x8x8x128xbf16>
    %23 = vector.shape_cast %22 : vector<2x8x8x128xbf16> to vector<128x128xbf16>
    %24 = vector.extract_strided_slice %16 {offsets = [0, 1, 0, 0], sizes = [2, 8, 8, 128], strides = [1, 1, 1, 1]} : vector<2x10x16x128xbf16> to vector<2x8x8x128xbf16>
    %25 = vector.shape_cast %24 : vector<2x8x8x128xbf16> to vector<128x128xbf16>
    %26 = vector.extract_strided_slice %16 {offsets = [0, 1, 1, 0], sizes = [2, 8, 8, 128], strides = [1, 1, 1, 1]} : vector<2x10x16x128xbf16> to vector<2x8x8x128xbf16>
    %27 = vector.shape_cast %26 : vector<2x8x8x128xbf16> to vector<128x128xbf16>
    %28 = vector.extract_strided_slice %16 {offsets = [0, 1, 2, 0], sizes = [2, 8, 8, 128], strides = [1, 1, 1, 1]} : vector<2x10x16x128xbf16> to vector<2x8x8x128xbf16>
    %29 = vector.shape_cast %28 : vector<2x8x8x128xbf16> to vector<128x128xbf16>
    %30 = vector.extract_strided_slice %16 {offsets = [0, 2, 0, 0], sizes = [2, 8, 8, 128], strides = [1, 1, 1, 1]} : vector<2x10x16x128xbf16> to vector<2x8x8x128xbf16>
    %31 = vector.shape_cast %30 : vector<2x8x8x128xbf16> to vector<128x128xbf16>
    %32 = vector.extract_strided_slice %16 {offsets = [0, 2, 1, 0], sizes = [2, 8, 8, 128], strides = [1, 1, 1, 1]} : vector<2x10x16x128xbf16> to vector<2x8x8x128xbf16>
    %33 = vector.shape_cast %32 : vector<2x8x8x128xbf16> to vector<128x128xbf16>
    %34 = vector.extract_strided_slice %16 {offsets = [0, 2, 2, 0], sizes = [2, 8, 8, 128], strides = [1, 1, 1, 1]} : vector<2x10x16x128xbf16> to vector<2x8x8x128xbf16>
    %35 = vector.shape_cast %34 : vector<2x8x8x128xbf16> to vector<128x128xbf16>
    %36 = tpu.concatenate %19, %21, %23, %25, %27, %29, %31, %33, %35 in 1 : vector<128x128xbf16>, vector<128x128xbf16>, vector<128x128xbf16>, vector<128x128xbf16>, vector<128x128xbf16>, vector<128x128xbf16>, vector<128x128xbf16>, vector<128x128xbf16>, vector<128x128xbf16> -> vector<128x1152xbf16>
    %c0_25 = arith.constant 0 : index
    %c0_26 = arith.constant 0 : index
    %37 = vector.load %arg2[%c0_25, %c0_26] : memref<1152x128xbf16, #tpu.memory_space<vmem>>, vector<1152x128xbf16>
    %cst_27 = arith.constant dense<0.000000e+00> : vector<128x128xf32>
    %38 = tpu.matmul %36, %37, %cst_27 {dimension_numbers = #tpu.dot_dimension_numbers<[1], [0], [0], [1], [0, 0, 1, 1], [], []>} : vector<128x1152xbf16>, vector<1152x128xbf16>, vector<128x128xf32> -> vector<128x128xf32>
    %39 = vector.extract_strided_slice %17 {offsets = [0, 0], sizes = [1, 128], strides = [1, 1]} : vector<3x128xf32> to vector<1x128xf32>
    %40 = vector.shape_cast %39 : vector<1x128xf32> to vector<128xf32>
    %41 = vector.shape_cast %40 : vector<128xf32> to vector<1x128xf32>
    %42 = vector.broadcast %41 : vector<1x128xf32> to vector<128x128xf32>
    %43 = arith.addf %38, %42 : vector<128x128xf32>
    %cst_28 = arith.constant 3.000000e+00 : f32
    %44 = vector.broadcast %cst_28 : f32 to vector<128x128xf32>
    %45 = arith.addf %43, %44 : vector<128x128xf32>
    %cst_29 = arith.constant 0.000000e+00 : f32
    %cst_30 = arith.constant 6.000000e+00 : f32
    %46 = vector.broadcast %cst_29 : f32 to vector<128x128xf32>
    %47 = arith.maximumf %46, %45 : vector<128x128xf32>
    %48 = vector.broadcast %cst_30 : f32 to vector<128x128xf32>
    %49 = arith.minimumf %48, %47 : vector<128x128xf32>
    %50 = arith.mulf %43, %49 : vector<128x128xf32>
    %cst_31 = arith.constant 0.166666672 : f32
    %51 = vector.broadcast %cst_31 : f32 to vector<128x128xf32>
    %52 = arith.mulf %50, %51 : vector<128x128xf32>
    %c0_32 = arith.constant 0 : index
    %c0_33 = arith.constant 0 : index
    %53 = vector.load %arg4[%c0_32, %c0_33] : memref<128x128xbf16, #tpu.memory_space<vmem>>, vector<128x128xbf16>
    %cst_34 = arith.constant dense<0.000000e+00> : vector<128x128xf32>
    %54 = tpu.matmul %27, %53, %cst_34 {dimension_numbers = #tpu.dot_dimension_numbers<[1], [0], [0], [1], [0, 0, 1, 1], [], []>} : vector<128x128xbf16>, vector<128x128xbf16>, vector<128x128xf32> -> vector<128x128xf32>
    %55 = vector.extract_strided_slice %17 {offsets = [2, 0], sizes = [1, 128], strides = [1, 1]} : vector<3x128xf32> to vector<1x128xf32>
    %56 = vector.shape_cast %55 : vector<1x128xf32> to vector<128xf32>
    %57 = vector.shape_cast %56 : vector<128xf32> to vector<1x128xf32>
    %58 = vector.broadcast %57 : vector<1x128xf32> to vector<128x128xf32>
    %59 = arith.addf %54, %58 : vector<128x128xf32>
    %60 = arith.truncf %52 : vector<128x128xf32> to vector<128x128xbf16>
    %61 = vector.shape_cast %60 : vector<128x128xbf16> to vector<2x8x8x128xbf16>
    %c0_35 = arith.constant 0 : index
    %c1_36 = arith.constant 1 : index
    %c1_37 = arith.constant 1 : index
    %c0_38 = arith.constant 0 : index
    %62 = vector.load %arg7[%c0_35, %c1_36, %c1_37, %c0_38] : memref<2x10x16x128xbf16, #tpu.memory_space<vmem>>, vector<2x8x8x128xbf16>
    tpu.vector_store %arg7[%c0_35, %c1_36, %c1_37, %c0_38], %61 {strides = array<i32>} : memref<2x10x16x128xbf16, #tpu.memory_space<vmem>>, vector<2x8x8x128xbf16>,
    %c0_39 = arith.constant 0 : index
    %c0_40 = arith.constant 0 : index
    %c0_41 = arith.constant 0 : index
    %c0_42 = arith.constant 0 : index
    %63 = vector.load %arg7[%c0_39, %c0_40, %c0_41, %c0_42] : memref<2x10x16x128xbf16, #tpu.memory_space<vmem>>, vector<2x8x8x128xbf16>
    %64 = vector.shape_cast %63 : vector<2x8x8x128xbf16> to vector<128x128xbf16>
    %c0_43 = arith.constant 0 : index
    %c0_44 = arith.constant 0 : index
    %c1_45 = arith.constant 1 : index
    %c0_46 = arith.constant 0 : index
    %65 = vector.load %arg7[%c0_43, %c0_44, %c1_45, %c0_46] : memref<2x10x16x128xbf16, #tpu.memory_space<vmem>>, vector<2x8x8x128xbf16>
    %66 = vector.shape_cast %65 : vector<2x8x8x128xbf16> to vector<128x128xbf16>
    %c0_47 = arith.constant 0 : index
    %c0_48 = arith.constant 0 : index
    %c2 = arith.constant 2 : index
    %c0_49 = arith.constant 0 : index
    %67 = vector.load %arg7[%c0_47, %c0_48, %c2, %c0_49] : memref<2x10x16x128xbf16, #tpu.memory_space<vmem>>, vector<2x8x8x128xbf16>
    %68 = vector.shape_cast %67 : vector<2x8x8x128xbf16> to vector<128x128xbf16>
    %c0_50 = arith.constant 0 : index
    %c1_51 = arith.constant 1 : index
    %c0_52 = arith.constant 0 : index
    %c0_53 = arith.constant 0 : index
    %69 = vector.load %arg7[%c0_50, %c1_51, %c0_52, %c0_53] : memref<2x10x16x128xbf16, #tpu.memory_space<vmem>>, vector<2x8x8x128xbf16>
    %70 = vector.shape_cast %69 : vector<2x8x8x128xbf16> to vector<128x128xbf16>
    %c0_54 = arith.constant 0 : index
    %c1_55 = arith.constant 1 : index
    %c1_56 = arith.constant 1 : index
    %c0_57 = arith.constant 0 : index
    %71 = vector.load %arg7[%c0_54, %c1_55, %c1_56, %c0_57] : memref<2x10x16x128xbf16, #tpu.memory_space<vmem>>, vector<2x8x8x128xbf16>
    %72 = vector.shape_cast %71 : vector<2x8x8x128xbf16> to vector<128x128xbf16>
    %c0_58 = arith.constant 0 : index
    %c1_59 = arith.constant 1 : index
    %c2_60 = arith.constant 2 : index
    %c0_61 = arith.constant 0 : index
    %73 = vector.load %arg7[%c0_58, %c1_59, %c2_60, %c0_61] : memref<2x10x16x128xbf16, #tpu.memory_space<vmem>>, vector<2x8x8x128xbf16>
    %74 = vector.shape_cast %73 : vector<2x8x8x128xbf16> to vector<128x128xbf16>
    %c0_62 = arith.constant 0 : index
    %c2_63 = arith.constant 2 : index
    %c0_64 = arith.constant 0 : index
    %c0_65 = arith.constant 0 : index
    %75 = vector.load %arg7[%c0_62, %c2_63, %c0_64, %c0_65] : memref<2x10x16x128xbf16, #tpu.memory_space<vmem>>, vector<2x8x8x128xbf16>
    %76 = vector.shape_cast %75 : vector<2x8x8x128xbf16> to vector<128x128xbf16>
    %c0_66 = arith.constant 0 : index
    %c2_67 = arith.constant 2 : index
    %c1_68 = arith.constant 1 : index
    %c0_69 = arith.constant 0 : index
    %77 = vector.load %arg7[%c0_66, %c2_67, %c1_68, %c0_69] : memref<2x10x16x128xbf16, #tpu.memory_space<vmem>>, vector<2x8x8x128xbf16>
    %78 = vector.shape_cast %77 : vector<2x8x8x128xbf16> to vector<128x128xbf16>
    %c0_70 = arith.constant 0 : index
    %c2_71 = arith.constant 2 : index
    %c2_72 = arith.constant 2 : index
    %c0_73 = arith.constant 0 : index
    %79 = vector.load %arg7[%c0_70, %c2_71, %c2_72, %c0_73] : memref<2x10x16x128xbf16, #tpu.memory_space<vmem>>, vector<2x8x8x128xbf16>
    %80 = vector.shape_cast %79 : vector<2x8x8x128xbf16> to vector<128x128xbf16>
    %81 = tpu.concatenate %64, %66, %68, %70, %72, %74, %76, %78, %80 in 1 : vector<128x128xbf16>, vector<128x128xbf16>, vector<128x128xbf16>, vector<128x128xbf16>, vector<128x128xbf16>, vector<128x128xbf16>, vector<128x128xbf16>, vector<128x128xbf16>, vector<128x128xbf16> -> vector<128x1152xbf16>
    %c0_74 = arith.constant 0 : index
    %c0_75 = arith.constant 0 : index
    %82 = vector.load %arg3[%c0_74, %c0_75] : memref<1152x128xbf16, #tpu.memory_space<vmem>>, vector<1152x128xbf16>
    %cst_76 = arith.constant dense<0.000000e+00> : vector<128x128xf32>
    %83 = tpu.matmul %81, %82, %cst_76 {dimension_numbers = #tpu.dot_dimension_numbers<[1], [0], [0], [1], [0, 0, 1, 1], [], []>} : vector<128x1152xbf16>, vector<1152x128xbf16>, vector<128x128xf32> -> vector<128x128xf32>
    %84 = vector.extract_strided_slice %17 {offsets = [1, 0], sizes = [1, 128], strides = [1, 1]} : vector<3x128xf32> to vector<1x128xf32>
    %85 = vector.shape_cast %84 : vector<1x128xf32> to vector<128xf32>
    %86 = vector.shape_cast %85 : vector<128xf32> to vector<1x128xf32>
    %87 = vector.broadcast %86 : vector<1x128xf32> to vector<128x128xf32>
    %88 = arith.addf %83, %87 : vector<128x128xf32>
    %cst_77 = arith.constant 3.000000e+00 : f32
    %89 = vector.broadcast %cst_77 : f32 to vector<128x128xf32>
    %90 = arith.addf %88, %89 : vector<128x128xf32>
    %cst_78 = arith.constant 0.000000e+00 : f32
    %cst_79 = arith.constant 6.000000e+00 : f32
    %91 = vector.broadcast %cst_78 : f32 to vector<128x128xf32>
    %92 = arith.maximumf %91, %90 : vector<128x128xf32>
    %93 = vector.broadcast %cst_79 : f32 to vector<128x128xf32>
    %94 = arith.minimumf %93, %92 : vector<128x128xf32>
    %95 = arith.mulf %88, %94 : vector<128x128xf32>
    %cst_80 = arith.constant 0.166666672 : f32
    %96 = vector.broadcast %cst_80 : f32 to vector<128x128xf32>
    %97 = arith.mulf %95, %96 : vector<128x128xf32>
    %98 = arith.addf %97, %59 : vector<128x128xf32>
    %cst_81 = arith.constant 3.000000e+00 : f32
    %99 = vector.broadcast %cst_81 : f32 to vector<128x128xf32>
    %100 = arith.addf %98, %99 : vector<128x128xf32>
    %cst_82 = arith.constant 0.000000e+00 : f32
    %cst_83 = arith.constant 6.000000e+00 : f32
    %101 = vector.broadcast %cst_82 : f32 to vector<128x128xf32>
    %102 = arith.maximumf %101, %100 : vector<128x128xf32>
    %103 = vector.broadcast %cst_83 : f32 to vector<128x128xf32>
    %104 = arith.minimumf %103, %102 : vector<128x128xf32>
    %105 = arith.mulf %98, %104 : vector<128x128xf32>
    %cst_84 = arith.constant 0.166666672 : f32
    %106 = vector.broadcast %cst_84 : f32 to vector<128x128xf32>
    %107 = arith.mulf %105, %106 : vector<128x128xf32>
    %108 = vector.shape_cast %107 : vector<128x128xf32> to vector<2x8x8x128xf32>
    %c0_85 = arith.constant 0 : index
    %c0_86 = arith.constant 0 : index
    %c0_87 = arith.constant 0 : index
    %c0_88 = arith.constant 0 : index
    %109 = vector.load %arg6[%c0_85, %c0_86, %c0_87, %c0_88] : memref<2x8x8x128xf32, #tpu.memory_space<vmem>>, vector<2x8x8x128xf32>
    tpu.vector_store %arg6[%c0_85, %c0_86, %c0_87, %c0_88], %108 {strides = array<i32>} : memref<2x8x8x128xf32, #tpu.memory_space<vmem>>, vector<2x8x8x128xf32>,
    return
  }
  func.func @transform_0(%arg0: i32) -> (i32, i32, i32, i32, i32, i32) {
    %c0_i32 = arith.constant 0 : i32
    %c0_i32_0 = arith.constant 0 : i32
    %c0_i32_1 = arith.constant 0 : i32
    %c0_i32_2 = arith.constant 0 : i32
    %c0_i32_3 = arith.constant 0 : i32
    %c0_i32_4 = arith.constant 0 : i32
    return %arg0, %c0_i32, %c0_i32_0, %c0_i32_1, %c0_i32_2, %c0_i32_3 : i32, i32, i32, i32, i32, i32
  }
  func.func @transform_1(%arg0: i32) -> (i32, i32) {
    %c0_i32 = arith.constant 0 : i32
    %c0_i32_0 = arith.constant 0 : i32
    %c0_i32_1 = arith.constant 0 : i32
    return %c0_i32, %c0_i32_0 : i32, i32
  }
  func.func @transform_2(%arg0: i32) -> (i32, i32) {
    %c0_i32 = arith.constant 0 : i32
    %c0_i32_0 = arith.constant 0 : i32
    %c0_i32_1 = arith.constant 0 : i32
    return %c0_i32, %c0_i32_0 : i32, i32
  }
  func.func @transform_3(%arg0: i32) -> (i32, i32) {
    %c0_i32 = arith.constant 0 : i32
    %c0_i32_0 = arith.constant 0 : i32
    %c0_i32_1 = arith.constant 0 : i32
    return %c0_i32, %c0_i32_0 : i32, i32
  }
  func.func @transform_4(%arg0: i32) -> (i32, i32) {
    %c0_i32 = arith.constant 0 : i32
    %c0_i32_0 = arith.constant 0 : i32
    %c0_i32_1 = arith.constant 0 : i32
    return %c0_i32, %c0_i32_0 : i32, i32
  }
  func.func @transform_5(%arg0: i32) -> (i32, i32, i32, i32) {
    %c0_i32 = arith.constant 0 : i32
    %c0_i32_0 = arith.constant 0 : i32
    %c0_i32_1 = arith.constant 0 : i32
    %c0_i32_2 = arith.constant 0 : i32
    return %arg0, %c0_i32, %c0_i32_0, %c0_i32_1 : i32, i32, i32, i32
  }
}

</mosaic_0001>

<bundles_post_ra>
// kernel: tpu_custom_call.1
= control target key start
LH: loop header
LB: loop body
LE: loop exit
PB: predicated region body
PF: predicated region fallthrough
CT: control target
= control target key end

     0   :  { %vm369_vm0 = vcmask 31744   ;;  %vm719_vm1 = vcmask 1042432   ;;  %vm492_vm2 = vsmask.f32 3328  ;;  %vm720_vm3 = vcmask 1046532   ;;  %s9635_s0 = inlined_call_operand.vmem [shape: f32[2,2,2,10,16,4], index: 0, kind: input, shape index: {}]   ;;  %s9636_s1 = inlined_call_operand.vmem [shape: bf16[1152,128], index: 1, kind: input, shape index: {}]   ;;  %s9637_s2 = inlined_call_operand.vmem [shape: bf16[1152,128], index: 2, kind: input, shape index: {}]   ;;  %s9638_s3 = inlined_call_operand.vmem [shape: bf16[128,128], index: 3, kind: input, shape index: {}]   ;;  %s9639_s4 = inlined_call_operand.vmem [shape: f32[3,128], index: 4, kind: input, shape index: {}]   ;;  %s9640_s5 = inlined_call_operand.hbm [shape: f32[2,8,8,128], index: 5, kind: output, shape index: {}]  }
   0x1   :  { %v6575_v0 = vld [vmem:[%s9636_s1 + $0x78] sm:$0xff]   ;;  %v6579_v4 = vld [vmem:[%s9636_s1 + $0x70] sm:$0xff]   ;;  %v6583_v8 = vld [vmem:[%s9636_s1 + $0x68] sm:$0xff]   ;;  %vm493_vm4 = vsmask.f32 7440 }
   0x2   :  { %v6576_v1 = vld [vmem:[%s9636_s1 + $0x38] sm:$0xff]   ;;  %5899 = vmatprep.subr.bf16.mxu0 %v6575_v0  ;;  %v6580_v5 = vld [vmem:[%s9636_s1 + $0x30] sm:$0xff]   ;;  %v6584_v9 = vld [vmem:[%s9636_s1 + $0x28] sm:$0xff]  }
   0x3   :  { %v6577_v2 = vld [vmem:[%s9636_s1 + $0xf8] sm:$0xff]   ;;  %5900 = vmatpush3.bf16.msra.mxu0 %v6576_v1  ;;  %v6581_v6 = vld [vmem:[%s9636_s1 + $0xf0] sm:$0xff]   ;;  %v6585_v10 = vld [vmem:[%s9636_s1 + $0xe8] sm:$0xff]  }
   0x4   :  { %v6578_v3 = vld [vmem:[%s9636_s1 + $0xb8] sm:$0xff]   ;;  %5963 = vmatprep.subr.bf16.mxu1 %v6577_v2  ;;  %5901 = vmatprep.subr.bf16.mxu0 %v6579_v4  ;;  %v6582_v7 = vld [vmem:[%s9636_s1 + $0xb0] sm:$0xff]   ;;  %v6586_v11 = vld [vmem:[%s9636_s1 + $0xa8] sm:$0xff]  }
   0x5   :  { %5964 = vmatpush3.bf16.msra.mxu1 %v6578_v3  ;;  %v6587_v12 = vld [vmem:[%s9636_s1 + $0x60] sm:$0xff]   ;;  %v6591_v16 = vld [vmem:[%s9636_s1 + $0x58] sm:$0xff]   ;;  %v6595_v20 = vld [vmem:[%s9636_s1 + $0x50] sm:$0xff]  }
   0x6   :  { %5965 = vmatprep.subr.bf16.mxu1 %v6581_v6  ;;  %v6588_v13 = vld [vmem:[%s9636_s1 + $0x20] sm:$0xff]   ;;  %v6592_v17 = vld [vmem:[%s9636_s1 + $0x18] sm:$0xff]   ;;  %v6596_v21 = vld [vmem:[%s9636_s1 + $0x10] sm:$0xff]  }
   0x7   :  { %5902 = vmatpush3.bf16.msra.mxu0 %v6580_v5  ;;  %v6589_v14 = vld [vmem:[%s9636_s1 + $0xe0] sm:$0xff]   ;;  %v6593_v18 = vld [vmem:[%s9636_s1 + $0xd8] sm:$0xff]   ;;  %v6597_v22 = vld [vmem:[%s9636_s1 + $0xd0] sm:$0xff]  }
   0x8   :  { %5903 = vmatprep.subr.bf16.mxu0 %v6583_v8  ;;  %v6590_v15 = vld [vmem:[%s9636_s1 + $0xa0] sm:$0xff]   ;;  %v6594_v19 = vld [vmem:[%s9636_s1 + $0x98] sm:$0xff]   ;;  %v6598_v23 = vld [vmem:[%s9636_s1 + $0x90] sm:$0xff]  }
   0x9   :  { %5966 = vmatpush3.bf16.msra.mxu1 %v6582_v7  ;;  %v6599_v24 = vld [vmem:[%s9636_s1 + $0x48] sm:$0xff]   ;;  %v6603_v28 = vld [vmem:[%s9636_s1 + $0x40] sm:$0xff]   ;;  %v68_v33 = vld [vmem:[%s9635_s0 + $0x10] sm:$0xff] }
   0xa   :  { %5967 = vmatprep.subr.bf16.mxu1 %v6585_v10  ;;  %v6600_v25 = vld [vmem:[%s9636_s1 + $0x8] sm:$0xff]   ;;  %v6604_v29 = vld [vmem:[%s9636_s1] sm:$0xff]   ;;  %v69_v34 = vld [vmem:[%s9635_s0 + $0x18] sm:$0xff] }
   0xb   :  { %5904 = vmatpush3.bf16.msra.mxu0 %v6584_v9  ;;  %v6601_v26 = vld [vmem:[%s9636_s1 + $0xc8] sm:$0xff]   ;;  %v6605_v30 = vld [vmem:[%s9636_s1 + $0xc0] sm:$0xff]   ;;  %v5363_v39 = vld [vmem:[%s9635_s0 + $0xb0] sm:$0xff] }
   0xc   :  { %5905 = vmatprep.subr.bf16.mxu0 %v6587_v12  ;;  %v6602_v27 = vld [vmem:[%s9636_s1 + $0x88] sm:$0xff]   ;;  %v66_v31 = vld [vmem:[%s9635_s0] sm:$0xff]  ;;  %v5364_v40 = vld [vmem:[%s9635_s0 + $0xb8] sm:$0xff]  ;;  %v149_v48 = vmax.f32 %v68_v33, %v5363_v39 }
   0xd   :  { %5968 = vmatpush3.bf16.msra.mxu1 %v6586_v11  ;;  %v67_v32 = vld [vmem:[%s9635_s0 + $0x8] sm:$0xff]  ;;  %v70_v35 = vld [vmem:[%s9635_s0 + $0x20] sm:$0xff]  ;;  %v5403_v45 = vld [vmem:[%s9635_s0 + $0x150] sm:$0xff]  ;;  %v150_v52 = vmax.f32 %v69_v34, %v5364_v40 }
   0xe   :  { %5969 = vmatprep.subr.bf16.mxu1 %v6589_v14  ;;  %v71_v36 = vld [vmem:[%s9635_s0 + $0x28] sm:$0xff]  ;;  %v5361_v37 = vld [vmem:[%s9635_s0 + $0xa0] sm:$0xff]  ;;  %v5404_v49 = vld [vmem:[%s9635_s0 + $0x158] sm:$0xff] }
   0xf   :  { %5906 = vmatpush3.bf16.msra.mxu0 %v6588_v13  ;;  %v5362_v38 = vld [vmem:[%s9635_s0 + $0xa8] sm:$0xff]  ;;  %v5365_v41 = vld [vmem:[%s9635_s0 + $0xc0] sm:$0xff]  ;;  %v147_v46 = vmax.f32 %v66_v31, %v5361_v37  ;;  %v5443_v57 = vld [vmem:[%s9635_s0 + $0x1f0] sm:$0xff]  ;;  %v9654_v37 = vmov 0 }
  0x10   :  { %5907 = vmatprep.subr.bf16.mxu0 %v6591_v16  ;;  %v5366_v42 = vld [vmem:[%s9635_s0 + $0xc8] sm:$0xff]  ;;  %v5401_v43 = vld [vmem:[%s9635_s0 + $0x140] sm:$0xff]  ;;  %v148_v47 = vmax.f32 %v67_v32, %v5362_v38  ;;  %v151_v53 = vmax.f32 %v70_v35, %v5365_v41  ;;  %v5444_v58 = vld [vmem:[%s9635_s0 + $0x1f8] sm:$0xff]  ;;  %v271_v63 = vmax.f32 %v5403_v45, %v5443_v57 }
  0x11   :  { %5970 = vmatpush3.bf16.msra.mxu1 %v6590_v15  ;;  %v5402_v44 = vld [vmem:[%s9635_s0 + $0x148] sm:$0xff]  ;;  %v5405_v50 = vld [vmem:[%s9635_s0 + $0x160] sm:$0xff]  ;;  %v152_v54 = vmax.f32 %v71_v36, %v5366_v42  ;;  %v272_v0 = vmax.f32 %v5404_v49, %v5444_v58  ;;  %v6607_v10 = vld [vmem:[%s9636_s1 + $0x178] sm:$0xff]  }
  0x12   :  { %5971 = vmatprep.subr.bf16.mxu1 %v6593_v18  ;;  %v5406_v51 = vld [vmem:[%s9635_s0 + $0x168] sm:$0xff]  ;;  %v5441_v55 = vld [vmem:[%s9635_s0 + $0x1e0] sm:$0xff]  ;;  %v311_v5 = vmax.f32 %v149_v48, %v271_v63  ;;  %v6984_v12 = vld [vmem:[%s9635_s0 + $0x30] sm:$0xff] }
  0x13   :  { %5908 = vmatpush3.bf16.msra.mxu0 %v6592_v17  ;;  %v5442_v56 = vld [vmem:[%s9635_s0 + $0x1e8] sm:$0xff]  ;;  %v5445_v59 = vld [vmem:[%s9635_s0 + $0x200] sm:$0xff]  ;;  %v269_v61 = vmax.f32 %v5401_v43, %v5441_v55  ;;  %v312_v7 = vmax.f32 %v150_v52, %v272_v0  ;;  %v6989_v15 = vld [vmem:[%s9635_s0 + $0x38] sm:$0xff] }
  0x14   :  { %5909 = vmatprep.subr.bf16.mxu0 %v6595_v20  ;;  %v5446_v60 = vld [vmem:[%s9635_s0 + $0x208] sm:$0xff]  ;;  %v270_v62 = vmax.f32 %v5402_v44, %v5442_v56  ;;  %v273_v1 = vmax.f32 %v5405_v50, %v5445_v59  ;;  %v6606_v6 = vld [vmem:[%s9636_s1 + $0x80] sm:$0xff]   ;;  %v6994_v16 = vld [vmem:[%s9635_s0 + $0xd0] sm:$0xff] }
  0x15   :  { %5972 = vmatpush3.bf16.msra.mxu1 %v6594_v19  ;;  %v274_v2 = vmax.f32 %v5406_v51, %v5446_v60  ;;  %v309_v3 = vmax.f32 %v147_v46, %v269_v61  ;;  %v350_v13 = vpack.c.bf16 %v312_v7, %v311_v5  ;;  %v6999_v17 = vld [vmem:[%s9635_s0 + $0xd8] sm:$0xff]  ;;  %v153_v19 = vmax.f32 %v6984_v12, %v6994_v16  ;;  %vm7035_vm5 = vmor %vm492_vm2, %vm493_vm4  ;;  %v5407_v42 = vld [vmem:[%s9635_s0 + $0x170] sm:$0xff] }
  0x16   :  { %5973 = vmatprep.subr.bf16.mxu1 %v6597_v22  ;;  %v310_v4 = vmax.f32 %v148_v47, %v270_v62  ;;  %v313_v8 = vmax.f32 %v151_v53, %v273_v1  ;;  %v154_v20 = vmax.f32 %v6989_v15, %v6999_v17  ;;  %v9655_v37 = vsel %vm7035_vm5, 4294967295, %v9654_v37  ;;  %v5408_v43 = vld [vmem:[%s9635_s0 + $0x178] sm:$0xff]  ;;  %v5447_v44 = vld [vmem:[%s9635_s0 + $0x210] sm:$0xff]  ;;  %vm7051_vm6 = vmor %vm719_vm1, %vm720_vm3 }
  0x17   :  { %5910 = vmatpush3.bf16.msra.mxu0 %v6596_v21  ;;  %v314_v9 = vmax.f32 %v152_v54, %v274_v2  ;;  %v7009_v21 = vsel %vm369_vm0, %v350_v13, 0  ;;  %9656 = vst [vmem:[#allocation6_spill] sm:$0xff] %v9655_v37  ;;  %v5448_v54 = vld [vmem:[%s9635_s0 + $0x218] sm:$0xff]  ;;  %v74_v55 = vld [vmem:[%s9635_s0 + $0x40] sm:$0xff]  ;;  %v75_v60 = vld [vmem:[%s9635_s0 + $0x48] sm:$0xff] }
  0x18   :  { %5911 = vmatprep.subr.bf16.mxu0 %v6599_v24  ;;  %v349_v11 = vpack.c.bf16 %v310_v4, %v309_v3  ;;  %v5369_v61 = vld [vmem:[%s9635_s0 + $0xe0] sm:$0xff]  ;;  %v5370_v62 = vld [vmem:[%s9635_s0 + $0xe8] sm:$0xff]  ;;  %v5451_v17 = vld [vmem:[%s9635_s0 + $0x230] sm:$0xff] }
  0x19   :  { %5974 = vmatpush3.bf16.msra.mxu1 %v6598_v23  ;;  %v351_v14 = vpack.c.bf16 %v314_v9, %v313_v8  ;;  %v5409_v3 = vld [vmem:[%s9635_s0 + $0x180] sm:$0xff]  ;;  %v5410_v4 = vld [vmem:[%s9635_s0 + $0x188] sm:$0xff]  ;;  %v275_v8 = vmax.f32 %v5407_v42, %v5447_v44  ;;  %v276_v9 = vmax.f32 %v5408_v43, %v5448_v54 }
  0x1a   :  { %5975 = vmatprep.subr.bf16.mxu1 %v6601_v26  ;;  %v7002_v18 = vsel %vm369_vm0, %v349_v11, 0  ;;  %v5484_v26 = vcombine.high %v7009_v21, %v7009_v21  ;;  %v5449_v5 = vld [vmem:[%s9635_s0 + $0x220] sm:$0xff]  ;;  %v7161_v54 = vld [vmem:[%s9635_s0 + $0x68] sm:$0xff] }
  0x1b   :  { %5912 = vmatpush3.bf16.msra.mxu0 %v6600_v25  ;;  %v7012_v22 = vsel %vm369_vm0, %v351_v14, 0  ;;  %v5481_v23 = vcombine.low %v7002_v18, %v7002_v18  ;;  %v5482_v24 = vcombine.high %v7002_v18, %v7002_v18  ;;  %v5483_v25 = vcombine.low %v7009_v21, %v7009_v21  ;;  %v6608_v14 = vld [vmem:[%s9636_s1 + $0x138] sm:$0xff]  }
  0x1c   :  { %5913 = vmatprep.subr.bf16.mxu0 %v6603_v28  ;;  %v7028_v28 = vcombine.high %v7012_v22, %v7012_v22  ;;  %v5541_v32 = vcombine.low %v7002_v18, %v7009_v21  ;;  %v519_v35 = vshll.u32 %v5484_v26, 16  ;;  %v5565_v53 = vcombine.low %v7009_v21, %v7012_v22 }
  0x1d   :  { %5976 = vmatpush3.bf16.msra.mxu1 %v6602_v27  ;;  %v7024_v27 = vcombine.low %v7012_v22, %v7012_v22  ;;  %v505_v31 = vshll.u32 %v5482_v24, 16  ;;  %v510_v33 = vshrl.u32 %v5483_v25, 16  ;;  %v513_v34 = vshll.u32 %v5483_v25, 16 }
  0x1e   :  { %5977 = vmatprep.subr.bf16.mxu1 %v6605_v30  ;;  %v499_v30 = vshll.u32 %v5481_v23, 16  ;;  %v521_v47 = vrot.slane %v519_v35, 5  ;;  %v533_v52 = vshll.u32 %v7028_v28, 16  ;;  %v5513_v57 = vrot.slane %v5481_v23, 9  ;;  %1735 = vmatprep.mubr.bf16.mxu1 %v5565_v53  ;;  %v5372_v35 = vld [vmem:[%s9635_s0 + $0xf8] sm:$0xff] }
  0x1f   :  { %5914 = vmatpush3.bf16.msra.mxu0 %v6604_v29  ;;  %v496_v29 = vshrl.u32 %v5481_v23, 16  ;;  %v524_v36 = vshrl.u32 %v7024_v27, 16  ;;  %v507_v40 = vrot.slane %v505_v31, 5  ;;  %v527_v41 = vshll.u32 %v7024_v27, 16 }
  0x20   :  { %6027 = vmatprep.subr.bf16.mxu0 %v6607_v10  ;;  %v501_v39 = vrot.slane %v499_v30, 5  ;;  %v512_v45 = vrot.slane %v510_v33, 4  ;;  %v515_v46 = vrot.slane %v513_v34, 5  ;;  %v724_v58 = vrot.slane %v5482_v24, 5  ;;  %v5450_v10 = vld [vmem:[%s9635_s0 + $0x228] sm:$0xff] }
  0x21   :  { %5978 = vmatpush3.bf16.msra.mxu1 %v6606_v6  ;;  %v498_v38 = vrot.slane %v496_v29, 4  ;;  %v526_v48 = vrot.slane %v524_v36, 4  ;;  %v529_v51 = vrot.slane %v527_v41, 5  ;;  %v5514_v59 = vrot.slane %v5483_v25, 9  ;;  %v76_v25 = vld [vmem:[%s9635_s0 + $0x50] sm:$0xff] }
  0x22   :  { %v516_v56 = vor.u32 %v515_v46, %v512_v45  ;;  %v535_v1 = vrot.slane %v533_v52, 5  ;;  %v728_v2 = vrot.slane %v5484_v26, 5  ;;  %v725_v7 = vsel %vm7051_vm6, %v5513_v57, %v724_v58  ;;  %v77_v26 = vld [vmem:[%s9635_s0 + $0x58] sm:$0xff]  ;;  %v5371_v29 = vld [vmem:[%s9635_s0 + $0xf0] sm:$0xff] }
  0x23   :  { %v502_v50 = vor.u32 %v501_v39, %v498_v38  ;;  %v530_v0 = vor.u32 %v529_v51, %v526_v48  ;;  %v155_v24 = vmax.f32 %v74_v55, %v5369_v61  ;;  %v315_v33 = vmax.f32 %v153_v19, %v275_v8  ;;  %v5411_v36 = vld [vmem:[%s9635_s0 + $0x190] sm:$0xff]  ;;  %v5412_v38 = vld [vmem:[%s9635_s0 + $0x198] sm:$0xff]  ;;  %v7144_v48 = vld [vmem:[%s9635_s0 + $0x60] sm:$0xff] }
  0x24   :  { %v517_v6 = vrot.slane %v516_v56, 4  ;;  %v7094_v23 = vsel %vm7051_vm6, %v5514_v59, %v728_v2  ;;  %v316_v34 = vmax.f32 %v154_v20, %v276_v9  ;;  %v156_v19 = vmax.f32 %v75_v60, %v5370_v62  ;;  %v5452_v20 = vld [vmem:[%s9635_s0 + $0x238] sm:$0xff]  ;;  %v6609_v41 = vld [vmem:[%s9636_s1 + $0x170] sm:$0xff]   ;;  %v6611_v60 = vld [vmem:[%s9636_s1 + $0x168] sm:$0xff]  }
  0x25   :  { %v503_v63 = vrot.slane %v502_v50, 4  ;;  %v531_v13 = vrot.slane %v530_v0, 4  ;;  %v5557_v31 = vcombine.low %v725_v7, %v7094_v23  ;;  %v277_v15 = vmax.f32 %v5409_v3, %v5449_v5  ;;  %v7149_v50 = vld [vmem:[%s9635_s0 + $0x100] sm:$0xff]  ;;  %v6612_v9 = vld [vmem:[%s9636_s1 + $0x128] sm:$0xff]  }
  0x26   :  { %v522_v30 = vsel %vm7035_vm5, %v517_v6, %v521_v47  ;;  %v278_v42 = vmax.f32 %v5410_v4, %v5450_v10  ;;  %v5515_v43 = vrot.slane %v7024_v27, 9  ;;  %v732_v45 = vrot.slane %v7028_v28, 5  ;;  %v6610_v28 = vld [vmem:[%s9636_s1 + $0x130] sm:$0xff]  }
  0x27   :  { %v508_v11 = vsel %vm7035_vm5, %v503_v63, %v507_v40  ;;  %v7125_v12 = vsel %vm7035_vm5, %v531_v13, %v535_v1  ;;  %1736 = vmatmul.mubr.bf16.vlgmr.msra.gmra.mxu1 %v5557_v31  ;;  %v352_v40 = vpack.c.bf16 %v316_v34, %v315_v33  ;;  %v317_v44 = vmax.f32 %v155_v24, %v277_v15  ;;  %v6613_v24 = vld [vmem:[%s9636_s1 + $0x160] sm:$0xff]  }
  0x28   :  { %v5549_v16 = vcombine.low %v508_v11, %v522_v30  ;;  %v7134_v39 = vcombine.low %v522_v30, %v7125_v12  ;;  %v157_v46 = vmax.f32 %v76_v25, %v5371_v29  ;;  %v158_v47 = vmax.f32 %v77_v26, %v5372_v35  ;;  %v5413_v31 = vld [vmem:[%s9635_s0 + $0x1a0] sm:$0xff] }
  0x29   :  { %v378_v27 = vsel %vm369_vm0, %v352_v40, 0  ;;  %v318_v51 = vmax.f32 %v156_v19, %v278_v42  ;;  %v279_v52 = vmax.f32 %v5411_v36, %v5451_v17  ;;  %v280_v53 = vmax.f32 %v5412_v38, %v5452_v20  ;;  %v5453_v33 = vld [vmem:[%s9635_s0 + $0x240] sm:$0xff]  ;;  %v5454_v19 = vld [vmem:[%s9635_s0 + $0x248] sm:$0xff] }
  0x2a   :  { %1638 = vmatprep.mubr.bf16.mxu0 %v5549_v16  ;;  %v5487_v55 = vcombine.low %v378_v27, %v378_v27  ;;  %v5488_v56 = vcombine.high %v378_v27, %v378_v27  ;;  %v7164_v18 = vcombine.low %v7012_v22, %v378_v27  ;;  %v7168_v21 = vsel %vm7051_vm6, %v5515_v43, %v732_v45  ;;  %v5414_v16 = vld [vmem:[%s9635_s0 + $0x1a8] sm:$0xff]  ;;  %v6614_v42 = vld [vmem:[%s9636_s1 + $0x120] sm:$0xff]  }
  0x2b   :  { %1639 = vmatmul.mubr.bf16.vlgmr.msra.gmra.mxu0 %v5541_v32  ;;  %v7173_v32 = vld [vmem:[%s9635_s0 + $0x108] sm:$0xff]  ;;  %v353_v57 = vpack.c.bf16 %v318_v51, %v317_v44  ;;  %v319_v58 = vmax.f32 %v157_v46, %v279_v52  ;;  %v320_v59 = vmax.f32 %v158_v47, %v280_v53  ;;  %v159_v22 = vmax.f32 %v7144_v48, %v7149_v50  ;;  %v81_v47 = vld [vmem:[%s9635_s0 + $0x78] sm:$0xff]  ;;  %v5375_v48 = vld [vmem:[%s9635_s0 + $0x110] sm:$0xff] }
  0x2c   :  { %6028 = vmatpush3.bf16.msra.mxu0 %v6608_v14  ;;  %v538_v61 = vshrl.u32 %v5487_v55, 16  ;;  %v541_v62 = vshll.u32 %v5487_v55, 16  ;;  %v547_v63 = vshll.u32 %v5488_v56, 16  ;;  %v5516_v0 = vrot.slane %v5487_v55, 9  ;;  %v5376_v50 = vld [vmem:[%s9635_s0 + $0x118] sm:$0xff] }
  0x2d   :  { %6029 = vmatprep.subr.bf16.mxu0 %v6609_v41  ;;  %v380_v1 = vsel %vm369_vm0, %v353_v57, 0  ;;  %v736_v2 = vrot.slane %v5488_v56, 5  ;;  %v354_v3 = vpack.c.bf16 %v320_v59, %v319_v58  ;;  %v160_v4 = vmax.f32 %v7161_v54, %v7173_v32  ;;  %v80_v41 = vld [vmem:[%s9635_s0 + $0x70] sm:$0xff]  ;;  %v5416_v55 = vld [vmem:[%s9635_s0 + $0x1b8] sm:$0xff] }
  0x2e   :  { %v540_v5 = vrot.slane %v538_v61, 4  ;;  %v543_v6 = vrot.slane %v541_v62, 5  ;;  %v549_v7 = vrot.slane %v547_v63, 5  ;;  %v7183_v8 = vcombine.low %v380_v1, %v380_v1  ;;  %v5455_v56 = vld [vmem:[%s9635_s0 + $0x250] sm:$0xff]  ;;  %v5456_v57 = vld [vmem:[%s9635_s0 + $0x258] sm:$0xff]  ;;  %v82_v62 = vld [vmem:[%s9635_s0 + $0x80] sm:$0xff] }
  0x2f   :  { %v5566_v10 = vcombine.low %v378_v27, %v380_v1  ;;  %v7190_v11 = vsel %vm7051_vm6, %v5516_v0, %v736_v2  ;;  %v7193_v13 = vsel %vm369_vm0, %v354_v3, 0  ;;  %v7195_v14 = vcombine.high %v380_v1, %v380_v1  ;;  %v5415_v27 = vld [vmem:[%s9635_s0 + $0x1b0] sm:$0xff]  ;;  %v83_v3 = vld [vmem:[%s9635_s0 + $0x88] sm:$0xff] }
  0x30   :  { %6030 = vmatpush3.bf16.msra.mxu0 %v6610_v28  ;;  %v544_v25 = vor.u32 %v543_v6, %v540_v5  ;;  %v7202_v26 = vcombine.low %v7168_v21, %v7190_v11  ;;  %v7206_v29 = vcombine.low %v7193_v13, %v7193_v13  ;;  %v7210_v30 = vcombine.high %v7193_v13, %v7193_v13 }
  0x31   :  { %6031 = vmatprep.subr.bf16.mxu0 %v6611_v60  ;;  %1743 = vmatprep.mubr.bf16.mxu1 %v5566_v10  ;;  %v552_v34 = vshrl.u32 %v7183_v8, 16  ;;  %v555_v35 = vshll.u32 %v7183_v8, 16  ;;  %v561_v36 = vshll.u32 %v7195_v14, 16  ;;  %v7222_v38 = vcombine.low %v380_v1, %v7193_v13  ;;  %v5417_v10 = vld [vmem:[%s9635_s0 + $0x1c0] sm:$0xff] }
  0x32   :  { %9659 = vst [vmem:[#allocation7_spill] sm:$0xff] %v7202_v26  ;;  %v545_v15 = vrot.slane %v544_v25, 4  ;;  %1744 = vmatmul.mubr.bf16.gmra.mxu1 %v7202_v26  ;;  %v566_v17 = vshrl.u32 %v7206_v29, 16  ;;  %v569_v20 = vshll.u32 %v7206_v29, 16  ;;  %v575_v40 = vshll.u32 %v7210_v30, 16  ;;  %v5418_v25 = vld [vmem:[%s9635_s0 + $0x1c8] sm:$0xff] }
  0x33   :  { %v554_v43 = vrot.slane %v552_v34, 4  ;;  %v557_v44 = vrot.slane %v555_v35, 5  ;;  %v563_v45 = vrot.slane %v561_v36, 5  ;;  %v281_v46 = vmax.f32 %v5413_v31, %v5453_v33  ;;  %v7317_v31 = vld [vmem:[%s9635_s0 + $0x320] sm:$0xff] }
  0x34   :  { %6032 = vmatpush3.bf16.msra.mxu0 %v6612_v9  ;;  %v7254_v51 = vsel %vm7035_vm5, %v545_v15, %v549_v7  ;;  %v568_v28 = vrot.slane %v566_v17, 4  ;;  %v571_v52 = vrot.slane %v569_v20, 5  ;;  %v577_v53 = vrot.slane %v575_v40, 5  ;;  %v5378_v9 = vld [vmem:[%s9635_s0 + $0x128] sm:$0xff]  ;;  %v6617_v40 = vld [vmem:[%s9636_s1 + $0x1f8] sm:$0xff]  }
  0x35   :  { %6033 = vmatprep.subr.bf16.mxu0 %v6613_v24  ;;  %v7267_v58 = vcombine.low %v7125_v12, %v7254_v51  ;;  %v558_v59 = vor.u32 %v557_v44, %v554_v43  ;;  %v282_v60 = vmax.f32 %v5414_v16, %v5454_v19  ;;  %v321_v61 = vmax.f32 %v159_v22, %v281_v46  ;;  %v5377_v12 = vld [vmem:[%s9635_s0 + $0x120] sm:$0xff]  ;;  %v6615_v22 = vld [vmem:[%s9636_s1 + $0x158] sm:$0xff]  }
  0x36   :  { %v572_v63 = vor.u32 %v571_v52, %v568_v28  ;;  %v5517_v0 = vrot.slane %v7183_v8, 9  ;;  %v740_v1 = vrot.slane %v7195_v14, 5  ;;  %v5518_v2 = vrot.slane %v7206_v29, 9  ;;  %v5457_v14 = vld [vmem:[%s9635_s0 + $0x260] sm:$0xff]  ;;  %v5458_v29 = vld [vmem:[%s9635_s0 + $0x268] sm:$0xff]  ;;  %v6616_v16 = vld [vmem:[%s9636_s1 + $0x118] sm:$0xff]   ;;  %6091 = vmatprep.subr.bf16.mxu1 %v6617_v40 }
  0x37   :  { %1646 = vmatprep.mubr.bf16.mxu0 %v7267_v58  ;;  %v559_v5 = vrot.slane %v558_v59, 4  ;;  %v322_v6 = vmax.f32 %v160_v4, %v282_v60  ;;  %v744_v7 = vrot.slane %v7210_v30, 5  ;;  %v161_v8 = vmax.f32 %v80_v41, %v5375_v48  ;;  %v7312_v30 = vld [vmem:[%s9635_s0 + $0x280] sm:$0xff]  ;;  %v7364_v60 = vld [vmem:[%s9635_s0 + $0x328] sm:$0xff]  ;;  %v5424_v40 = vld [vmem:[%s9635_s0 + $0x3d8] sm:$0xff] }
  0x38   :  { %6034 = vmatpush3.bf16.msra.mxu0 %v6614_v42  ;;  %v573_v24 = vrot.slane %v572_v63, 4  ;;  %v7301_v54 = vsel %vm7051_vm6, %v5517_v0, %v740_v1  ;;  %v162_v32 = vmax.f32 %v81_v47, %v5376_v50  ;;  %v283_v4 = vmax.f32 %v5415_v27, %v5455_v56  ;;  %v6619_v27 = vld [vmem:[%s9636_s1 + $0x1f0] sm:$0xff]  }
  0x39   :  { %1647 = vmatmul.mubr.bf16.gmra.mxu0 %v7164_v18  ;;  %6035 = vmatprep.subr.bf16.mxu0 %v6615_v22  ;;  %v7321_v33 = vsel %vm7035_vm5, %v559_v5, %v563_v45  ;;  %v355_v34 = vpack.c.bf16 %v322_v6, %v321_v61  ;;  %v7325_v35 = vsel %vm7051_vm6, %v5518_v2, %v744_v7  ;;  %v6618_v45 = vld [vmem:[%s9636_s1 + $0x1b8] sm:$0xff]   ;;  %v7373_v1 = vld [vmem:[%s9635_s0 + $0x290] sm:$0xff] }
  0x3a   :  { %v284_v36 = vmax.f32 %v5416_v55, %v5456_v57  ;;  %v7332_v19 = vsel %vm7035_vm5, %v573_v24, %v577_v53  ;;  %v7336_v15 = vcombine.low %v7301_v54, %v7325_v35  ;;  %v323_v17 = vmax.f32 %v161_v8, %v283_v4  ;;  %6092 = vmatpush3.bf16.msra.mxu1 %v6618_v45  ;;  %v7378_v2 = vld [vmem:[%s9635_s0 + $0x330] sm:$0xff]  ;;  %v7391_v7 = vld [vmem:[%s9635_s0 + $0x298] sm:$0xff]  ;;  %v5461_v4 = vld [vmem:[%s9635_s0 + $0x460] sm:$0xff] }
  0x3b   :  { %v163_v20 = vmax.f32 %v82_v62, %v5377_v12  ;;  %v7343_v41 = vcombine.low %v7321_v33, %v7332_v19  ;;  %v384_v42 = vsel %vm369_vm0, %v355_v34, 0  ;;  %v164_v44 = vmax.f32 %v83_v3, %v5378_v9  ;;  %6093 = vmatprep.subr.bf16.mxu1 %v6619_v27  ;;  %v6620_v3 = vld [vmem:[%s9636_s1 + $0x1b0] sm:$0xff]   ;;  %v7396_v8 = vld [vmem:[%s9635_s0 + $0x338] sm:$0xff]  ;;  %v90_v45 = vld [vmem:[%s9635_s0 + $0x2a0] sm:$0xff] }
  0x3c   :  { %9660 = vst [vmem:[#allocation8_spill] sm:$0xff] %v7336_v15  ;;  %v324_v43 = vmax.f32 %v162_v32, %v284_v36  ;;  %6036 = vmatpush3.bf16.msra.mxu0 %v6616_v16  ;;  %v5493_v46 = vcombine.low %v384_v42, %v384_v42  ;;  %v5567_v47 = vcombine.low %v7193_v13, %v384_v42  ;;  %v7359_v13 = vld [vmem:[%s9635_s0 + $0x288] sm:$0xff]  ;;  %v5421_v32 = vld [vmem:[%s9635_s0 + $0x3c0] sm:$0xff] }
  0x3d   :  { %v5494_v48 = vcombine.high %v384_v42, %v384_v42  ;;  %v285_v50 = vmax.f32 %v5417_v10, %v5457_v14  ;;  %1654 = vmatprep.mubr.bf16.mxu0 %v7343_v41  ;;  %v286_v52 = vmax.f32 %v5418_v25, %v5458_v29  ;;  %v167_v53 = vmax.f32 %v7312_v30, %v7317_v31  ;;  %v6621_v25 = vld [vmem:[%s9636_s1 + $0x150] sm:$0xff]   ;;  %v7443_v27 = vld [vmem:[%s9635_s0 + $0x2a8] sm:$0xff]  ;;  %v7546_v31 = vld [vmem:[%s9635_s0 + $0x360] sm:$0xff] }
  0x3e   :  { %v356_v28 = vpack.c.bf16 %v324_v43, %v323_v17  ;;  %1751 = vmatprep.mubr.bf16.mxu1 %v5567_v47  ;;  %v580_v55 = vshrl.u32 %v5493_v46, 16  ;;  %v583_v56 = vshll.u32 %v5493_v46, 16  ;;  %v5519_v63 = vrot.slane %v5493_v46, 9  ;;  %v5422_v17 = vld [vmem:[%s9635_s0 + $0x3c8] sm:$0xff]  ;;  %v5463_v43 = vld [vmem:[%s9635_s0 + $0x470] sm:$0xff]  ;;  %6094 = vmatpush3.bf16.msra.mxu1 %v6620_v3 }
  0x3f   :  { %v589_v57 = vshll.u32 %v5494_v48, 16  ;;  %v325_v59 = vmax.f32 %v163_v20, %v285_v50  ;;  %1752 = vmatmul.mubr.bf16.gmra.mxu1 %v7336_v15  ;;  %v326_v62 = vmax.f32 %v164_v44, %v286_v52  ;;  %v748_v0 = vrot.slane %v5494_v48, 5  ;;  %v5423_v20 = vld [vmem:[%s9635_s0 + $0x3d0] sm:$0xff]  ;;  %v5464_v44 = vld [vmem:[%s9635_s0 + $0x478] sm:$0xff]  ;;  %v5386_v52 = vld [vmem:[%s9635_s0 + $0x348] sm:$0xff]  ;;  %6037 = vmatprep.subr.bf16.mxu0 %v6621_v25 }
  0x40   :  { %v7368_v61 = vsel %vm369_vm0, %v356_v28, 0  ;;  %v582_v5 = vrot.slane %v580_v55, 4  ;;  %v585_v6 = vrot.slane %v583_v56, 5  ;;  %v5385_v28 = vld [vmem:[%s9635_s0 + $0x340] sm:$0xff]  ;;  %v5466_v3 = vld [vmem:[%s9635_s0 + $0x488] sm:$0xff] }
  0x41   :  { %1655 = vmatmul.mubr.bf16.gmra.mxu0 %v7222_v38  ;;  %v5495_v12 = vcombine.low %v7368_v61, %v7368_v61  ;;  %v5496_v22 = vcombine.high %v7368_v61, %v7368_v61  ;;  %v591_v9 = vrot.slane %v589_v57, 5  ;;  %v7399_v10 = vcombine.low %v384_v42, %v7368_v61  ;;  %v5462_v42 = vld [vmem:[%s9635_s0 + $0x468] sm:$0xff]  ;;  %v5425_v55 = vld [vmem:[%s9635_s0 + $0x3e0] sm:$0xff] }
  0x42   :  { %v357_v14 = vpack.c.bf16 %v326_v62, %v325_v59  ;;  %v586_v29 = vor.u32 %v585_v6, %v582_v5  ;;  %v7438_v47 = vsel %vm7051_vm6, %v5519_v63, %v748_v0  ;;  %v169_v62 = vmax.f32 %v7373_v1, %v7378_v2  ;;  %v5426_v63 = vld [vmem:[%s9635_s0 + $0x3e8] sm:$0xff]  ;;  %v5465_v0 = vld [vmem:[%s9635_s0 + $0x480] sm:$0xff]  ;;  %v7476_v2 = vld [vmem:[%s9635_s0 + $0x2b0] sm:$0xff] }
  0x43   :  { %v594_v34 = vshrl.u32 %v5495_v12, 16  ;;  %v597_v36 = vshll.u32 %v5495_v12, 16  ;;  %v603_v16 = vshll.u32 %v5496_v22, 16  ;;  %v5520_v48 = vrot.slane %v5495_v12, 9  ;;  %v7481_v6 = vld [vmem:[%s9635_s0 + $0x2b8] sm:$0xff]  ;;  %v7541_v30 = vld [vmem:[%s9635_s0 + $0x2c8] sm:$0xff] }
  0x44   :  { %v7434_v46 = vsel %vm369_vm0, %v357_v14, 0  ;;  %v752_v50 = vrot.slane %v5496_v22, 5  ;;  %v587_v56 = vrot.slane %v586_v29, 4  ;;  %v170_v1 = vmax.f32 %v7391_v7, %v7396_v8  ;;  %v7491_v14 = vld [vmem:[%s9635_s0 + $0x358] sm:$0xff]  ;;  %v6622_v7 = vld [vmem:[%s9636_s1 + $0x110] sm:$0xff]  }
  0x45   :  { %v596_v57 = vrot.slane %v594_v34, 4  ;;  %v599_v59 = vrot.slane %v597_v36, 5  ;;  %v605_v12 = vrot.slane %v603_v16, 5  ;;  %v5568_v22 = vcombine.low %v7368_v61, %v7434_v46  ;;  %v7486_v61 = vld [vmem:[%s9635_s0 + $0x350] sm:$0xff]  ;;  %v6623_v36 = vld [vmem:[%s9636_s1 + $0x1e8] sm:$0xff]   ;;  %6038 = vmatpush3.bf16.msra.mxu0 %v6622_v7 }
  0x46   :  { %v7469_v5 = vsel %vm7051_vm6, %v5520_v48, %v752_v50  ;;  %v7498_v8 = vsel %vm7035_vm5, %v587_v56, %v591_v9  ;;  %v289_v34 = vmax.f32 %v5421_v32, %v5461_v4  ;;  %v290_v16 = vmax.f32 %v5422_v17, %v5462_v42  ;;  %v5427_v9 = vld [vmem:[%s9635_s0 + $0x3f0] sm:$0xff]  ;;  %v5428_v56 = vld [vmem:[%s9635_s0 + $0x3f8] sm:$0xff]  ;;  %v7522_v17 = vld [vmem:[%s9635_s0 + $0x2c0] sm:$0xff]  ;;  %6095 = vmatprep.subr.bf16.mxu1 %v6623_v36 }
  0x47   :  { %v600_v25 = vor.u32 %v599_v59, %v596_v57  ;;  %v7502_v29 = vcombine.low %v7438_v47, %v7469_v5  ;;  %1759 = vmatprep.mubr.bf16.mxu1 %v5568_v22  ;;  %v291_v48 = vmax.f32 %v5423_v20, %v5463_v43  ;;  %v292_v50 = vmax.f32 %v5424_v40, %v5464_v44  ;;  %v5467_v32 = vld [vmem:[%s9635_s0 + $0x490] sm:$0xff]  ;;  %v5468_v4 = vld [vmem:[%s9635_s0 + $0x498] sm:$0xff]  ;;  %v6624_v20 = vld [vmem:[%s9636_s1 + $0x1a8] sm:$0xff]  }
  0x48   :  { %v171_v24 = vmax.f32 %v90_v45, %v5385_v28  ;;  %v329_v42 = vmax.f32 %v167_v53, %v289_v34  ;;  %v172_v43 = vmax.f32 %v7443_v27, %v5386_v52  ;;  %v293_v44 = vmax.f32 %v5425_v55, %v5465_v0  ;;  %v6625_v45 = vld [vmem:[%s9636_s1 + $0x1e0] sm:$0xff]   ;;  %v7551_v53 = vld [vmem:[%s9635_s0 + $0x368] sm:$0xff]  ;;  %6096 = vmatpush3.bf16.msra.mxu1 %v6624_v20 }
  0x49   :  { %9661 = vst [vmem:[#allocation9_spill] sm:$0xff] %v7502_v29  ;;  %v601_v40 = vrot.slane %v600_v25, 4  ;;  %1760 = vmatmul.mubr.bf16.gmra.mxu1 %v7502_v29  ;;  %v9662_v28 = vmax.f32 %v7359_v13, %v7364_v60  ;;  %v331_v59 = vmax.f32 %v169_v62, %v291_v48  ;;  %v332_v22 = vmax.f32 %v170_v1, %v292_v50  ;;  %v7564_v55 = vld [vmem:[%s9635_s0 + $0x400] sm:$0xff] }
  0x4a   :  { %v294_v25 = vmax.f32 %v5426_v63, %v5466_v3  ;;  %v333_v60 = vmax.f32 %v171_v24, %v293_v44  ;;  %v173_v27 = vmax.f32 %v7476_v2, %v7486_v61  ;;  %v174_v52 = vmax.f32 %v7481_v6, %v7491_v14  ;;  %v7569_v62 = vld [vmem:[%s9635_s0 + $0x4a0] sm:$0xff]  ;;  %6097 = vmatprep.subr.bf16.mxu1 %v6625_v45 }
  0x4b   :  { %v330_v57 = vmax.f32 %v9662_v28, %v290_v16  ;;  %v7555_v13 = vsel %vm7035_vm5, %v601_v40, %v605_v12  ;;  %v360_v0 = vpack.c.bf16 %v332_v22, %v331_v59  ;;  %v295_v12 = vmax.f32 %v5427_v9, %v5467_v32  ;;  %v6626_v61 = vld [vmem:[%s9636_s1 + $0x1a0] sm:$0xff]   ;;  %v6627_v16 = vld [vmem:[%s9636_s1 + $0x148] sm:$0xff]   ;;  %v6629_v32 = vld [vmem:[%s9636_s1 + $0x1d8] sm:$0xff]  }
  0x4c   :  { %v7573_v24 = vcombine.low %v7498_v8, %v7555_v13  ;;  %v334_v3 = vmax.f32 %v172_v43, %v294_v25  ;;  %v296_v1 = vmax.f32 %v5428_v56, %v5468_v4  ;;  %v297_v36 = vmax.f32 %v7564_v55, %v7569_v62  ;;  %6098 = vmatpush3.bf16.msra.mxu1 %v6626_v61  ;;  %v6628_v28 = vld [vmem:[%s9636_s1 + $0x108] sm:$0xff]  }
  0x4d   :  { %v359_v63 = vpack.c.bf16 %v330_v57, %v329_v42  ;;  %v7587_v7 = vsel %vm369_vm0, %v360_v0, 0  ;;  %v335_v20 = vmax.f32 %v173_v27, %v295_v12  ;;  %6039 = vmatprep.subr.bf16.mxu0 %v6627_v16  ;;  %6099 = vmatprep.subr.bf16.mxu1 %v6629_v32  ;;  %v5430_v32 = vld [vmem:[%s9635_s0 + $0x408] sm:$0xff]  ;;  %v9663_v29 = vmax.f32 %v7522_v17, %v7546_v31 }
  0x4e   :  { %1662 = vmatprep.mubr.bf16.mxu0 %v7573_v24  ;;  %v361_v34 = vpack.c.bf16 %v334_v3, %v333_v60  ;;  %v5499_v9 = vcombine.low %v7587_v7, %v7587_v7  ;;  %v5500_v56 = vcombine.high %v7587_v7, %v7587_v7  ;;  %v336_v40 = vmax.f32 %v174_v52, %v296_v1  ;;  %v7712_v55 = vld [vmem:[%s9635_s0 + $0x2e8] sm:$0xff] }
  0x4f   :  { %v7584_v14 = vsel %vm369_vm0, %v359_v63, 0  ;;  %1663 = vmatmul.mubr.bf16.gmra.mxu0 %v7399_v10  ;;  %v9665_v31 = vmax.f32 %v7541_v30, %v7551_v53 }
  0x50   :  { %v5497_v48 = vcombine.low %v7584_v14, %v7584_v14  ;;  %v5498_v50 = vcombine.high %v7584_v14, %v7584_v14  ;;  %v7606_v4 = vsel %vm369_vm0, %v361_v34, 0  ;;  %v622_v45 = vshrl.u32 %v5499_v9, 16  ;;  %6040 = vmatpush3.bf16.msra.mxu0 %v6628_v28 }
  0x51   :  { %v625_v57 = vshll.u32 %v5499_v9, 16  ;;  %v631_v59 = vshll.u32 %v5500_v56, 16  ;;  %v7613_v22 = vcombine.low %v7606_v4, %v7606_v4  ;;  %v5569_v25 = vcombine.low %v7587_v7, %v7606_v4 }
  0x52   :  { %v608_v42 = vshrl.u32 %v5497_v48, 16  ;;  %v611_v43 = vshll.u32 %v5497_v48, 16  ;;  %v617_v44 = vshll.u32 %v5498_v50, 16  ;;  %v624_v63 = vrot.slane %v622_v45, 4 }
  0x53   :  { %v627_v0 = vrot.slane %v625_v57, 5  ;;  %v633_v3 = vrot.slane %v631_v59, 5  ;;  %1767 = vmatprep.mubr.bf16.mxu1 %v5569_v25  ;;  %v5521_v12 = vrot.slane %v5497_v48, 9  ;;  %v756_v1 = vrot.slane %v5498_v50, 5 }
  0x54   :  { %v610_v60 = vrot.slane %v608_v42, 4  ;;  %v613_v27 = vrot.slane %v611_v43, 5  ;;  %v619_v52 = vrot.slane %v617_v44, 5  ;;  %v5522_v34 = vrot.slane %v5499_v9, 9  ;;  %v6630_v42 = vld [vmem:[%s9636_s1 + $0x198] sm:$0xff]   ;;  %v6631_v9 = vld [vmem:[%s9636_s1 + $0x1d0] sm:$0xff]  }
  0x55   :  { %v760_v16 = vrot.slane %v5500_v56, 5  ;;  %v362_v6 = vpack.c.bf16 %v336_v40, %v335_v20  ;;  %v628_v43 = vor.u32 %v627_v0, %v624_v63  ;;  %v757_v44 = vsel %vm7051_vm6, %v5521_v12, %v756_v1  ;;  %6100 = vmatpush3.bf16.msra.mxu1 %v6630_v42  ;;  %v5470_v0 = vld [vmem:[%s9635_s0 + $0x4a8] sm:$0xff]  ;;  %v5391_v42 = vld [vmem:[%s9635_s0 + $0x370] sm:$0xff] }
  0x56   :  { %v614_v61 = vor.u32 %v613_v27, %v610_v60  ;;  %v7627_v48 = vcombine.high %v7606_v4, %v7606_v4  ;;  %v636_v50 = vshrl.u32 %v7613_v22, 16  ;;  %v639_v45 = vshll.u32 %v7613_v22, 16  ;;  %6101 = vmatprep.subr.bf16.mxu1 %v6631_v9 }
  0x57   :  { %v7635_v20 = vsel %vm7051_vm6, %v5522_v34, %v760_v16  ;;  %v7638_v40 = vsel %vm369_vm0, %v362_v6, 0  ;;  %v629_v28 = vrot.slane %v628_v43, 4  ;;  %v96_v34 = vld [vmem:[%s9635_s0 + $0x2d0] sm:$0xff]  ;;  %v7665_v16 = vld [vmem:[%s9635_s0 + $0x2d8] sm:$0xff] }
  0x58   :  { %v615_v56 = vrot.slane %v614_v61, 4  ;;  %v5561_v57 = vcombine.low %v757_v44, %v7635_v20  ;;  %v5503_v59 = vcombine.low %v7638_v40, %v7638_v40  ;;  %v5504_v25 = vcombine.high %v7638_v40, %v7638_v40 }
  0x59   :  { %v638_v27 = vrot.slane %v636_v50, 4  ;;  %v641_v63 = vrot.slane %v639_v45, 5  ;;  %v645_v6 = vshll.u32 %v7627_v48, 16  ;;  %v7657_v12 = vsel %vm7035_vm5, %v629_v28, %v633_v3  ;;  %v7673_v3 = vld [vmem:[%s9635_s0 + $0x378] sm:$0xff]  ;;  %v5471_v45 = vld [vmem:[%s9635_s0 + $0x4b0] sm:$0xff] }
  0x5a   :  { %v620_v60 = vsel %vm7035_vm5, %v615_v56, %v619_v52  ;;  %1768 = vmatmul.mubr.bf16.gmra.mxu1 %v5561_v57  ;;  %v650_v1 = vshrl.u32 %v5503_v59, 16  ;;  %v653_v52 = vshll.u32 %v5503_v59, 16  ;;  %v659_v61 = vshll.u32 %v5504_v25, 16  ;;  %v5431_v56 = vld [vmem:[%s9635_s0 + $0x410] sm:$0xff] }
  0x5b   :  { %v5553_v43 = vcombine.low %v620_v60, %v7657_v12  ;;  %v642_v44 = vor.u32 %v641_v63, %v638_v27  ;;  %v647_v50 = vrot.slane %v645_v6, 5  ;;  %v7678_v9 = vcombine.low %v7606_v4, %v7638_v40  ;;  %v6632_v28 = vld [vmem:[%s9636_s1 + $0x190] sm:$0xff]   ;;  %v5432_v4 = vld [vmem:[%s9635_s0 + $0x418] sm:$0xff]  ;;  %v6633_v6 = vld [vmem:[%s9636_s1 + $0x140] sm:$0xff]  }
  0x5c   :  { %v652_v57 = vrot.slane %v650_v1, 4  ;;  %v655_v60 = vrot.slane %v653_v52, 5  ;;  %v661_v27 = vrot.slane %v659_v61, 5  ;;  %v298_v63 = vmax.f32 %v5430_v32, %v5470_v0  ;;  %v5472_v0 = vld [vmem:[%s9635_s0 + $0x4b8] sm:$0xff]  ;;  %v98_v61 = vld [vmem:[%s9635_s0 + $0x2e0] sm:$0xff]  ;;  %6102 = vmatpush3.bf16.msra.mxu1 %v6632_v28  ;;  %6041 = vmatprep.subr.bf16.mxu0 %v6633_v6  ;;  %v7763_v6 = vld [vmem:[%s9635_s0 + $0x2f0] sm:$0xff] }
  0x5d   :  { %1670 = vmatprep.mubr.bf16.mxu0 %v5553_v43  ;;  %v643_v2 = vrot.slane %v642_v44, 4  ;;  %v337_v1 = vmax.f32 %v9663_v29, %v297_v36  ;;  %v5523_v52 = vrot.slane %v7613_v22, 9  ;;  %v764_v32 = vrot.slane %v7627_v48, 5  ;;  %v5393_v48 = vld [vmem:[%s9635_s0 + $0x380] sm:$0xff]  ;;  %v5394_v43 = vld [vmem:[%s9635_s0 + $0x388] sm:$0xff] }
  0x5e   :  { %v9664_v29 = vcombine.low %v7584_v14, %v7587_v7  ;;  %v656_v17 = vor.u32 %v655_v60, %v652_v57  ;;  %v338_v62 = vmax.f32 %v9665_v31, %v298_v63  ;;  %v5524_v36 = vrot.slane %v5503_v59, 9  ;;  %v5433_v14 = vld [vmem:[%s9635_s0 + $0x420] sm:$0xff] }
  0x5f   :  { %v768_v22 = vrot.slane %v5504_v25, 5  ;;  %v7731_v7 = vsel %vm7035_vm5, %v643_v2, %v647_v50  ;;  %v7735_v30 = vsel %vm7051_vm6, %v5523_v52, %v764_v32  ;;  %v177_v53 = vmax.f32 %v96_v34, %v5391_v42  ;;  %v5434_v25 = vld [vmem:[%s9635_s0 + $0x428] sm:$0xff]  ;;  %v5473_v44 = vld [vmem:[%s9635_s0 + $0x4c0] sm:$0xff] }
  0x60   :  { %1671 = vmatmul.mubr.bf16.gmra.mxu0 %v9664_v29  ;;  %v178_v59 = vmax.f32 %v7665_v16, %v7673_v3  ;;  %v5474_v2 = vld [vmem:[%s9635_s0 + $0x4c8] sm:$0xff]  ;;  %v657_v50 = vrot.slane %v656_v17, 4  ;;  %v363_v28 = vpack.c.bf16 %v338_v62, %v337_v1  ;;  %v299_v42 = vmax.f32 %v5431_v56, %v5471_v45  ;;  %v6634_v16 = vld [vmem:[%s9636_s1 + $0x100] sm:$0xff]   ;;  %v5395_v56 = vld [vmem:[%s9635_s0 + $0x390] sm:$0xff] }
  0x61   :  { %v7750_v34 = vsel %vm7051_vm6, %v5524_v36, %v768_v22  ;;  %v300_v57 = vmax.f32 %v5432_v4, %v5472_v0  ;;  %v179_v60 = vmax.f32 %v98_v61, %v5393_v48  ;;  %v180_v63 = vmax.f32 %v7712_v55, %v5394_v43  ;;  %v6635_v45 = vld [vmem:[%s9636_s1 + $0x1c8] sm:$0xff]   ;;  %v5435_v0 = vld [vmem:[%s9635_s0 + $0x430] sm:$0xff]  ;;  %6042 = vmatpush3.bf16.msra.mxu0 %v6634_v16  ;;  %v101_v62 = vld [vmem:[%s9635_s0 + $0x2f8] sm:$0xff] }
  0x62   :  { %v7757_v3 = vcombine.low %v7735_v30, %v7750_v34  ;;  %v7773_v1 = vsel %vm7035_vm5, %v657_v50, %v661_v27  ;;  %v7776_v4 = vsel %vm369_vm0, %v363_v28, 0  ;;  %v339_v52 = vmax.f32 %v177_v53, %v299_v42  ;;  %v5475_v61 = vld [vmem:[%s9635_s0 + $0x4d0] sm:$0xff]  ;;  %v6636_v55 = vld [vmem:[%s9636_s1 + $0x188] sm:$0xff]   ;;  %v5396_v36 = vld [vmem:[%s9635_s0 + $0x398] sm:$0xff]  ;;  %6103 = vmatprep.subr.bf16.mxu1 %v6635_v45 }
  0x63   :  { %9667 = vst [vmem:[#allocation11_spill] sm:$0xff] %v7773_v1  ;;  %v301_v32 = vmax.f32 %v5433_v14, %v5473_v44  ;;  %v7789_v27 = vcombine.low %v7731_v7, %v7773_v1  ;;  %v5505_v29 = vcombine.low %v7776_v4, %v7776_v4  ;;  %v5570_v17 = vcombine.low %v7638_v40, %v7776_v4  ;;  %v6637_v22 = vld [vmem:[%s9636_s1 + $0x1c0] sm:$0xff]   ;;  %v5436_v40 = vld [vmem:[%s9635_s0 + $0x438] sm:$0xff] }
  0x64   :  { %9666 = vst [vmem:[#allocation10_spill] sm:$0xff] %v7757_v3  ;;  %v340_v31 = vmax.f32 %v178_v59, %v300_v57  ;;  %v5506_v48 = vcombine.high %v7776_v4, %v7776_v4  ;;  %v302_v43 = vmax.f32 %v5434_v25, %v5474_v2  ;;  %v5476_v53 = vld [vmem:[%s9635_s0 + $0x4d8] sm:$0xff]  ;;  %6104 = vmatpush3.bf16.msra.mxu1 %v6636_v55  ;;  %v6638_v59 = vld [vmem:[%s9636_s1 + $0x180] sm:$0xff]  }
  0x65   :  { %v341_v14 = vmax.f32 %v179_v60, %v301_v32  ;;  %1678 = vmatprep.mubr.bf16.mxu0 %v7789_v27  ;;  %1775 = vmatprep.mubr.bf16.mxu1 %v5570_v17  ;;  %v664_v50 = vshrl.u32 %v5505_v29, 16  ;;  %v667_v25 = vshll.u32 %v5505_v29, 16  ;;  %v5525_v2 = vrot.slane %v5505_v29, 9  ;;  %v7819_v28 = vld [vmem:[%s9636_s1 + $0x238] sm:$0xff]  }
  0x66   :  { %v364_v44 = vpack.c.bf16 %v340_v31, %v339_v52  ;;  %1776 = vmatmul.mubr.bf16.gmra.mxu1 %v7757_v3  ;;  %v673_v42 = vshll.u32 %v5506_v48, 16  ;;  %v342_v16 = vmax.f32 %v180_v63, %v302_v43  ;;  %v772_v57 = vrot.slane %v5506_v48, 5  ;;  %6105 = vmatprep.subr.bf16.mxu1 %v6637_v22 }
  0x67   :  { %v181_v60 = vmax.f32 %v7763_v6, %v5395_v56  ;;  %v666_v52 = vrot.slane %v664_v50, 4  ;;  %v669_v32 = vrot.slane %v667_v25, 5  ;;  %v303_v55 = vmax.f32 %v5435_v0, %v5475_v61  ;;  %6459 = vmatprep.subr.bf16.mxu0 %v7819_v28  ;;  %v102_v0 = vld [vmem:[%s9635_s0 + $0x300] sm:$0xff] }
  0x68   :  { %1679 = vmatmul.mubr.bf16.gmra.mxu0 %v7678_v9  ;;  %v402_v45 = vsel %vm369_vm0, %v364_v44, 0  ;;  %v675_v31 = vrot.slane %v673_v42, 5  ;;  %v182_v15 = vmax.f32 %v101_v62, %v5396_v36  ;;  %6106 = vmatpush3.bf16.msra.mxu1 %v6638_v59  ;;  %v365_v3 = vpack.c.bf16 %v342_v16, %v341_v14  ;;  %v103_v14 = vld [vmem:[%s9635_s0 + $0x308] sm:$0xff]  ;;  %v5477_v42 = vld [vmem:[%s9635_s0 + $0x4e0] sm:$0xff] }
  0x69   :  { %v5507_v29 = vcombine.low %v402_v45, %v402_v45  ;;  %v5508_v17 = vcombine.high %v402_v45, %v402_v45  ;;  %v670_v26 = vor.u32 %v669_v32, %v666_v52  ;;  %v7828_v63 = vsel %vm7051_vm6, %v5525_v2, %v772_v57  ;;  %v5438_v2 = vld [vmem:[%s9635_s0 + $0x448] sm:$0xff] }
  0x6a   :  { %v304_v6 = vmax.f32 %v5436_v40, %v5476_v53  ;;  %v404_v22 = vsel %vm369_vm0, %v365_v3, 0  ;;  %v343_v36 = vmax.f32 %v181_v60, %v303_v55  ;;  %v5397_v40 = vld [vmem:[%s9635_s0 + $0x3a0] sm:$0xff]  ;;  %v5398_v53 = vld [vmem:[%s9635_s0 + $0x3a8] sm:$0xff] }
  0x6b   :  { %v678_v56 = vshrl.u32 %v5507_v29, 16  ;;  %v681_v48 = vshll.u32 %v5507_v29, 16  ;;  %v687_v43 = vshll.u32 %v5508_v17, 16  ;;  %v5526_v44 = vrot.slane %v5507_v29, 9  ;;  %v5437_v3 = vld [vmem:[%s9635_s0 + $0x440] sm:$0xff] }
  0x6c   :  { %v671_v61 = vrot.slane %v670_v26, 4  ;;  %v776_v62 = vrot.slane %v5508_v17, 5  ;;  %v5509_v26 = vcombine.low %v404_v22, %v404_v22  ;;  %v5571_v57 = vcombine.low %v402_v45, %v404_v22 }
  0x6d   :  { %v680_v59 = vrot.slane %v678_v56, 4  ;;  %v683_v50 = vrot.slane %v681_v48, 5  ;;  %v689_v25 = vrot.slane %v687_v43, 5  ;;  %v344_v52 = vmax.f32 %v182_v15, %v304_v6  ;;  %v5478_v56 = vld [vmem:[%s9635_s0 + $0x4e8] sm:$0xff] }
  0x6e   :  { %v7854_v16 = vsel %vm7035_vm5, %v671_v61, %v675_v31  ;;  %v7858_v60 = vsel %vm7051_vm6, %v5526_v44, %v776_v62  ;;  %v5510_v29 = vcombine.high %v404_v22, %v404_v22  ;;  %v692_v17 = vshrl.u32 %v5509_v26, 16  ;;  %1783 = vmatprep.mubr.bf16.mxu1 %v5571_v57 }
  0x6f   :  { %9668 = vst [vmem:[#allocation12_spill] sm:$0xff] %v7858_v60  ;;  %v684_v32 = vor.u32 %v683_v50, %v680_v59  ;;  %v7862_v55 = vcombine.low %v7828_v63, %v7858_v60  ;;  %v366_v31 = vpack.c.bf16 %v344_v52, %v343_v36  ;;  %v695_v48 = vshll.u32 %v5509_v26, 16 }
  0x70   :  { %v183_v43 = vmax.f32 %v102_v0, %v5397_v40  ;;  %v184_v61 = vmax.f32 %v103_v14, %v5398_v53  ;;  %v694_v15 = vrot.slane %v692_v17, 4  ;;  %v701_v6 = vshll.u32 %v5510_v29, 16 }
  0x71   :  { %9669 = vst [vmem:[#allocation13_spill] sm:$0xff] %v7862_v55  ;;  %v685_v1 = vrot.slane %v684_v32, 4  ;;  %1784 = vmatmul.mubr.bf16.gmra.mxu1 %v7862_v55  ;;  %v305_v44 = vmax.f32 %v5437_v3, %v5477_v42  ;;  %v7869_v62 = vcombine.low %v7776_v4, %v402_v45  ;;  %v406_v59 = vsel %vm369_vm0, %v366_v31, 0 }
  0x72   :  { %v697_v50 = vrot.slane %v695_v48, 5  ;;  %v306_v60 = vmax.f32 %v5438_v2, %v5478_v56  ;;  %v5511_v36 = vcombine.low %v406_v59, %v406_v59  ;;  %v5512_v0 = vcombine.high %v406_v59, %v406_v59  ;;  %v84_v48 = vld [vmem:[%s9635_s0 + $0x90] sm:$0xff] }
  0x73   :  { %v7874_v57 = vsel %vm7035_vm5, %v685_v1, %v689_v25  ;;  %v5527_v14 = vrot.slane %v5509_v26, 9  ;;  %v703_v3 = vrot.slane %v701_v6, 5  ;;  %v345_v42 = vmax.f32 %v183_v43, %v305_v44  ;;  %v85_v43 = vld [vmem:[%s9635_s0 + $0x98] sm:$0xff] }
  0x74   :  { %v7878_v40 = vcombine.low %v7854_v16, %v7874_v57  ;;  %v698_v53 = vor.u32 %v697_v50, %v694_v15  ;;  %v706_v4 = vshrl.u32 %v5511_v36, 16  ;;  %v709_v45 = vshll.u32 %v5511_v36, 16  ;;  %v5419_v50 = vld [vmem:[%s9635_s0 + $0x1d0] sm:$0xff] }
  0x75   :  { %v715_v52 = vshll.u32 %v5512_v0, 16  ;;  %v346_v32 = vmax.f32 %v184_v61, %v306_v60  ;;  %v780_v17 = vrot.slane %v5510_v29, 5  ;;  %v5528_v1 = vrot.slane %v5511_v36, 9  ;;  %v5379_v60 = vld [vmem:[%s9635_s0 + $0x130] sm:$0xff]  ;;  %v5380_v29 = vld [vmem:[%s9635_s0 + $0x138] sm:$0xff] }
  0x76   :  { %1686 = vmatprep.mubr.bf16.mxu0 %v7878_v40  ;;  %v699_v2 = vrot.slane %v698_v53, 4  ;;  %v784_v25 = vrot.slane %v5512_v0, 5  ;;  %v708_v26 = vrot.slane %v706_v4, 4  ;;  %v711_v56 = vrot.slane %v709_v45, 5  ;;  %v5459_v36 = vld [vmem:[%s9635_s0 + $0x270] sm:$0xff]  ;;  %v5460_v4 = vld [vmem:[%s9635_s0 + $0x278] sm:$0xff] }
  0x77   :  { %1687 = vmatmul.mubr.bf16.gmra.mxu0 %v7869_v62  ;;  %v367_v31 = vpack.c.bf16 %v346_v32, %v345_v42  ;;  %v5529_v61 = vcombine.low %v7434_v46, %v7434_v46  ;;  %v7896_v15 = vcombine.low %v404_v22, %v406_v59  ;;  %v7900_v6 = vsel %vm7051_vm6, %v5527_v14, %v780_v17  ;;  %v5420_v42 = vld [vmem:[%s9635_s0 + $0x1d8] sm:$0xff] }
  0x78   :  { %v7904_v44 = vsel %vm7051_vm6, %v5528_v1, %v784_v25  ;;  %v712_v0 = vor.u32 %v711_v56, %v708_v26  ;;  %v717_v53 = vrot.slane %v715_v52, 5  ;;  %v7927_v45 = vsel %vm7035_vm5, %v699_v2, %v703_v3 }
  0x79   :  { %v7913_v22 = vsel %vm369_vm0, %v367_v31, 0  ;;  %v7917_v14 = vcombine.low %v7900_v6, %v7904_v44  ;;  %v5581_v32 = vcombine.low %v7094_v23, %v7168_v21  ;;  %v7936_v25 = vcombine.low %v7332_v19, %v7498_v8 }
  0x7a   :  { %v5572_v52 = vcombine.low %v406_v59, %v7913_v22  ;;  %v713_v1 = vrot.slane %v712_v0, 4  ;;  %v5530_v26 = vcombine.high %v7434_v46, %v7434_v46  ;;  %v5533_v56 = vrot.slane %v5529_v61, 9 }
  0x7b   :  { %9670 = vst [vmem:[#allocation14_spill] sm:$0xff] %v7917_v14  ;;  %v797_v3 = vshrl.u32 %v5529_v61, 16  ;;  %v800_v2 = vshll.u32 %v5529_v61, 16  ;;  %v165_v31 = vmax.f32 %v84_v48, %v5379_v60  ;;  %v166_v59 = vmax.f32 %v85_v43, %v5380_v29 }
  0x7c   :  { %1791 = vmatprep.mubr.bf16.mxu1 %v5572_v52  ;;  %v7942_v23 = vsel %vm7035_vm5, %v713_v1, %v717_v53  ;;  %v826_v21 = vrot.slane %v5530_v26, 5  ;;  %v806_v0 = vshll.u32 %v5530_v26, 16  ;;  %v287_v17 = vmax.f32 %v5419_v50, %v5459_v36 }
  0x7d   :  { %9671 = vst [vmem:[#allocation15_spill] sm:$0xff] %v7942_v23  ;;  %1792 = vmatmul.mubr.bf16.gmra.mxu1 %v7917_v14  ;;  %v7947_v19 = vcombine.low %v7927_v45, %v7942_v23  ;;  %v799_v8 = vrot.slane %v797_v3, 4  ;;  %v802_v52 = vrot.slane %v800_v2, 5  ;;  %v288_v61 = vmax.f32 %v5420_v42, %v5460_v4  ;;  %v104_v42 = vld [vmem:[%s9635_s0 + $0x310] sm:$0xff]  ;;  %v105_v4 = vld [vmem:[%s9635_s0 + $0x318] sm:$0xff] }
  0x7e   :  { %1929 = vmatprep.mubr.bf16.mxu1 %v7267_v58  ;;  %v7952_v48 = vcombine.low %v7913_v22, %v7913_v22  ;;  %v7956_v43 = vsel %vm7051_vm6, %v5533_v56, %v826_v21  ;;  %v808_v60 = vrot.slane %v806_v0, 5  ;;  %v327_v29 = vmax.f32 %v165_v31, %v287_v17  ;;  %v5399_v17 = vld [vmem:[%s9635_s0 + $0x3b0] sm:$0xff]  ;;  %v5440_v56 = vld [vmem:[%s9635_s0 + $0x458] sm:$0xff] }
  0x7f   :  { %1694 = vmatprep.mubr.bf16.mxu0 %v7947_v19  ;;  %v803_v36 = vor.u32 %v802_v52, %v799_v8  ;;  %v328_v58 = vmax.f32 %v166_v59, %v288_v61  ;;  %v7963_v53 = vcombine.low %v7657_v12, %v7731_v7  ;;  %v5400_v12 = vld [vmem:[%s9635_s0 + $0x3b8] sm:$0xff]  ;;  %v5439_v7 = vld [vmem:[%s9635_s0 + $0x450] sm:$0xff]  ;;  %v5582_v52 = vcombine.low %v7190_v11, %v7301_v54  ;;  %v6641_v54 = vld [vmem:[%s9636_s1 + $0x228] sm:$0xff]  }
  0x80   :  { %1695 = vmatmul.mubr.bf16.gmra.mxu0 %v7896_v15  ;;  %v5479_v31 = vld [vmem:[%s9635_s0 + $0x4f0] sm:$0xff]  ;;  %v5480_v59 = vld [vmem:[%s9635_s0 + $0x4f8] sm:$0xff]  ;;  %v814_v61 = vshll.u32 %v7952_v48, 16 }
  0x81   :  { %1832 = vmatprep.mubr.bf16.mxu0 %v5581_v32  ;;  %v804_v1 = vrot.slane %v803_v36, 4  ;;  %v358_v26 = vpack.c.bf16 %v328_v58, %v327_v29  ;;  %v811_v32 = vshrl.u32 %v7952_v48, 16  ;;  %v186_v29 = vmax.f32 %v105_v4, %v5400_v12 }
  0x82   :  { %v308_v50 = vmax.f32 %v5440_v56, %v5480_v59  ;;  %v816_v14 = vrot.slane %v814_v61, 5  ;;  %v9672_v61 = vcombine.low %v7325_v35, %v7438_v47 }
  0x83   :  { %v809_v3 = vsel %vm7035_vm5, %v804_v1, %v808_v60  ;;  %v7987_v2 = vsel %vm369_vm0, %v358_v26, 0  ;;  %v185_v60 = vmax.f32 %v104_v42, %v5399_v17  ;;  %v8013_v1 = vcombine.high %v7913_v22, %v7913_v22 }
  0x84   :  { %v7998_v21 = vcombine.low %v7555_v13, %v809_v3  ;;  %v5535_v0 = vcombine.low %v7987_v2, %v7987_v2  ;;  %v5536_v8 = vcombine.high %v7987_v2, %v7987_v2  ;;  %v307_v26 = vmax.f32 %v5439_v7, %v5479_v31 }
  0x85   :  { %1930 = vmatmul.mubr.bf16.vlgmr.msra.gmra.mxu1 %v7164_v18  ;;  %v6640_v18 = vld [vmem:[%s9636_s1 + $0x230] sm:$0xff]   ;;  %v813_v4 = vrot.slane %v811_v32, 4  ;;  %v348_v23 = vmax.f32 %v186_v29, %v308_v50  ;;  %v8028_v32 = vcombine.low %v7254_v51, %v7321_v33  ;;  %v830_v29 = vrot.slane %v8013_v1, 5 }
  0x86   :  { %1937 = vmatprep.mubr.bf16.mxu1 %v7343_v41  ;;  %v843_v13 = vshrl.u32 %v5535_v0, 16  ;;  %v846_v36 = vshll.u32 %v5535_v0, 16  ;;  %v852_v58 = vshll.u32 %v5536_v8, 16  ;;  %v5539_v11 = vrot.slane %v5535_v0, 9 }
  0x87   :  { %v872_v17 = vrot.slane %v5536_v8, 5  ;;  %v347_v55 = vmax.f32 %v185_v60, %v307_v26  ;;  %v820_v0 = vshll.u32 %v8013_v1, 16  ;;  %v817_v33 = vor.u32 %v816_v14, %v813_v4  ;;  %v6645_v1 = vld [vmem:[%s9636_s1 + $0x208] sm:$0xff]  }
  0x88   :  { %1833 = vmatmul.mubr.bf16.vlgmr.msra.gmra.mxu0 %v7134_v39  ;;  %v845_v41 = vrot.slane %v843_v13, 4  ;;  %v848_v42 = vrot.slane %v846_v36, 5  ;;  %v854_v12 = vrot.slane %v852_v58, 5  ;;  %v5534_v8 = vrot.slane %v7952_v48, 9  ;;  %v6644_v48 = vld [vmem:[%s9636_s1 + $0x210] sm:$0xff]  }
  0x89   :  { %6460 = vmatpush3.bf16.msra.mxu0 %v7819_v28  ;;  %1840 = vmatprep.mubr.bf16.mxu0 %v5582_v52  ;;  %v8022_v56 = vsel %vm7051_vm6, %v5539_v11, %v872_v17  ;;  %v368_v31 = vpack.c.bf16 %v348_v23, %v347_v55  ;;  %v6642_v28 = vld [vmem:[%s9636_s1 + $0x220] sm:$0xff]   ;;  %v818_v13 = vrot.slane %v817_v33, 4 }
  0x8a   :  { %6461 = vmatprep.subr.bf16.mxu0 %v6640_v18  ;;  %v849_v7 = vor.u32 %v848_v42, %v845_v41  ;;  %v5593_v59 = vcombine.low %v7956_v43, %v8022_v56  ;;  %v5585_v41 = vcombine.low %v7635_v20, %v7735_v30  ;;  %v9675_v30 = vld [vmem:[#allocation12_spill] sm:$0xff] }
  0x8b   :  { %v8037_v55 = vsel %vm369_vm0, %v368_v31, 0 }
  0x8c   :  { %v850_v50 = vrot.slane %v849_v7, 4  ;;  %v8047_v23 = vcombine.high %v8037_v55, %v8037_v55 }
  0x8d   :  { %1938 = vmatmul.mubr.bf16.gmra.mxu1 %v7222_v38  ;;  %6462 = vmatpush3.bf16.msra.mxu0 %v6640_v18  ;;  %v8043_v38 = vcombine.low %v8037_v55, %v8037_v55  ;;  %v822_v18 = vrot.slane %v820_v0, 5 }
  0x8e   :  { %1945 = vmatprep.mubr.bf16.mxu1 %v7573_v24  ;;  %6463 = vmatprep.subr.bf16.mxu0 %v6641_v54  ;;  %v855_v51 = vsel %vm7035_vm5, %v850_v50, %v854_v12  ;;  %v6643_v24 = vld [vmem:[%s9636_s1 + $0x218] sm:$0xff]   ;;  %v866_v26 = vshll.u32 %v8047_v23, 16 }
  0x8f   :  { %v857_v52 = vshrl.u32 %v8043_v38, 16  ;;  %v860_v14 = vshll.u32 %v8043_v38, 16  ;;  %v5591_v60 = vcombine.low %v809_v3, %v855_v51  ;;  %v5589_v3 = vcombine.low %v7434_v46, %v7987_v2 }
  0x90   :  { %1841 = vmatmul.mubr.bf16.gmra.mxu0 %v8028_v32  ;;  %v868_v47 = vrot.slane %v866_v26, 5  ;;  %v5586_v46 = vcombine.low %v7750_v34, %v7828_v63 }
  0x91   :  { %1848 = vmatprep.mubr.bf16.mxu0 %v9672_v61  ;;  %6464 = vmatpush3.bf16.msra.mxu0 %v6641_v54  ;;  %v859_v36 = vrot.slane %v857_v52, 4  ;;  %v862_v58 = vrot.slane %v860_v14, 5  ;;  %v6646_v54 = vld [vmem:[%s9636_s1 + $0x200] sm:$0xff]  }
  0x92   :  { %6465 = vmatprep.subr.bf16.mxu0 %v6642_v28 }
  0x93   :  { %v863_v11 = vor.u32 %v862_v58, %v859_v36 }
  0x95   :  { %1946 = vmatmul.mubr.bf16.gmra.mxu1 %v7399_v10  ;;  %6466 = vmatpush3.bf16.msra.mxu0 %v6642_v28  ;;  %v864_v35 = vrot.slane %v863_v11, 4  ;;  %v9673_v10 = vcombine.low %v7469_v5, %v7956_v43  ;;  %v9674_v5 = vld [vmem:[#allocation11_spill] sm:$0xff] }
  0x96   :  { %1953 = vmatprep.mubr.bf16.mxu1 %v5591_v60  ;;  %6467 = vmatprep.subr.bf16.mxu0 %v6643_v24  ;;  %v8088_v20 = vcombine.low %v9674_v5, %v7854_v16  ;;  %v831_v16 = vsel %vm7051_vm6, %v5534_v8, %v830_v29 }
  0x97   :  { %v869_v34 = vsel %vm7035_vm5, %v864_v35, %v868_v47 }
  0x98   :  { %1849 = vmatmul.mubr.bf16.gmra.mxu0 %v7936_v25 }
  0x99   :  { %1856 = vmatprep.mubr.bf16.mxu0 %v9673_v10  ;;  %6468 = vmatpush3.bf16.msra.mxu0 %v6643_v24 }
  0x9a   :  { %6469 = vmatprep.subr.bf16.mxu0 %v6644_v48 }
  0x9d   :  { %1954 = vmatmul.mubr.bf16.gmra.mxu1 %v5589_v3  ;;  %6470 = vmatpush3.bf16.msra.mxu0 %v6644_v48 }
  0x9e   :  { %1961 = vmatprep.mubr.bf16.mxu1 %v7789_v27  ;;  %6471 = vmatprep.subr.bf16.mxu0 %v6645_v1  ;;  %v5587_v27 = vcombine.low %v9675_v30, %v7900_v6 }
  0xa0   :  { %1857 = vmatmul.mubr.bf16.gmra.mxu0 %v7998_v21 }
  0xa1   :  { %1864 = vmatprep.mubr.bf16.mxu0 %v5585_v41  ;;  %6472 = vmatpush3.bf16.msra.mxu0 %v6645_v1 }
  0xa2   :  { %6473 = vmatprep.subr.bf16.mxu0 %v6646_v54 }
  0xa5   :  { %1962 = vmatmul.mubr.bf16.gmra.mxu1 %v7678_v9  ;;  %6474 = vmatpush3.bf16.msra.mxu0 %v6646_v54  ;;  %v823_v9 = vsel %vm7035_vm5, %v818_v13, %v822_v18 }
  0xa6   :  { %1969 = vmatprep.mubr.bf16.mxu1 %v7878_v40  ;;  %v5592_v63 = vcombine.low %v823_v9, %v869_v34 }
  0xa8   :  { %1865 = vmatmul.mubr.bf16.gmra.mxu0 %v7963_v53 }
  0xa9   :  { %1872 = vmatprep.mubr.bf16.mxu0 %v5586_v46 }
  0xad   :  { %1970 = vmatmul.mubr.bf16.gmra.mxu1 %v7869_v62  ;;  %v8103_v62 = vcombine.low %v7874_v57, %v7927_v45 }
  0xae   :  { %1977 = vmatprep.mubr.bf16.mxu1 %v7947_v19 }
  0xb0   :  { %1873 = vmatmul.mubr.bf16.gmra.mxu0 %v8088_v20 }
  0xb1   :  { %1880 = vmatprep.mubr.bf16.mxu0 %v5587_v27 }
  0xb5   :  { %1978 = vmatmul.mubr.bf16.gmra.mxu1 %v7896_v15 }
  0xb6   :  { %10 = vsyncpa [#allocation4], 0  ;;  %v5588_v40 = vcombine.low %v7904_v44, %v831_v16  ;;  %1985 = vmatprep.mubr.bf16.mxu1 %v5592_v63  ;;  %v5590_v6 = vcombine.low %v7913_v22, %v8037_v55  ;;  %v9676_v19 = vld [vmem:[#allocation15_spill] sm:$0xff]  ;;  %v9678_v15 = vld [vmem:[#allocation8_spill] sm:$0xff]  ;;  %v5540_v45 = vrot.slane %v8043_v38, 9  ;;  %v876_v42 = vrot.slane %v8047_v23, 5 }
  0xb7   :  { %v8111_v2 = vcombine.low %v9676_v19, %v823_v9  ;;  %v9677_v57 = vld [vmem:[#allocation7_spill] sm:$0xff]  ;;  %v9679_v44 = vld [vmem:[#allocation9_spill] sm:$0xff]  ;;  %v9680_v22 = vld [vmem:[#allocation10_spill] sm:$0xff]  ;;  %v1170_v56 = vlaneseq  ;;  %vm2545_vm7 = vcmask 1043456   ;;  %vm2546_vm8 = vsmask.f32 7938 }
  0xb8   :  { %1881 = vmatmul.mubr.bf16.gmra.mxu0 %v8103_v62  ;;  %v9681_v4 = vld [vmem:[#allocation13_spill] sm:$0xff]  ;;  %v9682_v17 = vld [vmem:[#allocation14_spill] sm:$0xff]  ;;  %v877_v43 = vsel %vm7051_vm6, %v5540_v45, %v876_v42  ;;  %v6648_v7 = vld [vmem:[%s9638_s3 + $0x30] sm:$0xff]   ;;  %vm2551_vm9 = vcmask 1040384   ;;  %vm2552_vm10 = vsmask.f32 256 }
  0xb9   :  { %1888 = vmatprep.mubr.bf16.mxu0 %v5588_v40  ;;  %v5594_v12 = vcombine.low %v831_v16, %v877_v43  ;;  %v8134_v31 = vshrl.u32 %v1170_v56, 7  ;;  %v411_v50 = vld [vmem:[%s9639_s4] sm:$0x7]  ;;  %v6651_v35 = vld [vmem:[%s9638_s3 + $0x18] sm:$0xff]   ;;  %v6652_v5 = vld [vmem:[%s9638_s3 + $0x10] sm:$0xff]  }
  0xba   :  { %v6650_v52 = vld [vmem:[%s9638_s3 + $0x20] sm:$0xff]   ;;  %v6653_v42 = vld [vmem:[%s9638_s3 + $0x8] sm:$0xff]   ;;  %vm8520_vm11 = vmand %vm2545_vm7, %vm2546_vm8 }
  0xbb   :  { %9683 = vst [vmem:[#allocation11_spill] sm:$0xff] %v8134_v31  ;;  %v1172_v28 = vsub.s32 0, %v8134_v31  ;;  %vm8526_vm12 = vmand %vm2551_vm9, %vm2552_vm10 }
  0xbd   :  { %1986 = vmatmul.mubr.bf16.gmra.mxu1 %v5590_v6  ;;  %v8143_v33 = vrot.slane %v411_v50, %v1172_v28 }
  0xbe   :  { %6507 = vmatprep.mubr.bf16.mxu1 %v7134_v39  ;;  %v6647_v39 = vld [vmem:[%s9638_s3 + $0x38] sm:$0xff]  }
  0xbf   :  { %6491 = vmatprep.subr.bf16.mxu1 %v6647_v39 }
  0xc0   :  { %1889 = vmatmul.mubr.bf16.gmra.mxu0 %v8111_v2  ;;  %6492 = vmatpush3.bf16.msra.mxu1 %v6647_v39 }
  0xc1   :  { %6475 = vmatprep.mubr.bf16.mxu0 %v9677_v57  ;;  %6493 = vmatprep.subr.bf16.mxu1 %v6648_v7 }
  0xc4   :  { %6494 = vmatpush3.bf16.msra.mxu1 %v6648_v7 }
  0xc8   :  { %6476 = vmatmul.mubr.bf16.vlgmr.msra.gmra.mxu0 %v9678_v15 }
  0xc9   :  { %6479 = vmatprep.mubr.bf16.mxu0 %v9679_v44 }
  0xd0   :  { %6480 = vmatmul.mubr.bf16.gmra.mxu0 %v5593_v59  ;;  %v6649_v59 = vld [vmem:[%s9638_s3 + $0x28] sm:$0xff]  }
  0xd1   :  { %6483 = vmatprep.mubr.bf16.mxu0 %v9680_v22  ;;  %6495 = vmatprep.subr.bf16.mxu1 %v6649_v59 }
  0xd2   :  { %6496 = vmatpush3.bf16.msra.mxu1 %v6649_v59  ;;  %v6654_v59 = vld [vmem:[%s9638_s3] sm:$0xff]  }
  0xd3   :  { %6497 = vmatprep.subr.bf16.mxu1 %v6650_v52 }
  0xd6   :  { %6498 = vmatpush3.bf16.msra.mxu1 %v6650_v52  ;;  %v6656_v52 = vld [vmem:[%s9637_s2 + $0xb8] sm:$0xff]  }
  0xd7   :  { %6499 = vmatprep.subr.bf16.mxu1 %v6651_v35 }
  0xd8   :  { %6484 = vmatmul.mubr.bf16.gmra.mxu0 %v9681_v4 }
  0xd9   :  { %6487 = vmatprep.mubr.bf16.mxu0 %v9682_v17 }
  0xda   :  { %6500 = vmatpush3.bf16.msra.mxu1 %v6651_v35  ;;  %v6659_v35 = vld [vmem:[%s9637_s2 + $0xb0] sm:$0xff]  }
  0xdb   :  { %6501 = vmatprep.subr.bf16.mxu1 %v6652_v5 }
  0xde   :  { %6502 = vmatpush3.bf16.msra.mxu1 %v6652_v5  ;;  %v6661_v5 = vld [vmem:[%s9637_s2 + $0xe8] sm:$0xff]  }
  0xdf   :  { %6503 = vmatprep.subr.bf16.mxu1 %v6653_v42 }
  0xe0   :  { %6488 = vmatmul.mubr.bf16.gmra.mxu0 %v5594_v12 }
  0xe2   :  { %6504 = vmatpush3.bf16.msra.mxu1 %v6653_v42  ;;  %v6666_v42 = vld [vmem:[%s9637_s2 + $0x68] sm:$0xff]  }
  0xe3   :  { %6505 = vmatprep.subr.bf16.mxu1 %v6654_v59 }
  0xe6   :  { %6506 = vmatpush3.bf16.msra.mxu1 %v6654_v59 }
  0xe7   :  { %v5979_v0 = vpop.f32.mrf.mxu1 }
  0xe9   :  { %v5980_v51 = vpop.f32.mrf.mxu1  ;;  %6508 = vmatmul.mubr.bf16.vlgmr.msra.gmra.mxu1 %v8028_v32  ;;  %v6657_v32 = vld [vmem:[%s9637_s2 + $0xf0] sm:$0xff]  }
  0xea   :  { %v5981_v38 = vadd.f32 %v5980_v51, %v5979_v0  ;;  %v6776_v0 = vmov 0   ;;  %6511 = vmatprep.mubr.bf16.mxu1 %v7936_v25 }
  0xeb   :  { %v5915_v55 = vpop.f32.mrf.mxu0  ;;  %v5982_v24 = vpop.f32.mrf.mxu1  ;;  %32 = vst [vmem:[#allocation2 + $0x18] sm:$0xf] %v6776_v0  ;;  %33 = vst [vmem:[#allocation2 + $0x1c] sm:$0xf] %v6776_v0 }
  0xec   :  { %26 = vst [vmem:[#allocation2] sm:$0xf] %v6776_v0  ;;  %27 = vst [vmem:[#allocation2 + $0x4] sm:$0xf] %v6776_v0 }
  0xed   :  { %v5916_v23 = vpop.f32.mrf.mxu0  ;;  %v5983_v61 = vpop.f32.mrf.mxu1  ;;  %28 = vst [vmem:[#allocation2 + $0x8] sm:$0xf] %v6776_v0  ;;  %29 = vst [vmem:[#allocation2 + $0xc] sm:$0xf] %v6776_v0 }
  0xee   :  { %v5917_v8 = vadd.f32 %v5916_v23, %v5915_v55  ;;  %v5984_v36 = vadd.f32 %v5983_v61, %v5982_v24  ;;  %30 = vst [vmem:[#allocation2 + $0x10] sm:$0xf] %v6776_v0  ;;  %31 = vst [vmem:[#allocation2 + $0x14] sm:$0xf] %v6776_v0  ;;  %v6655_v23 = vld [vmem:[%s9637_s2 + $0xf8] sm:$0xff]  }
  0xef   :  { %v5918_v14 = vpop.f32.mrf.mxu0  ;;  %34 = vst [vmem:[#allocation2 + $0x20] sm:$0xf] %v6776_v0  ;;  %35 = vst [vmem:[#allocation2 + $0x24] sm:$0xf] %v6776_v0  ;;  %6251 = vmatprep.subr.bf16.mxu1 %v6655_v23  ;;  %v6669_v23 = vld [vmem:[%s9637_s2 + $0xd8] sm:$0xff]  }
  0xf0   :  { %v1641_v60 = vadd.f32 %v5917_v8, %v8143_v33  ;;  %36 = vst [vmem:[#allocation2 + $0x28] sm:$0xf] %v6776_v0  ;;  %37 = vst [vmem:[#allocation2 + $0x2c] sm:$0xf] %v6776_v0  ;;  %6252 = vmatpush3.bf16.msra.mxu1 %v6656_v52 }
  0xf1   :  { %v5919_v29 = vpop.f32.mrf.mxu0  ;;  %38 = vst [vmem:[#allocation2 + $0x30] sm:$0xf] %v6776_v0  ;;  %39 = vst [vmem:[#allocation2 + $0x34] sm:$0xf] %v6776_v0  ;;  %6253 = vmatprep.subr.bf16.mxu1 %v6657_v32  ;;  %6512 = vmatmul.mubr.bf16.gmra.mxu1 %v7998_v21 }
  0xf2   :  { %v8149_v18 = vadd.f32 %v5981_v38, %v1641_v60  ;;  %v5920_v13 = vadd.f32 %v5919_v29, %v5918_v14  ;;  %v5985_v26 = vpop.f32.mrf.mxu1  ;;  %40 = vst [vmem:[#allocation2 + $0x38] sm:$0xf] %v6776_v0  ;;  %41 = vst [vmem:[#allocation2 + $0x3c] sm:$0xf] %v6776_v0  ;;  %6515 = vmatprep.mubr.bf16.mxu1 %v7963_v53 }
  0xf3   :  { %42 = vst [vmem:[#allocation2 + $0x40] sm:$0xf] %v6776_v0  ;;  %43 = vst [vmem:[#allocation2 + $0x44] sm:$0xf] %v6776_v0 }
  0xf4   :  { %v1644_v58 = vadd.f32 %v5920_v13, %v8143_v33  ;;  %v5986_v11 = vpop.f32.mrf.mxu1  ;;  %44 = vst [vmem:[#allocation2 + $0x48] sm:$0xf] %v6776_v0  ;;  %45 = vst [vmem:[#allocation2 + $0x4c] sm:$0xf] %v6776_v0  ;;  %6254 = vmatpush3.bf16.msra.mxu1 %v6659_v35 }
  0xf5   :  { %v5987_v47 = vadd.f32 %v5986_v11, %v5985_v26  ;;  %46 = vst [vmem:[#allocation2 + $0x50] sm:$0xf] %v6776_v0  ;;  %47 = vst [vmem:[#allocation2 + $0x54] sm:$0xf] %v6776_v0  ;;  %v6658_v11 = vld [vmem:[%s9637_s2 + $0x78] sm:$0xff]   ;;  %6255 = vmatprep.subr.bf16.mxu1 %v6661_v5  ;;  %v6677_v5 = vld [vmem:[%s9637_s2 + $0xc8] sm:$0xff]  }
  0xf6   :  { %v8152_v48 = vadd.f32 %v5984_v36, %v1644_v58  ;;  %v5988_v3 = vpop.f32.mrf.mxu1  ;;  %48 = vst [vmem:[#allocation2 + $0x58] sm:$0xf] %v6776_v0  ;;  %49 = vst [vmem:[#allocation2 + $0x5c] sm:$0xf] %v6776_v0  ;;  %6187 = vmatprep.subr.bf16.mxu0 %v6658_v11 }
  0xf7   :  { %50 = vst [vmem:[#allocation2 + $0x60] sm:$0xf] %v6776_v0  ;;  %51 = vst [vmem:[#allocation2 + $0x64] sm:$0xf] %v6776_v0 }
  0xf8   :  { %v5989_v41 = vpop.f32.mrf.mxu1  ;;  %52 = vst [vmem:[#allocation2 + $0x68] sm:$0xf] %v6776_v0  ;;  %53 = vst [vmem:[#allocation2 + $0x6c] sm:$0xf] %v6776_v0 }
  0xf9   :  { %v5921_v1 = vpop.f32.mrf.mxu0  ;;  %v5990_v63 = vadd.f32 %v5989_v41, %v5988_v3  ;;  %54 = vst [vmem:[#allocation2 + $0x70] sm:$0xf] %v6776_v0  ;;  %55 = vst [vmem:[#allocation2 + $0x74] sm:$0xf] %v6776_v0  ;;  %v6660_v3 = vld [vmem:[%s9637_s2 + $0x38] sm:$0xff]   ;;  %6516 = vmatmul.mubr.bf16.gmra.mxu1 %v8088_v20  ;;  %v6664_v20 = vld [vmem:[%s9637_s2 + $0x30] sm:$0xff]  }
  0xfa   :  { %56 = vst [vmem:[#allocation2 + $0x78] sm:$0xf] %v6776_v0  ;;  %57 = vst [vmem:[#allocation2 + $0x7c] sm:$0xf] %v6776_v0  ;;  %6188 = vmatpush3.bf16.msra.mxu0 %v6660_v3  ;;  %6519 = vmatprep.mubr.bf16.mxu1 %v8103_v62  ;;  %v6675_v3 = vld [vmem:[%s9637_s2 + $0x90] sm:$0xff]  }
  0xfb   :  { %v5922_v10 = vpop.f32.mrf.mxu0  ;;  %58 = vst [vmem:[#allocation2 + $0x80] sm:$0xf] %v6776_v0  ;;  %59 = vst [vmem:[#allocation2 + $0x84] sm:$0xf] %v6776_v0 }
  0xfc   :  { %v5923_v54 = vadd.f32 %v5922_v10, %v5921_v1  ;;  %60 = vst [vmem:[#allocation2 + $0x88] sm:$0xf] %v6776_v0  ;;  %61 = vst [vmem:[#allocation2 + $0x8c] sm:$0xf] %v6776_v0 }
  0xfd   :  { %v5924_v46 = vpop.f32.mrf.mxu0  ;;  %62 = vst [vmem:[#allocation2 + $0x90] sm:$0xf] %v6776_v0  ;;  %63 = vst [vmem:[#allocation2 + $0x94] sm:$0xf] %v6776_v0 }
  0xfe   :  { %v1649_v30 = vadd.f32 %v5923_v54, %v8143_v33  ;;  %64 = vst [vmem:[#allocation2 + $0x98] sm:$0xf] %v6776_v0  ;;  %65 = vst [vmem:[#allocation2 + $0x9c] sm:$0xf] %v6776_v0 }
  0xff   :  { %v5925_v27 = vpop.f32.mrf.mxu0  ;;  %v5991_v16 = vpop.f32.mrf.mxu1 }
 0x100   :  { %v8161_v9 = vadd.f32 %v5987_v47, %v1649_v30  ;;  %v5926_v34 = vadd.f32 %v5925_v27, %v5924_v46  ;;  %v6662_v27 = vld [vmem:[%s9637_s2 + $0x70] sm:$0xff]  }
 0x101   :  { %v5927_v40 = vpop.f32.mrf.mxu0  ;;  %v5992_v19 = vpop.f32.mrf.mxu1  ;;  %6189 = vmatprep.subr.bf16.mxu0 %v6662_v27  ;;  %6520 = vmatmul.mubr.bf16.gmra.mxu1 %v8111_v2 }
 0x102   :  { %v1652_v6 = vadd.f32 %v5926_v34, %v8143_v33  ;;  %v5993_v15 = vadd.f32 %v5992_v19, %v5991_v16  ;;  %v6663_v34 = vld [vmem:[%s9637_s2 + $0xa8] sm:$0xff]   ;;  %6190 = vmatpush3.bf16.msra.mxu0 %v6664_v20 }
 0x103   :  { %v5928_v57 = vpop.f32.mrf.mxu0  ;;  %v5994_v45 = vpop.f32.mrf.mxu1  ;;  %6256 = vmatpush3.bf16.msra.mxu1 %v6663_v34  ;;  %6191 = vmatprep.subr.bf16.mxu0 %v6666_v42  ;;  %v6678_v34 = vld [vmem:[%s9637_s2 + $0x50] sm:$0xff]   ;;  %v6682_v42 = vld [vmem:[%s9637_s2 + $0x48] sm:$0xff]  }
 0x104   :  { %v8164_v44 = vadd.f32 %v5990_v63, %v1652_v6  ;;  %v5929_v22 = vadd.f32 %v5928_v57, %v5927_v40 }
 0x105   :  { %v5930_v39 = vpop.f32.mrf.mxu0  ;;  %v5995_v17 = vpop.f32.mrf.mxu1 }
 0x106   :  { %v1657_v4 = vadd.f32 %v5929_v22, %v8143_v33  ;;  %v5996_v56 = vadd.f32 %v5995_v17, %v5994_v45  ;;  %v6668_v17 = vld [vmem:[%s9637_s2 + $0x28] sm:$0xff]  }
 0x107   :  { %v5931_v43 = vpop.f32.mrf.mxu0  ;;  %6192 = vmatpush3.bf16.msra.mxu0 %v6668_v17  ;;  %v6684_v17 = vld [vmem:[%s9637_s2 + $0x8] sm:$0xff]  }
 0x108   :  { %v8170_v12 = vadd.f32 %v5993_v15, %v1657_v4  ;;  %v5932_v7 = vadd.f32 %v5931_v43, %v5930_v39  ;;  %v6665_v15 = vld [vmem:[%s9637_s2 + $0xe0] sm:$0xff]  }
 0x109   :  { %v5997_v28 = vpop.f32.mrf.mxu1  ;;  %v6667_v39 = vld [vmem:[%s9637_s2 + $0xa0] sm:$0xff]   ;;  %6257 = vmatprep.subr.bf16.mxu1 %v6665_v15 }
 0x10a   :  { %v1660_v50 = vadd.f32 %v5932_v7, %v8143_v33  ;;  %6258 = vmatpush3.bf16.msra.mxu1 %v6667_v39  ;;  %v6681_v15 = vld [vmem:[%s9637_s2 + $0xc0] sm:$0xff]  }
 0x10b   :  { %v5998_v55 = vpop.f32.mrf.mxu1  ;;  %6259 = vmatprep.subr.bf16.mxu1 %v6669_v23  ;;  %v6683_v39 = vld [vmem:[%s9637_s2 + $0x80] sm:$0xff]  }
 0x10c   :  { %v8176_v51 = vadd.f32 %v5996_v56, %v1660_v50  ;;  %v5999_v38 = vadd.f32 %v5998_v55, %v5997_v28 }
 0x10d   :  { %v6000_v8 = vpop.f32.mrf.mxu1 }
 0x10f   :  { %v5933_v24 = vpop.f32.mrf.mxu0  ;;  %v6001_v29 = vpop.f32.mrf.mxu1 }
 0x110   :  { %v6002_v26 = vadd.f32 %v6001_v29, %v6000_v8 }
 0x111   :  { %v5934_v14 = vpop.f32.mrf.mxu0 }
 0x112   :  { %v5935_v61 = vadd.f32 %v5934_v14, %v5933_v24  ;;  %v6670_v14 = vld [vmem:[%s9637_s2 + $0x60] sm:$0xff]  }
 0x113   :  { %v5936_v60 = vpop.f32.mrf.mxu0  ;;  %6193 = vmatprep.subr.bf16.mxu0 %v6670_v14 }
 0x114   :  { %v1665_v13 = vadd.f32 %v5935_v61, %v8143_v33  ;;  %v6671_v61 = vld [vmem:[%s9637_s2 + $0x98] sm:$0xff]  }
 0x115   :  { %v5937_v36 = vpop.f32.mrf.mxu0  ;;  %6260 = vmatpush3.bf16.msra.mxu1 %v6671_v61 }
 0x116   :  { %v8190_v58 = vadd.f32 %v5999_v38, %v1665_v13  ;;  %v5938_v25 = vadd.f32 %v5937_v36, %v5936_v60  ;;  %v6672_v60 = vld [vmem:[%s9637_s2 + $0x20] sm:$0xff]   ;;  %v6673_v13 = vld [vmem:[%s9637_s2 + $0xd0] sm:$0xff]  }
 0x117   :  { %6194 = vmatpush3.bf16.msra.mxu0 %v6672_v60  ;;  %6261 = vmatprep.subr.bf16.mxu1 %v6673_v13  ;;  %v6686_v13 = vld [vmem:[%s9637_s2 + $0x40] sm:$0xff]  }
 0x118   :  { %v1668_v47 = vadd.f32 %v5938_v25, %v8143_v33 }
 0x119   :  { %6262 = vmatpush3.bf16.msra.mxu1 %v6675_v3 }
 0x11a   :  { %v8204_v1 = vadd.f32 %v6002_v26, %v1668_v47  ;;  %v6003_v21 = vpop.f32.mrf.mxu1  ;;  %v6674_v47 = vld [vmem:[%s9637_s2 + $0x58] sm:$0xff]   ;;  %6263 = vmatprep.subr.bf16.mxu1 %v6677_v5 }
 0x11b   :  { %6195 = vmatprep.subr.bf16.mxu0 %v6674_v47  ;;  %v6688_v47 = vld [vmem:[%s9637_s2] sm:$0xff]  }
 0x11c   :  { %v6004_v10 = vpop.f32.mrf.mxu1 }
 0x11d   :  { %v6005_v54 = vadd.f32 %v6004_v10, %v6003_v21  ;;  %v6676_v21 = vld [vmem:[%s9637_s2 + $0x18] sm:$0xff]  }
 0x11e   :  { %v6006_v46 = vpop.f32.mrf.mxu1  ;;  %6196 = vmatpush3.bf16.msra.mxu0 %v6676_v21 }
 0x11f   :  { %6197 = vmatprep.subr.bf16.mxu0 %v6678_v34 }
 0x120   :  { %v5939_v41 = vpop.f32.mrf.mxu0  ;;  %v6007_v16 = vpop.f32.mrf.mxu1 }
 0x121   :  { %v6008_v57 = vadd.f32 %v6007_v16, %v6006_v46 }
 0x122   :  { %v5940_v53 = vpop.f32.mrf.mxu0 }
 0x123   :  { %v5941_v30 = vadd.f32 %v5940_v53, %v5939_v41 }
 0x124   :  { %v5942_v63 = vpop.f32.mrf.mxu0 }
 0x125   :  { %v1673_v62 = vadd.f32 %v5941_v30, %v8143_v33 }
 0x126   :  { %v5943_v40 = vpop.f32.mrf.mxu0  ;;  %v6009_v45 = vpop.f32.mrf.mxu1 }
 0x127   :  { %v8221_v6 = vadd.f32 %v6005_v54, %v1673_v62  ;;  %v5944_v19 = vadd.f32 %v5943_v40, %v5942_v63  ;;  %v6679_v62 = vld [vmem:[%s9637_s2 + $0x88] sm:$0xff]   ;;  %v6680_v40 = vld [vmem:[%s9637_s2 + $0x10] sm:$0xff]  }
 0x128   :  { %v5945_v22 = vpop.f32.mrf.mxu0  ;;  %v6010_v7 = vpop.f32.mrf.mxu1  ;;  %6264 = vmatpush3.bf16.msra.mxu1 %v6679_v62  ;;  %6198 = vmatpush3.bf16.msra.mxu0 %v6680_v40 }
 0x129   :  { %9684 = vst [vmem:[#allocation12_spill] sm:$0xff] %v8221_v6  ;;  %v1676_v4 = vadd.f32 %v5944_v19, %v8143_v33  ;;  %v6011_v28 = vadd.f32 %v6010_v7, %v6009_v45  ;;  %6265 = vmatprep.subr.bf16.mxu1 %v6681_v15  ;;  %6199 = vmatprep.subr.bf16.mxu0 %v6682_v42 }
 0x12a   :  { %v5946_v43 = vpop.f32.mrf.mxu0  ;;  %v6012_v0 = vpop.f32.mrf.mxu1 }
 0x12b   :  { %v8237_v56 = vadd.f32 %v6008_v57, %v1676_v4  ;;  %v5947_v59 = vadd.f32 %v5946_v43, %v5945_v22 }
 0x12c   :  { %v5948_v50 = vpop.f32.mrf.mxu0  ;;  %v6013_v38 = vpop.f32.mrf.mxu1  ;;  %6266 = vmatpush3.bf16.msra.mxu1 %v6683_v39  ;;  %6200 = vmatpush3.bf16.msra.mxu0 %v6684_v17 }
 0x12d   :  { %9685 = vst [vmem:[#allocation15_spill] sm:$0xff] %v8237_v56  ;;  %v1681_v2 = vadd.f32 %v5947_v59, %v8143_v33  ;;  %v6014_v52 = vadd.f32 %v6013_v38, %v6012_v0  ;;  %6201 = vmatprep.subr.bf16.mxu0 %v6686_v13  ;;  %v2903_v56 = vld [vmem:[#allocation2] sm:$0xe] }
 0x12e   :  { %v5949_v55 = vpop.f32.mrf.mxu0 }
 0x12f   :  { %v8243_v24 = vadd.f32 %v6011_v28, %v1681_v2  ;;  %v5950_v8 = vadd.f32 %v5949_v55, %v5948_v50 }
 0x130   :  { %6202 = vmatpush3.bf16.msra.mxu0 %v6688_v47 }
 0x131   :  { %9686 = vst [vmem:[#allocation7_spill] sm:$0xff] %v8243_v24  ;;  %v1684_v29 = vadd.f32 %v5950_v8, %v8143_v33  ;;  %v6015_v32 = vpop.f32.mrf.mxu1  ;;  %v2647_v24 = vld [vmem:[#allocation2] sm:$0xf] }
 0x133   :  { %v8258_v36 = vadd.f32 %v6014_v52, %v1684_v29  ;;  %v6016_v25 = vpop.f32.mrf.mxu1 }
 0x134   :  { %v6017_v26 = vadd.f32 %v6016_v25, %v6015_v32 }
 0x135   :  { %9687 = vst [vmem:[#allocation8_spill] sm:$0xff] %v8258_v36  ;;  %v6018_v11 = vpop.f32.mrf.mxu1 }
 0x137   :  { %v5951_v35 = vpop.f32.mrf.mxu0  ;;  %v6019_v54 = vpop.f32.mrf.mxu1 }
 0x138   :  { %v6020_v20 = vadd.f32 %v6019_v54, %v6018_v11 }
 0x139   :  { %v5952_v10 = vpop.f32.mrf.mxu0 }
 0x13a   :  { %v5953_v41 = vadd.f32 %v5952_v10, %v5951_v35 }
 0x13b   :  { %v5954_v46 = vpop.f32.mrf.mxu0 }
 0x13c   :  { %v1689_v53 = vadd.f32 %v5953_v41, %v8143_v33 }
 0x13d   :  { %v5955_v30 = vpop.f32.mrf.mxu0  ;;  %v8273_v27 = vpop.f32.mrf.mxu1 }
 0x13e   :  { %v8278_v63 = vadd.f32 %v6017_v26, %v1689_v53  ;;  %v5956_v16 = vadd.f32 %v5955_v30, %v5954_v46 }
 0x13f   :  { %v8286_v19 = vpop.f32.mrf.mxu1 }
 0x140   :  { %9688 = vst [vmem:[#allocation9_spill] sm:$0xff] %v8278_v63  ;;  %v1692_v57 = vadd.f32 %v5956_v16, %v8143_v33  ;;  %v5957_v22 = vpop.f32.mrf.mxu0  ;;  %v6690_v16 = vld [vmem:[%s9637_s2 + $0x178] sm:$0xff]  }
 0x141   :  { %v6024_v45 = vpop.f32.mrf.mxu1  ;;  %6315 = vmatprep.subr.bf16.mxu0 %v6690_v16 }
 0x142   :  { %v8298_v4 = vadd.f32 %v6020_v20, %v1692_v57  ;;  %v5958_v43 = vpop.f32.mrf.mxu0  ;;  %v6691_v20 = vld [vmem:[%s9637_s2 + $0x1f8] sm:$0xff]  }
 0x143   :  { %v6025_v7 = vpop.f32.mrf.mxu1  ;;  %v8303_v59 = vadd.f32 %v5958_v43, %v5957_v22  ;;  %6379 = vmatprep.subr.bf16.mxu1 %v6691_v20 }
 0x144   :  { %9689 = vst [vmem:[#allocation10_spill] sm:$0xff] %v8298_v4  ;;  %v5960_v28 = vpop.f32.mrf.mxu0  ;;  %v6026_v38 = vadd.f32 %v6025_v7, %v6024_v45 }
 0x145   :  { %v8305_v50 = vpop.f32.mrf.mxu1 }
 0x146   :  { %v5961_v0 = vpop.f32.mrf.mxu0 }
 0x147   :  { %v8307_v2 = vpop.f32.mrf.mxu1  ;;  %v5962_v55 = vadd.f32 %v5961_v0, %v5960_v28 }
 0x148   :  { %v8309_v23 = vpop.f32.mrf.mxu0 }
 0x149   :  { %v8311_v8 = vpop.f32.mrf.mxu1  ;;  %v1700_v52 = vadd.f32 %v5962_v55, %v8143_v33 }
 0x14a   :  { %v6044_v14 = vpop.f32.mrf.mxu0 }
 0x14b   :  { %v8314_v61 = vpop.f32.mrf.mxu1  ;;  %v8316_v60 = vadd.f32 %v6026_v38, %v1700_v52 }
 0x14c   :  { %v8318_v29 = vpop.f32.mrf.mxu0 }
 0x14d   :  { %9690 = vst [vmem:[#allocation13_spill] sm:$0xff] %v8316_v60  ;;  %v8320_v32 = vpop.f32.mrf.mxu1 }
 0x14e   :  { %v8325_v25 = vpop.f32.mrf.mxu0 }
 0x14f   :  { %v8327_v26 = vpop.f32.mrf.mxu1 }
 0x150   :  { %v8329_v11 = vpop.f32.mrf.mxu0 }
 0x151   :  { %v8331_v35 = vpop.f32.mrf.mxu1 }
 0x152   :  { %v8336_v3 = vpop.f32.mrf.mxu0 }
 0x153   :  { %v8338_v21 = vpop.f32.mrf.mxu1 }
 0x154   :  { %v8340_v10 = vpop.f32.mrf.mxu0 }
 0x155   :  { %v8342_v54 = vpop.f32.mrf.mxu1 }
 0x156   :  { %v6053_v41 = vpop.f32.mrf.mxu0 }
 0x157   :  { %v8344_v46 = vpop.f32.mrf.mxu1 }
 0x158   :  { %v6055_v53 = vpop.f32.mrf.mxu0 }
 0x159   :  { %v8346_v5 = vpop.f32.mrf.mxu1 }
 0x15a   :  { %v6056_v30 = vpop.f32.mrf.mxu0 }
 0x15b   :  { %v8348_v34 = vpop.f32.mrf.mxu1 }
 0x15c   :  { %v6058_v62 = vpop.f32.mrf.mxu0 }
 0x15d   :  { %v8356_v40 = vpop.f32.mrf.mxu1 }
 0x15e   :  { %v6059_v57 = vpop.f32.mrf.mxu0 }
 0x15f   :  { %v8358_v15 = vpop.f32.mrf.mxu1 }
 0x160   :  { %v6061_v22 = vpop.f32.mrf.mxu0 }
 0x161   :  { %v8360_v45 = vpop.f32.mrf.mxu1 }
 0x162   :  { %v6062_v42 = vpop.f32.mrf.mxu0 }
 0x163   :  { %v8362_v39 = vpop.f32.mrf.mxu1 }
 0x164   :  { %9691 = vst [vmem:[#allocation14_spill] sm:$0xff] %v8362_v39  ;;  %v6064_v17 = vpop.f32.mrf.mxu0 }
 0x165   :  { %v8364_v43 = vpop.f32.mrf.mxu1 }
 0x166   :  { %9692 = vst [vmem:[#allocation16_spill] sm:$0xff] %v8364_v43  ;;  %v6065_v7 = vpop.f32.mrf.mxu0  ;;  %v5691_v43 = vrot.slane %v2903_v56, 9  ;;  %v6051_v56 = vadd.f32 %v8336_v3, %v8329_v11  ;;  %v6115_v11 = vadd.f32 %v8327_v26, %v8320_v32  ;;  %v6124_v26 = vadd.f32 %v8348_v34, %v8346_v5 }
 0x167   :  { %v8366_v28 = vpop.f32.mrf.mxu1 }
 0x168   :  { %9693 = vst [vmem:[#allocation17_spill] sm:$0xff] %v8366_v28  ;;  %v6067_v0 = vpop.f32.mrf.mxu0 }
 0x169   :  { %v8368_v55 = vpop.f32.mrf.mxu1 }
 0x16a   :  { %9694 = vst [vmem:[#allocation18_spill] sm:$0xff] %v8368_v55  ;;  %v6068_v38 = vpop.f32.mrf.mxu0 }
 0x16b   :  { %v8370_v52 = vpop.f32.mrf.mxu1  ;;  %v6069_v3 = vadd.f32 %v6068_v38, %v6067_v0 }
 0x16c   :  { %9695 = vst [vmem:[#allocation19_spill] sm:$0xff] %v8370_v52  ;;  %v6070_v13 = vpop.f32.mrf.mxu0 }
 0x16d   :  { %v8372_v47 = vpop.f32.mrf.mxu1 }
 0x16e   :  { %9696 = vst [vmem:[#allocation20_spill] sm:$0xff] %v8372_v47  ;;  %v6071_v16 = vpop.f32.mrf.mxu0  ;;  %v2663_v47 = vld [vmem:[#allocation2 + $0x4] sm:$0x1] }
 0x16f   :  { %v8374_v20 = vpop.f32.mrf.mxu1 }
 0x170   :  { %9697 = vst [vmem:[#allocation21_spill] sm:$0xff] %v8374_v20  ;;  %v8376_v31 = vpop.f32.mrf.mxu0  ;;  %v2680_v20 = vshrl.u32 %v2647_v24, 16 }
 0x171   :  { %9698 = vst [vmem:[#allocation22_spill] sm:$0xff] %v8376_v31  ;;  %v8378_v37 = vpop.f32.mrf.mxu1  ;;  %v2683_v31 = vshll.u32 %v2647_v24, 16  ;;  %v9711_v34 = vld [vmem:[#allocation18_spill] sm:$0xff] }
 0x172   :  { %9699 = vst [vmem:[#allocation23_spill] sm:$0xff] %v8378_v37  ;;  %v6074_v60 = vpop.f32.mrf.mxu0  ;;  %v6045_v37 = vadd.f32 %v6044_v14, %v8309_v23  ;;  %v2682_v39 = vrot.slane %v2680_v20, 4  ;;  %v6109_v23 = vadd.f32 %v8307_v2, %v8305_v50  ;;  %v6066_v50 = vadd.f32 %v6065_v7, %v6064_v17 }
 0x173   :  { %v8380_v4 = vpop.f32.mrf.mxu1 }
 0x174   :  { %9700 = vst [vmem:[#allocation24_spill] sm:$0xff] %v8380_v4  ;;  %v8382_v63 = vpop.f32.mrf.mxu0  ;;  %v1697_v4 = vadd.f32 %v8303_v59, %v8143_v33  ;;  %v1835_v24 = vadd.f32 %v6045_v37, %v8149_v18  ;;  %v6048_v33 = vadd.f32 %v8325_v25, %v8318_v29  ;;  %v6112_v37 = vadd.f32 %v8314_v61, %v8311_v8 }
 0x175   :  { %9701 = vst [vmem:[#allocation25_spill] sm:$0xff] %v8382_v63  ;;  %v8384_v36 = vpop.f32.mrf.mxu1  ;;  %v6023_v63 = vadd.f32 %v8286_v19, %v8273_v27  ;;  %v6057_v18 = vadd.f32 %v6056_v30, %v6055_v53  ;;  %v6063_v59 = vadd.f32 %v6062_v42, %v6061_v22  ;;  %v2689_v25 = vshll.u32 %v2663_v47, 16  ;;  %v9710_v42 = vld [vmem:[#allocation15_spill] sm:$0xff] }
 0x176   :  { %9702 = vst [vmem:[#allocation26_spill] sm:$0xff] %v8384_v36  ;;  %v8386_v55 = vpop.f32.mrf.mxu0  ;;  %v1838_v20 = vadd.f32 %v6048_v33, %v8152_v48  ;;  %v1843_v8 = vadd.f32 %v6051_v56, %v8161_v9  ;;  %v6118_v61 = vadd.f32 %v8338_v21, %v8331_v35  ;;  %v6127_v9 = vadd.f32 %v8358_v15, %v8356_v40  ;;  %v9706_v21 = vld [vmem:[#allocation14_spill] sm:$0xff] }
 0x177   :  { %9703 = vst [vmem:[#allocation27_spill] sm:$0xff] %v8386_v55  ;;  %v8388_v52 = vpop.f32.mrf.mxu1  ;;  %v2953_v55 = vrot.slane %v2663_v47, 5  ;;  %v8406_v14 = vadd.f32 %v6023_v63, %v1697_v4  ;;  %v6060_v63 = vadd.f32 %v6059_v57, %v6058_v62  ;;  %v1851_v30 = vadd.f32 %v6057_v18, %v8170_v12  ;;  %v9708_v57 = vld [vmem:[#allocation16_spill] sm:$0xff] }
 0x178   :  { %9704 = vst [vmem:[#allocation28_spill] sm:$0xff] %v8388_v52  ;;  %v8390_v28 = vpop.f32.mrf.mxu0  ;;  %v1859_v48 = vadd.f32 %v6063_v59, %v8190_v58  ;;  %v1862_v35 = vadd.f32 %v6066_v50, %v8204_v1  ;;  %v9713_v58 = vld [vmem:[#allocation22_spill] sm:$0xff]  ;;  %v1935_v40 = vadd.f32 %v6112_v37, %v1838_v20  ;;  %v8453_v1 = vrot.slane %v2689_v25, 5  ;;  %v8467_v59 = vld [vmem:[#allocation2 + $0x50] sm:$0xe] }
 0x179   :  { %9705 = vst [vmem:[#allocation29_spill] sm:$0xff] %v8390_v28  ;;  %v8399_v6 = vpop.f32.mrf.mxu1  ;;  %v2685_v28 = vrot.slane %v2683_v31, 5  ;;  %v8416_v19 = vsel %vm7051_vm6, %v5691_v43, %v2953_v55  ;;  %v6054_v31 = vadd.f32 %v6053_v41, %v8340_v10  ;;  %v6072_v43 = vadd.f32 %v6071_v16, %v6070_v13  ;;  %v8459_v16 = vld [vmem:[#allocation2 + $0x50] sm:$0xf]  ;;  %v9718_v50 = vld [vmem:[#allocation23_spill] sm:$0xff] }
 0x17a   :  { %v8397_v36 = vpop.f32.mrf.mxu0  ;;  %v1932_v55 = vadd.f32 %v6109_v23, %v1835_v24  ;;  %v6121_v10 = vadd.f32 %v8344_v46, %v8342_v54  ;;  %v1854_v32 = vadd.f32 %v6060_v63, %v8176_v51  ;;  %v6130_v54 = vadd.f32 %v9706_v21, %v8360_v45  ;;  %v9707_v46 = vld [vmem:[#allocation12_spill] sm:$0xff]  ;;  %v9709_v51 = vld [vmem:[#allocation17_spill] sm:$0xff] }
 0x17b   :  { %v8421_v4 = vpop.f32.mrf.mxu1  ;;  %v2686_v29 = vor.u32 %v2685_v28, %v2682_v39  ;;  %v1846_v53 = vadd.f32 %v6054_v31, %v8164_v44  ;;  %v1867_v12 = vadd.f32 %v6069_v3, %v9707_v46  ;;  %v6133_v22 = vadd.f32 %v9709_v51, %v9708_v57  ;;  %v9712_v39 = vld [vmem:[#allocation19_spill] sm:$0xff]  ;;  %v9714_v24 = vld [vmem:[#allocation20_spill] sm:$0xff]  ;;  %v9715_v23 = vld [vmem:[#allocation21_spill] sm:$0xff] }
 0x17c   :  { %v8401_v52 = vpop.f32.mrf.mxu0  ;;  %v1870_v5 = vadd.f32 %v6072_v43, %v9710_v42  ;;  %v6136_v17 = vadd.f32 %v9712_v39, %v9711_v34  ;;  %v6075_v7 = vadd.f32 %v6074_v60, %v9713_v58  ;;  %v1940_v0 = vadd.f32 %v6115_v11, %v1843_v8  ;;  %v9716_v56 = vld [vmem:[#allocation25_spill] sm:$0xff]  ;;  %v8475_v20 = vld [vmem:[#allocation2 + $0x54] sm:$0x1]  ;;  %v9720_v8 = vld [vmem:[#allocation7_spill] sm:$0xff] }
 0x17d   :  { %v8436_v62 = vpop.f32.mrf.mxu1  ;;  %v8451_v15 = vrot.slane %v2686_v29, 4  ;;  %v1943_v38 = vadd.f32 %v6118_v61, %v1846_v53  ;;  %v8455_v13 = vadd.f32 %v6121_v10, %v1851_v30  ;;  %v8457_v47 = vadd.f32 %v6124_v26, %v1854_v32  ;;  %v9719_v29 = vld [vmem:[#allocation24_spill] sm:$0xff]  ;;  %v9723_v42 = vld [vmem:[#allocation26_spill] sm:$0xff] }
 0x17e   :  { %v8412_v27 = vpop.f32.mrf.mxu0  ;;  %v6139_v33 = vadd.f32 %v9715_v23, %v9714_v24  ;;  %v9717_v60 = vld [vmem:[#allocation27_spill] sm:$0xff]  ;;  %v1956_v18 = vadd.f32 %v6127_v9, %v1859_v48  ;;  %v8465_v63 = vadd.f32 %v6130_v54, %v1862_v35  ;;  %v6142_v25 = vadd.f32 %v9719_v29, %v9718_v50  ;;  %v9722_v46 = vld [vmem:[#allocation8_spill] sm:$0xff] }
 0x17f   :  { %v6150_v45 = vpop.f32.mrf.mxu1  ;;  %v6078_v31 = vadd.f32 %v9717_v60, %v9716_v56  ;;  %v8471_v3 = vadd.f32 %v6133_v22, %v1867_v12  ;;  %v8473_v43 = vadd.f32 %v6136_v17, %v1870_v5  ;;  %v1875_v61 = vadd.f32 %v6075_v7, %v9720_v8  ;;  %v9724_v5 = vld [vmem:[#allocation28_spill] sm:$0xff]  ;;  %v9727_v8 = vld [vmem:[#allocation13_spill] sm:$0xff] }
 0x180   :  { %v6085_v2 = vpop.f32.mrf.mxu0  ;;  %v9721_v10 = vld [vmem:[#allocation29_spill] sm:$0xff]  ;;  %v2792_v32 = vshrl.u32 %v8459_v16, 16  ;;  %v2795_v26 = vshll.u32 %v8459_v16, 16  ;;  %v2801_v21 = vshll.u32 %v8475_v20, 16  ;;  %v5699_v54 = vrot.slane %v8467_v59, 9  ;;  %v6699_v59 = vld [vmem:[%s9637_s2 + $0x1b0] sm:$0xff]  }
 0x181   :  { %v6081_v53 = vadd.f32 %v8397_v36, %v9721_v10  ;;  %v6152_v48 = vpop.f32.mrf.mxu1  ;;  %v1878_v12 = vadd.f32 %v6078_v31, %v9722_v46  ;;  %v6084_v57 = vadd.f32 %v8412_v27, %v8401_v52  ;;  %v2985_v36 = vrot.slane %v8475_v20, 5  ;;  %v9726_v31 = vld [vmem:[#allocation10_spill] sm:$0xff]  ;;  %v6703_v20 = vld [vmem:[%s9637_s2 + $0x1e8] sm:$0xff]  }
 0x182   :  { %v6086_v41 = vpop.f32.mrf.mxu0  ;;  %v6145_v34 = vadd.f32 %v9724_v5, %v9723_v42  ;;  %v8493_v52 = vadd.f32 %v6139_v33, %v1875_v61  ;;  %v6151_v50 = vadd.f32 %v6150_v45, %v8436_v62 }
 0x183   :  { %v6087_v51 = vadd.f32 %v6086_v41, %v6085_v2  ;;  %v6153_v27 = vpop.f32.mrf.mxu1 }
 0x184   :  { %v6088_v44 = vpop.f32.mrf.mxu0  ;;  %v6154_v10 = vadd.f32 %v6153_v27, %v6152_v48 }
 0x186   :  { %v6089_v28 = vpop.f32.mrf.mxu0 }
 0x187   :  { %v6090_v24 = vadd.f32 %v6089_v28, %v6088_v44 }
 0x188   :  { %v6477_v37 = vpop.f32.mrf.mxu0 }
 0x189   :  { %v2037_v11 = vadd.f32 %v6477_v37, %v1940_v0  ;;  %v6148_v0 = vadd.f32 %v8421_v4, %v8399_v6  ;;  %v1891_v37 = vadd.f32 %v6087_v51, %v8406_v14  ;;  %v8498_v4 = vadd.f32 %v6142_v25, %v1878_v12 }
 0x18a   :  { %v2028_v30 = vpop.f32.mrf.mxu0  ;;  %v1894_v61 = vadd.f32 %v6090_v24, %v9727_v8 }
 0x18b   :  { %v2093_v9 = vadd.f32 3.0, %v2037_v11  ;;  %v2029_v35 = vadd.f32 %v2028_v30, %v1932_v55  ;;  %v9725_v55 = vld [vmem:[#allocation9_spill] sm:$0xff]  ;;  %v8504_v25 = vadd.f32 %v6151_v50, %v1891_v37 }
 0x18c   :  { %v6478_v22 = vpop.f32.mrf.mxu0  ;;  %v1883_v7 = vadd.f32 %v6081_v53, %v9725_v55  ;;  %v2566_v37 = vld [vmem:[#allocation2 + $0x1c] sm:$0x1] }
 0x18d   :  { %v2109_v39 = vmax.f32 %v2093_v9, 0.0  ;;  %v2091_v17 = vadd.f32 3.0, %v2029_v35  ;;  %v2040_v58 = vadd.f32 %v6478_v22, %v1943_v38  ;;  %v1886_v38 = vadd.f32 %v6084_v57, %v9726_v31 }
 0x18e   :  { %v2031_v23 = vpop.f32.mrf.mxu0  ;;  %v8501_v9 = vadd.f32 %v6145_v34, %v1883_v7 }
 0x18f   :  { %v2125_v2 = vmin.f32 %v2109_v39, 6.0  ;;  %v2107_v41 = vmax.f32 %v2091_v17, 0.0  ;;  %v2094_v56 = vadd.f32 3.0, %v2040_v58  ;;  %v2032_v60 = vadd.f32 %v2031_v23, %v1935_v40 }
 0x190   :  { %v6481_v6 = vpop.f32.mrf.mxu0  ;;  %v8513_v39 = vadd.f32 %v6154_v10, %v1894_v61  ;;  %v2548_v10 = vld [vmem:[#allocation2 + $0x8] sm:$0xf] }
 0x191   :  { %v2141_v44 = vmul.f32 %v2125_v2, %v2037_v11  ;;  %v2123_v28 = vmin.f32 %v2107_v41, 6.0  ;;  %v2110_v33 = vmax.f32 %v2094_v56, 0.0  ;;  %v2092_v29 = vadd.f32 3.0, %v2032_v60  ;;  %v2563_v41 = vld [vmem:[#allocation2 + $0x18] sm:$0xf] }
 0x192   :  { %v2053_v53 = vadd.f32 %v6481_v6, %v1956_v18  ;;  %v2044_v30 = vpop.f32.mrf.mxu0  ;;  %v8506_v11 = vadd.f32 %v6148_v0, %v1886_v38 }
 0x193   :  { %v2157_v40 = vmul.f32 0.16666667, %v2141_v44  ;;  %v2139_v46 = vmul.f32 %v2123_v28, %v2029_v35  ;;  %v2126_v57 = vmin.f32 %v2110_v33, 6.0  ;;  %v2108_v14 = vmax.f32 %v2092_v29, 0.0 }
 0x194   :  { %v2097_v51 = vadd.f32 3.0, %v2053_v53  ;;  %v2045_v62 = vadd.f32 %v2044_v30, %v8455_v13  ;;  %v6482_v45 = vpop.f32.mrf.mxu0 }
 0x195   :  { %v5885_v12 = vpack.c.bf16 %v2157_v40, %v2157_v40  ;;  %v2155_v22 = vmul.f32 0.16666667, %v2139_v46  ;;  %v2142_v42 = vmul.f32 %v2126_v57, %v2040_v58  ;;  %v2124_v48 = vmin.f32 %v2108_v14, 6.0  ;;  %v2554_v40 = vld [vmem:[#allocation2 + $0xc] sm:$0x1] }
 0x196   :  { %v2113_v18 = vmax.f32 %v2097_v51, 0.0  ;;  %v2095_v5 = vadd.f32 3.0, %v2045_v62  ;;  %v8509_v34 = vadd.f32 %v6482_v45, %v8465_v63  ;;  %v8511_v35 = vpop.f32.mrf.mxu0 }
 0x197   :  { %v2401_v17 = vshrl.u32 %v5885_v12, 16  ;;  %v2404_v13 = vshll.u32 %v5885_v12, 16  ;;  %v5883_v55 = vpack.c.bf16 %v2155_v22, %v2155_v22  ;;  %v2158_v7 = vmul.f32 0.16666667, %v2142_v42 }
 0x198   :  { %v2140_v24 = vmul.f32 %v2124_v48, %v2032_v60  ;;  %v2129_v0 = vmin.f32 %v2113_v18, 6.0  ;;  %v2111_v23 = vmax.f32 %v2095_v5, 0.0  ;;  %v2098_v27 = vadd.f32 3.0, %v8509_v34  ;;  %v8516_v58 = vpop.f32.mrf.mxu0  ;;  %v2569_v18 = vld [vmem:[#allocation2 + $0x20] sm:$0xf] }
 0x199   :  { %v2403_v2 = vrot.slane %v2401_v17, 7  ;;  %v2385_v56 = vshrl.u32 %v5883_v55, 16  ;;  %v2388_v31 = vshll.u32 %v5883_v55, 16  ;;  %v5886_v38 = vpack.c.bf16 %v2158_v7, %v2158_v7  ;;  %v2572_v7 = vld [vmem:[#allocation2 + $0x24] sm:$0x1] }
 0x19a   :  { %v2156_v50 = vmul.f32 0.16666667, %v2140_v24  ;;  %v2145_v6 = vmul.f32 %v2129_v0, %v2053_v53  ;;  %v2127_v44 = vmin.f32 %v2111_v23, 6.0  ;;  %v2114_v28 = vmax.f32 %v2098_v27, 0.0  ;;  %v8530_v33 = vpop.f32.mrf.mxu0 }
 0x19b   :  { %v2406_v29 = vor.u32 %v2404_v13, %v2403_v2  ;;  %v2407_v8 = vrot.slane %v2403_v2, 4  ;;  %v2387_v61 = vrot.slane %v2385_v56, 7  ;;  %v2409_v30 = vshrl.u32 %v5886_v38, 16 }
 0x19c   :  { %v2412_v46 = vshll.u32 %v5886_v38, 16  ;;  %v5884_v57 = vpack.c.bf16 %v2156_v50, %v2156_v50  ;;  %v2161_v14 = vmul.f32 0.16666667, %v2145_v6  ;;  %v2143_v51 = vmul.f32 %v2127_v44, %v2045_v62  ;;  %v6486_v45 = vpop.f32.mrf.mxu0  ;;  %v2560_v38 = vld [vmem:[#allocation2 + $0x14] sm:$0x1] }
 0x19d   :  { %v2564_v12 = vsel %vm8520_vm11, %v2406_v29, %v2563_v41  ;;  %v2567_v53 = vsel %vm8526_vm12, %v2407_v8, %v2566_v37  ;;  %v2390_v22 = vor.u32 %v2388_v31, %v2387_v61  ;;  %v2391_v42 = vrot.slane %v2387_v61, 4  ;;  %v2557_v31 = vld [vmem:[#allocation2 + $0x10] sm:$0xf] }
 0x19e   :  { %2565 = vst [vmem:[#allocation2 + $0x18] sm:$0xf] %v2564_v12  ;;  %2568 = vst [vmem:[#allocation2 + $0x1c] sm:$0x1] %v2567_v53  ;;  %v2411_v48 = vrot.slane %v2409_v30, 7  ;;  %v2393_v5 = vshrl.u32 %v5884_v57, 16  ;;  %v5889_v13 = vpack.c.bf16 %v2161_v14, %v2161_v14  ;;  %v2063_v56 = vpop.f32.mrf.mxu0  ;;  %v2048_v44 = vadd.f32 %v8511_v35, %v8457_v47 }
 0x19f   :  { %v2396_v17 = vshll.u32 %v5884_v57, 16  ;;  %v2549_v55 = vsel %vm8520_vm11, %v2390_v22, %v2548_v10  ;;  %v2555_v62 = vsel %vm8526_vm12, %v2391_v42, %v2554_v40  ;;  %v2159_v24 = vmul.f32 0.16666667, %v2143_v51  ;;  %v2587_v35 = vld [vmem:[#allocation2 + $0x38] sm:$0xf] }
 0x1a0   :  { %v2130_v0 = vmin.f32 %v2114_v28, 6.0  ;;  %2550 = vst [vmem:[#allocation2 + $0x8] sm:$0xf] %v2549_v55  ;;  %2556 = vst [vmem:[#allocation2 + $0xc] sm:$0x1] %v2555_v62  ;;  %v2414_v23 = vor.u32 %v2412_v46, %v2411_v48  ;;  %v2415_v27 = vrot.slane %v2411_v48, 4  ;;  %v2069_v51 = vadd.f32 %v8516_v58, %v8493_v52  ;;  %v6489_v12 = vpop.f32.mrf.mxu0 }
 0x1a1   :  { %v2395_v2 = vrot.slane %v2393_v5, 7  ;;  %v2433_v41 = vshrl.u32 %v5889_v13, 16  ;;  %v2436_v37 = vshll.u32 %v5889_v13, 16  ;;  %v5887_v50 = vpack.c.bf16 %v2159_v24, %v2159_v24  ;;  %v2590_v57 = vld [vmem:[#allocation2 + $0x3c] sm:$0x1] }
 0x1a2   :  { %v2146_v6 = vmul.f32 %v2130_v0, %v8509_v34  ;;  %v2570_v29 = vsel %vm8520_vm11, %v2414_v23, %v2569_v18  ;;  %v2573_v28 = vsel %vm8526_vm12, %v2415_v27, %v2572_v7  ;;  %v2096_v14 = vadd.f32 3.0, %v2048_v44  ;;  %v2575_v18 = vld [vmem:[#allocation2 + $0x28] sm:$0xf]  ;;  %v2578_v5 = vld [vmem:[#allocation2 + $0x2c] sm:$0x1] }
 0x1a3   :  { %v2398_v8 = vor.u32 %v2396_v17, %v2395_v2  ;;  %v2399_v61 = vrot.slane %v2395_v2, 4  ;;  %2571 = vst [vmem:[#allocation2 + $0x20] sm:$0xf] %v2570_v29  ;;  %2574 = vst [vmem:[#allocation2 + $0x24] sm:$0x1] %v2573_v28  ;;  %v2435_v10 = vrot.slane %v2433_v41, 7  ;;  %v2061_v55 = vadd.f32 %v8530_v33, %v8471_v3  ;;  %v2076_v41 = vpop.f32.mrf.mxu0 }
 0x1a4   :  { %v2417_v30 = vshrl.u32 %v5887_v50, 16  ;;  %v2420_v40 = vshll.u32 %v5887_v50, 16  ;;  %v2162_v46 = vmul.f32 0.16666667, %v2146_v6  ;;  %v2112_v17 = vmax.f32 %v2096_v14, 0.0 }
 0x1a5   :  { %v2558_v34 = vsel %vm8520_vm11, %v2398_v8, %v2557_v31  ;;  %v2561_v47 = vsel %vm8526_vm12, %v2399_v61, %v2560_v38  ;;  %v2438_v53 = vor.u32 %v2436_v37, %v2435_v10  ;;  %v2439_v22 = vrot.slane %v2435_v10, 4  ;;  %v2593_v6 = vld [vmem:[#allocation2 + $0x40] sm:$0xf]  ;;  %v2596_v29 = vld [vmem:[#allocation2 + $0x44] sm:$0x1] }
 0x1a6   :  { %2559 = vst [vmem:[#allocation2 + $0x10] sm:$0xf] %v2558_v34  ;;  %2562 = vst [vmem:[#allocation2 + $0x14] sm:$0x1] %v2561_v47  ;;  %v2419_v42 = vrot.slane %v2417_v30, 7  ;;  %v5890_v48 = vpack.c.bf16 %v2162_v46, %v2162_v46  ;;  %v2101_v13 = vadd.f32 3.0, %v2069_v51  ;;  %v2072_v62 = vadd.f32 %v6486_v45, %v8498_v4 }
 0x1a7   :  { %v2588_v7 = vsel %vm8520_vm11, %v2438_v53, %v2587_v35  ;;  %v2591_v52 = vsel %vm8526_vm12, %v2439_v22, %v2590_v57  ;;  %v2128_v27 = vmin.f32 %v2112_v17, 6.0  ;;  %v2099_v33 = vadd.f32 3.0, %v2061_v55 }
 0x1a8   :  { %v2422_v58 = vor.u32 %v2420_v40, %v2419_v42  ;;  %v2423_v24 = vrot.slane %v2419_v42, 4  ;;  %2589 = vst [vmem:[#allocation2 + $0x38] sm:$0xf] %v2588_v7  ;;  %2592 = vst [vmem:[#allocation2 + $0x3c] sm:$0x1] %v2591_v52  ;;  %v2441_v0 = vshrl.u32 %v5890_v48, 16  ;;  %v2064_v50 = vadd.f32 %v2063_v56, %v8473_v43 }
 0x1a9   :  { %v2444_v23 = vshll.u32 %v5890_v48, 16  ;;  %v2117_v2 = vmax.f32 %v2101_v13, 0.0  ;;  %v2102_v45 = vadd.f32 3.0, %v2072_v62  ;;  %v2144_v38 = vmul.f32 %v2128_v27, %v2048_v44  ;;  %v2584_v27 = vld [vmem:[#allocation2 + $0x34] sm:$0x1] }
 0x1aa   :  { %v2576_v3 = vsel %vm8520_vm11, %v2422_v58, %v2575_v18  ;;  %v2579_v4 = vsel %vm8526_vm12, %v2423_v24, %v2578_v5  ;;  %v2443_v31 = vrot.slane %v2441_v0, 7  ;;  %v2115_v28 = vmax.f32 %v2099_v33, 0.0 }
 0x1ab   :  { %2577 = vst [vmem:[#allocation2 + $0x28] sm:$0xf] %v2576_v3  ;;  %2580 = vst [vmem:[#allocation2 + $0x2c] sm:$0x1] %v2579_v4  ;;  %v2133_v37 = vmin.f32 %v2117_v2, 6.0  ;;  %v2118_v8 = vmax.f32 %v2102_v45, 0.0  ;;  %v2085_v61 = vadd.f32 %v6489_v12, %v8504_v25  ;;  %v8567_v10 = vadd.f32 %v2076_v41, %v8501_v9 }
 0x1ac   :  { %v2446_v30 = vor.u32 %v2444_v23, %v2443_v31  ;;  %v2447_v40 = vrot.slane %v2443_v31, 4  ;;  %v2160_v46 = vmul.f32 0.16666667, %v2144_v38  ;;  %v2131_v47 = vmin.f32 %v2115_v28, 6.0  ;;  %v2581_v23 = vld [vmem:[#allocation2 + $0x30] sm:$0xf] }
 0x1ad   :  { %v2149_v34 = vmul.f32 %v2133_v37, %v2069_v51  ;;  %v2134_v35 = vmin.f32 %v2118_v8, 6.0  ;;  %v2100_v57 = vadd.f32 3.0, %v2064_v50  ;;  %v2105_v44 = vadd.f32 3.0, %v2085_v61  ;;  %v2611_v45 = vld [vmem:[#allocation2 + $0x68] sm:$0xf]  ;;  %v6490_v8 = vpop.f32.mrf.mxu0 }
 0x1ae   :  { %v2594_v43 = vsel %vm8520_vm11, %v2446_v30, %v2593_v6  ;;  %v2597_v56 = vsel %vm8526_vm12, %v2447_v40, %v2596_v29  ;;  %v5888_v14 = vpack.c.bf16 %v2160_v46, %v2160_v46  ;;  %v2147_v9 = vmul.f32 %v2131_v47, %v2061_v55  ;;  %v2614_v38 = vld [vmem:[#allocation2 + $0x6c] sm:$0x1] }
 0x1af   :  { %v2165_v53 = vmul.f32 0.16666667, %v2149_v34  ;;  %2595 = vst [vmem:[#allocation2 + $0x40] sm:$0xf] %v2594_v43  ;;  %2598 = vst [vmem:[#allocation2 + $0x44] sm:$0x1] %v2597_v56  ;;  %v2150_v25 = vmul.f32 %v2134_v35, %v2072_v62 }
 0x1b0   :  { %v2116_v12 = vmax.f32 %v2100_v57, 0.0  ;;  %v2121_v22 = vmax.f32 %v2105_v44, 0.0  ;;  %v2425_v42 = vshrl.u32 %v5888_v14, 16  ;;  %v2428_v51 = vshll.u32 %v5888_v14, 16  ;;  %v2602_v56 = vld [vmem:[#allocation2 + $0x5c] sm:$0x1] }
 0x1b1   :  { %v5893_v48 = vpack.c.bf16 %v2165_v53, %v2165_v53  ;;  %v2103_v18 = vadd.f32 3.0, %v8567_v10  ;;  %v2163_v5 = vmul.f32 0.16666667, %v2147_v9  ;;  %v2166_v17 = vmul.f32 0.16666667, %v2150_v25 }
 0x1b2   :  { %v2132_v13 = vmin.f32 %v2116_v12, 6.0  ;;  %v2137_v7 = vmin.f32 %v2121_v22, 6.0  ;;  %v2427_v52 = vrot.slane %v2425_v42, 7  ;;  %v2617_v14 = vld [vmem:[#allocation2 + $0x70] sm:$0xf]  ;;  %v2088_v25 = vadd.f32 %v6490_v8, %v8513_v39 }
 0x1b3   :  { %v2465_v58 = vshrl.u32 %v5893_v48, 16  ;;  %v2468_v24 = vshll.u32 %v5893_v48, 16  ;;  %v2119_v0 = vmax.f32 %v2103_v18, 0.0  ;;  %v5891_v2 = vpack.c.bf16 %v2163_v5, %v2163_v5  ;;  %v2620_v53 = vld [vmem:[#allocation2 + $0x74] sm:$0x1] }
 0x1b4   :  { %v5894_v55 = vpack.c.bf16 %v2166_v17, %v2166_v17  ;;  %v2148_v62 = vmul.f32 %v2132_v13, %v2064_v50  ;;  %v2153_v41 = vmul.f32 %v2137_v7, %v2085_v61  ;;  %v2430_v3 = vor.u32 %v2428_v51, %v2427_v52  ;;  %v2599_v61 = vld [vmem:[#allocation2 + $0x58] sm:$0xf]  ;;  %v2079_v13 = vpop.f32.mrf.mxu0 }
 0x1b5   :  { %v2431_v4 = vrot.slane %v2427_v52, 4  ;;  %v2467_v33 = vrot.slane %v2465_v58, 7  ;;  %v2135_v31 = vmin.f32 %v2119_v0, 6.0  ;;  %v2449_v37 = vshrl.u32 %v5891_v2, 16  ;;  %v3015_v58 = vld [vmem:[#allocation2 + $0x8] sm:$0xf] }
 0x1b6   :  { %v2452_v6 = vshll.u32 %v5891_v2, 16  ;;  %v2473_v29 = vshrl.u32 %v5894_v55, 16  ;;  %v2476_v28 = vshll.u32 %v5894_v55, 16  ;;  %v2582_v30 = vsel %vm8520_vm11, %v2430_v3, %v2581_v23  ;;  %v2605_v55 = vld [vmem:[#allocation2 + $0x60] sm:$0xf] }
 0x1b7   :  { %v2585_v40 = vsel %vm8526_vm12, %v2431_v4, %v2584_v27  ;;  %v2470_v46 = vor.u32 %v2468_v24, %v2467_v33  ;;  %v2471_v50 = vrot.slane %v2467_v33, 4  ;;  %2583 = vst [vmem:[#allocation2 + $0x30] sm:$0xf] %v2582_v30  ;;  %v2451_v34 = vrot.slane %v2449_v37, 7 }
 0x1b8   :  { %2586 = vst [vmem:[#allocation2 + $0x34] sm:$0x1] %v2585_v40  ;;  %v2475_v47 = vrot.slane %v2473_v29, 7  ;;  %v2164_v35 = vmul.f32 0.16666667, %v2148_v62  ;;  %v2151_v9 = vmul.f32 %v2135_v31, %v8567_v10  ;;  %v2106_v17 = vadd.f32 3.0, %v2088_v25 }
 0x1b9   :  { %v2169_v57 = vmul.f32 0.16666667, %v2153_v41  ;;  %v2612_v44 = vsel %vm8520_vm11, %v2470_v46, %v2611_v45  ;;  %v2615_v43 = vsel %vm8526_vm12, %v2471_v50, %v2614_v38  ;;  %v2454_v12 = vor.u32 %v2452_v6, %v2451_v34  ;;  %v2608_v62 = vld [vmem:[#allocation2 + $0x64] sm:$0x1]  ;;  %v2635_v38 = vld [vmem:[#allocation2 + $0x88] sm:$0xf] }
 0x1ba   :  { %2613 = vst [vmem:[#allocation2 + $0x68] sm:$0xf] %v2612_v44  ;;  %2616 = vst [vmem:[#allocation2 + $0x6c] sm:$0x1] %v2615_v43  ;;  %v2455_v22 = vrot.slane %v2451_v34, 4  ;;  %v2478_v42 = vor.u32 %v2476_v28, %v2475_v47  ;;  %v2479_v51 = vrot.slane %v2475_v47, 4  ;;  %v5892_v48 = vpack.c.bf16 %v2164_v35, %v2164_v35 }
 0x1bb   :  { %v5897_v18 = vpack.c.bf16 %v2169_v57, %v2169_v57  ;;  %v2167_v5 = vmul.f32 0.16666667, %v2151_v9  ;;  %v2600_v7 = vsel %vm8520_vm11, %v2454_v12, %v2599_v61  ;;  %v8594_v23 = vrot.slane %v2792_v32, 4  ;;  %v2638_v6 = vld [vmem:[#allocation2 + $0x8c] sm:$0x1] }
 0x1bc   :  { %v2603_v52 = vsel %vm8526_vm12, %v2455_v22, %v2602_v56  ;;  %v2618_v39 = vsel %vm8520_vm11, %v2478_v42, %v2617_v14  ;;  %v2621_v10 = vsel %vm8526_vm12, %v2479_v51, %v2620_v53  ;;  %2601 = vst [vmem:[#allocation2 + $0x58] sm:$0xf] %v2600_v7  ;;  %v2457_v24 = vshrl.u32 %v5892_v48, 16  ;;  %v3016_v47 = vld [vmem:[#allocation2 + $0x10] sm:$0xf] }
 0x1bd   :  { %2604 = vst [vmem:[#allocation2 + $0x5c] sm:$0x1] %v2603_v52  ;;  %2619 = vst [vmem:[#allocation2 + $0x70] sm:$0xf] %v2618_v39  ;;  %v2497_v0 = vshrl.u32 %v5897_v18, 16  ;;  %v8598_v27 = vrot.slane %v2795_v26, 5  ;;  %v5895_v41 = vpack.c.bf16 %v2167_v5, %v2167_v5  ;;  %v2080_v4 = vadd.f32 %v2079_v13, %v8506_v11 }
 0x1be   :  { %2622 = vst [vmem:[#allocation2 + $0x74] sm:$0x1] %v2621_v10  ;;  %v2460_v2 = vshll.u32 %v5892_v48, 16  ;;  %v2122_v3 = vmax.f32 %v2106_v17, 0.0  ;;  %v2459_v33 = vrot.slane %v2457_v24, 7  ;;  %v2500_v31 = vshll.u32 %v5897_v18, 16 }
 0x1bf   :  { %v2499_v45 = vrot.slane %v2497_v0, 7  ;;  %v3048_v37 = vshrl.u32 %v3015_v58, 16  ;;  %v2481_v29 = vshrl.u32 %v5895_v41, 16  ;;  %v2104_v28 = vadd.f32 3.0, %v2080_v4  ;;  %v2623_v43 = vld [vmem:[#allocation2 + $0x78] sm:$0xf] }
 0x1c0   :  { %v2138_v32 = vmin.f32 %v2122_v3, 6.0  ;;  %v3051_v8 = vshll.u32 %v3015_v58, 16  ;;  %v2462_v16 = vor.u32 %v2460_v2, %v2459_v33  ;;  %v2463_v26 = vrot.slane %v2459_v33, 4  ;;  %v2626_v56 = vld [vmem:[#allocation2 + $0x7c] sm:$0x1] }
 0x1c1   :  { %v2502_v30 = vor.u32 %v2500_v31, %v2499_v45  ;;  %v2503_v40 = vrot.slane %v2499_v45, 4  ;;  %v2483_v46 = vrot.slane %v2481_v29, 7  ;;  %v2484_v50 = vshll.u32 %v5895_v41, 16  ;;  %v8609_v14 = vld [vmem:[#allocation2 + $0xc] sm:$0x1] }
 0x1c2   :  { %v2154_v61 = vmul.f32 %v2138_v32, %v2088_v25  ;;  %v2120_v34 = vmax.f32 %v2104_v28, 0.0  ;;  %v2606_v11 = vsel %vm8520_vm11, %v2462_v16, %v2605_v55  ;;  %v2609_v35 = vsel %vm8526_vm12, %v2463_v26, %v2608_v62  ;;  %v2904_v22 = vld [vmem:[#allocation2 + $0x8] sm:$0xe]  ;;  %v3017_v2 = vld [vmem:[#allocation2 + $0x18] sm:$0xf]  ;;  %v6697_v32 = vld [vmem:[%s9637_s2 + $0x1f0] sm:$0xff]  }
 0x1c3   :  { %v2636_v57 = vsel %vm8520_vm11, %v2502_v30, %v2635_v38  ;;  %v2639_v44 = vsel %vm8526_vm12, %v2503_v40, %v2638_v6  ;;  %2607 = vst [vmem:[#allocation2 + $0x60] sm:$0xf] %v2606_v11  ;;  %2610 = vst [vmem:[#allocation2 + $0x64] sm:$0x1] %v2609_v35  ;;  %v2486_v53 = vor.u32 %v2484_v50, %v2483_v46  ;;  %v2487_v9 = vrot.slane %v2483_v46, 4 }
 0x1c4   :  { %2637 = vst [vmem:[#allocation2 + $0x88] sm:$0xf] %v2636_v57  ;;  %2640 = vst [vmem:[#allocation2 + $0x8c] sm:$0x1] %v2639_v44  ;;  %v2170_v25 = vmul.f32 0.16666667, %v2154_v61  ;;  %v5763_v48 = vcombine.low %v3015_v58, %v3016_v47  ;;  %v2798_v18 = vor.u32 %v8598_v27, %v8594_v23  ;;  %v2692_v27 = vsel %vm7035_vm5, %v8451_v15, %v8453_v1 }
 0x1c5   :  { %v2136_v12 = vmin.f32 %v2120_v34, 6.0  ;;  %v3050_v42 = vrot.slane %v3048_v37, 4  ;;  %v3053_v51 = vrot.slane %v3051_v8, 5  ;;  %v2624_v5 = vsel %vm8520_vm11, %v2486_v53, %v2623_v43  ;;  %v2641_v55 = vld [vmem:[#allocation2 + $0x90] sm:$0xf]  ;;  %v6717_v1 = vld [vmem:[%s9637_s2 + $0x198] sm:$0xff]  }
 0x1c6   :  { %v2627_v17 = vsel %vm8526_vm12, %v2487_v9, %v2626_v56  ;;  %v5898_v13 = vpack.c.bf16 %v2170_v25, %v2170_v25  ;;  %2625 = vst [vmem:[#allocation2 + $0x78] sm:$0xf] %v2624_v5  ;;  %v3062_v52 = vshrl.u32 %v3016_v47, 16  ;;  %v3065_v39 = vshll.u32 %v3016_v47, 16  ;;  %4797 = vmatprep.mubr.bf16.mxu1 %v5763_v48  ;;  %v2644_v62 = vld [vmem:[#allocation2 + $0x94] sm:$0x1] }
 0x1c7   :  { %v2152_v7 = vmul.f32 %v2136_v12, %v2080_v4  ;;  %2628 = vst [vmem:[#allocation2 + $0x7c] sm:$0x1] %v2627_v17  ;;  %v5692_v10 = vrot.slane %v2904_v22, 9  ;;  %v2957_v24 = vrot.slane %v8609_v14, 5  ;;  %v3054_v41 = vor.u32 %v3053_v51, %v3050_v42  ;;  %v6693_v4 = vld [vmem:[%s9637_s2 + $0x1b8] sm:$0xff]   ;;  %v6705_v17 = vld [vmem:[%s9637_s2 + $0x1a8] sm:$0xff]  }
 0x1c8   :  { %v2505_v58 = vshrl.u32 %v5898_v13, 16  ;;  %v8627_v33 = vrot.slane %v2798_v18, 4  ;;  %v8631_v45 = vrot.slane %v2801_v21, 5  ;;  %v2508_v38 = vshll.u32 %v5898_v13, 16  ;;  %v8634_v29 = vld [vmem:[#allocation2 + $0x20] sm:$0xf] }
 0x1c9   :  { %v2168_v0 = vmul.f32 0.16666667, %v2152_v7  ;;  %v2958_v3 = vsel %vm7051_vm6, %v5692_v10, %v2957_v24  ;;  %v8639_v28 = vrot.slane %v3062_v52, 4  ;;  %v8641_v8 = vrot.slane %v3065_v39, 5  ;;  %v8643_v26 = vld [vmem:[#allocation2 + $0x8] sm:$0xf] }
 0x1ca   :  { %v2507_v31 = vrot.slane %v2505_v58, 7  ;;  %v5755_v6 = vcombine.low %v8416_v19, %v2958_v3  ;;  %v3076_v16 = vshrl.u32 %v3017_v2, 16  ;;  %v8651_v19 = vsel %vm7051_vm6, %v5699_v54, %v2985_v36  ;;  %v2629_v61 = vld [vmem:[#allocation2 + $0x80] sm:$0xf]  ;;  %v2632_v34 = vld [vmem:[#allocation2 + $0x84] sm:$0x1] }
 0x1cb   :  { %v5896_v37 = vpack.c.bf16 %v2168_v0, %v2168_v0  ;;  %v3079_v46 = vshll.u32 %v3017_v2, 16  ;;  %v8653_v47 = vrot.slane %v3054_v41, 4  ;;  %v5764_v11 = vcombine.low %v3017_v2, %v8634_v29  ;;  %v8671_v43 = vld [vmem:[#allocation2 + $0x10] sm:$0xf]  ;;  %v8673_v56 = vld [vmem:[#allocation2 + $0x18] sm:$0xf] }
 0x1cc   :  { %v2510_v21 = vor.u32 %v2508_v38, %v2507_v31  ;;  %v2511_v30 = vrot.slane %v2507_v31, 4  ;;  %4798 = vmatmul.mubr.bf16.vlgmr.msra.gmra.mxu1 %v5755_v6  ;;  %v2804_v54 = vsel %vm7035_vm5, %v8627_v33, %v8631_v45  ;;  %v2694_v44 = vshrl.u32 %v8643_v26, 16  ;;  %v2666_v22 = vld [vmem:[#allocation2 + $0x1c] sm:$0x1]  ;;  %v2665_v5 = vld [vmem:[#allocation2 + $0x14] sm:$0x1] }
 0x1cd   :  { %v2489_v40 = vshrl.u32 %v5896_v37, 16  ;;  %v2492_v50 = vshll.u32 %v5896_v37, 16  ;;  %6380 = vmatpush3.bf16.msra.mxu1 %v6693_v4  ;;  %v3068_v53 = vor.u32 %v8641_v8, %v8639_v28  ;;  %v8677_v9 = vrot.slane %v3076_v16, 4  ;;  %4805 = vmatprep.mubr.bf16.mxu1 %v5764_v11  ;;  %v2905_v10 = vld [vmem:[#allocation2 + $0x10] sm:$0xe]  ;;  %v6709_v2 = vld [vmem:[%s9637_s2 + $0x1e0] sm:$0xff]  }
 0x1ce   :  { %v2642_v36 = vsel %vm8520_vm11, %v2510_v21, %v2641_v55  ;;  %v2645_v35 = vsel %vm8526_vm12, %v2511_v30, %v2644_v62  ;;  %6381 = vmatprep.subr.bf16.mxu1 %v6697_v32  ;;  %v2697_v25 = vshll.u32 %v8643_v26, 16  ;;  %v2703_v12 = vshll.u32 %v8609_v14, 16  ;;  %v2906_v3 = vld [vmem:[#allocation2 + $0x18] sm:$0xe]  ;;  %v6711_v16 = vld [vmem:[%s9637_s2 + $0x1a0] sm:$0xff]   ;;  %v6696_v15 = vld [vmem:[%s9637_s2 + $0x170] sm:$0xff]  }
 0x1cf   :  { %v2491_v57 = vrot.slane %v2489_v40, 7  ;;  %2643 = vst [vmem:[#allocation2 + $0x90] sm:$0xf] %v2642_v36  ;;  %2646 = vst [vmem:[#allocation2 + $0x94] sm:$0x1] %v2645_v35  ;;  %v8681_v48 = vrot.slane %v3079_v46, 5 }
 0x1d0   :  { %v2696_v18 = vrot.slane %v2694_v44, 4  ;;  %v3090_v13 = vshrl.u32 %v8634_v29, 16  ;;  %v3093_v7 = vshll.u32 %v8634_v29, 16  ;;  %v2699_v52 = vrot.slane %v2697_v25, 5  ;;  %v3020_v36 = vld [vmem:[#allocation2 + $0x30] sm:$0xf] }
 0x1d1   :  { %v2494_v42 = vor.u32 %v2492_v50, %v2491_v57  ;;  %v2495_v51 = vrot.slane %v2491_v57, 4  ;;  %v2708_v39 = vshrl.u32 %v8671_v43, 16  ;;  %6382 = vmatpush3.bf16.msra.mxu1 %v6699_v59  ;;  %v2705_v58 = vrot.slane %v2703_v12, 5  ;;  %v6715_v50 = vld [vmem:[%s9637_s2 + $0x1d8] sm:$0xff]  }
 0x1d2   :  { %v2711_v0 = vshll.u32 %v8671_v43, 16  ;;  %6383 = vmatprep.subr.bf16.mxu1 %v6703_v20  ;;  %v2700_v55 = vor.u32 %v2699_v52, %v2696_v18  ;;  %v2722_v41 = vshrl.u32 %v8673_v56, 16  ;;  %v2725_v63 = vshll.u32 %v8673_v56, 16  ;;  %v3019_v20 = vld [vmem:[#allocation2 + $0x28] sm:$0xf]  ;;  %v6692_v57 = vld [vmem:[%s9637_s2 + $0x138] sm:$0xff]  }
 0x1d3   :  { %v2630_v14 = vsel %vm8520_vm11, %v2494_v42, %v2629_v61  ;;  %v2633_v24 = vsel %vm8526_vm12, %v2495_v51, %v2632_v34  ;;  %v2710_v62 = vrot.slane %v2708_v39, 4  ;;  %v2717_v60 = vshll.u32 %v2665_v5, 16  ;;  %v6751_v42 = vld [vmem:[#allocation2] sm:$0xf]  ;;  %v8739_v52 = vld [vmem:[#allocation2 + $0x28] sm:$0xf] }
 0x1d4   :  { %2631 = vst [vmem:[#allocation2 + $0x80] sm:$0xf] %v2630_v14  ;;  %2634 = vst [vmem:[#allocation2 + $0x84] sm:$0x1] %v2633_v24  ;;  %v2713_v4 = vrot.slane %v2711_v0, 5  ;;  %v2731_v31 = vshll.u32 %v2666_v22, 16  ;;  %v5739_v51 = vcombine.low %v6751_v42, %v8643_v26 }
 0x1d5   :  { %v5693_v38 = vrot.slane %v2905_v10, 9  ;;  %v2701_v37 = vrot.slane %v2700_v55, 4  ;;  %v2724_v6 = vrot.slane %v2722_v41, 4  ;;  %v2727_v29 = vrot.slane %v2725_v63, 5  ;;  %6384 = vmatpush3.bf16.msra.mxu1 %v6705_v17  ;;  %v6721_v39 = vld [vmem:[%s9637_s2 + $0x1d0] sm:$0xff]  }
 0x1d6   :  { %v2961_v32 = vrot.slane %v2665_v5, 5  ;;  %v8702_v21 = vrot.slane %v3090_v13, 4  ;;  %v2714_v30 = vor.u32 %v2713_v4, %v2710_v62  ;;  %v5694_v40 = vrot.slane %v2906_v3, 9  ;;  %6385 = vmatprep.subr.bf16.mxu1 %v6709_v2  ;;  %v2668_v14 = vld [vmem:[#allocation2 + $0x2c] sm:$0x1]  ;;  %v6698_v62 = vld [vmem:[%s9637_s2 + $0x130] sm:$0xff]  }
 0x1d7   :  { %v2965_v46 = vrot.slane %v2666_v22, 5  ;;  %v8707_v61 = vrot.slane %v3093_v7, 5  ;;  %v2706_v34 = vsel %vm7035_vm5, %v2701_v37, %v2705_v58  ;;  %v2728_v11 = vor.u32 %v2727_v29, %v2724_v6  ;;  %v8723_v22 = vld [vmem:[#allocation2 + $0x20] sm:$0xf]  ;;  %v6727_v37 = vld [vmem:[%s9637_s2 + $0x1c8] sm:$0xff]  }
 0x1d8   :  { %v2962_v59 = vsel %vm7051_vm6, %v5693_v38, %v2961_v32  ;;  %v5747_v35 = vcombine.low %v2692_v27, %v2706_v34  ;;  %v2715_v44 = vrot.slane %v2714_v30, 4  ;;  %v2719_v25 = vrot.slane %v2717_v60, 5  ;;  %v2907_v41 = vld [vmem:[#allocation2 + $0x20] sm:$0xe]  ;;  %v6723_v38 = vld [vmem:[%s9637_s2 + $0x190] sm:$0xff]  }
 0x1d9   :  { %v2966_v12 = vsel %vm7051_vm6, %v5694_v40, %v2965_v46  ;;  %v2729_v18 = vrot.slane %v2728_v11, 4  ;;  %v2733_v5 = vrot.slane %v2731_v31, 5  ;;  %6386 = vmatpush3.bf16.msra.mxu1 %v6711_v16  ;;  %v8735_v27 = vrot.slane %v3068_v53, 4  ;;  %v2667_v53 = vld [vmem:[#allocation2 + $0x24] sm:$0x1]  ;;  %v6702_v31 = vld [vmem:[%s9637_s2 + $0x168] sm:$0xff]  }
 0x1da   :  { %v5756_v17 = vcombine.low %v2962_v59, %v2966_v12  ;;  %4700 = vmatprep.mubr.bf16.mxu0 %v5747_v35  ;;  %v2720_v26 = vsel %vm7035_vm5, %v2715_v44, %v2719_v25  ;;  %v3104_v13 = vshrl.u32 %v3019_v20, 16  ;;  %v5765_v7 = vcombine.low %v3019_v20, %v3020_v36  ;;  %6387 = vmatprep.subr.bf16.mxu1 %v6715_v50  ;;  %v2908_v30 = vld [vmem:[#allocation2 + $0x28] sm:$0xe]  ;;  %v3021_v11 = vld [vmem:[#allocation2 + $0x38] sm:$0xf] }
 0x1db   :  { %v3082_v10 = vor.u32 %v8681_v48, %v8677_v9  ;;  %4701 = vmatmul.mubr.bf16.vlgmr.msra.gmra.mxu0 %v5739_v51  ;;  %v2734_v28 = vsel %vm7035_vm5, %v2729_v18, %v2733_v5  ;;  %v3107_v8 = vshll.u32 %v3019_v20, 16  ;;  %v2736_v24 = vshrl.u32 %v8723_v22, 16  ;;  %v8779_v51 = vld [vmem:[#allocation2 + $0x40] sm:$0xf]  ;;  %v6729_v5 = vld [vmem:[%s9637_s2 + $0x188] sm:$0xff]  }
 0x1dc   :  { %4806 = vmatmul.mubr.bf16.gmra.mxu1 %v5756_v17  ;;  %6316 = vmatpush3.bf16.msra.mxu0 %v6692_v57  ;;  %v5748_v58 = vcombine.low %v2720_v26, %v2734_v28  ;;  %v3118_v0 = vshrl.u32 %v3020_v36, 16  ;;  %v3121_v2 = vshll.u32 %v3020_v36, 16  ;;  %v2739_v55 = vshll.u32 %v8723_v22, 16  ;;  %v6704_v57 = vld [vmem:[%s9637_s2 + $0x128] sm:$0xff]   ;;  %v6708_v18 = vld [vmem:[%s9637_s2 + $0x160] sm:$0xff]  }
 0x1dd   :  { %4813 = vmatprep.mubr.bf16.mxu1 %v5765_v7  ;;  %v3096_v63 = vor.u32 %v8707_v61, %v8702_v21  ;;  %6317 = vmatprep.subr.bf16.mxu0 %v6696_v15  ;;  %v2738_v3 = vrot.slane %v2736_v24, 4  ;;  %v2750_v4 = vshrl.u32 %v8739_v52, 16  ;;  %v2753_v60 = vshll.u32 %v8739_v52, 16  ;;  %v8794_v28 = vld [vmem:[#allocation2 + $0x30] sm:$0xf] }
 0x1de   :  { %6388 = vmatpush3.bf16.msra.mxu1 %v6717_v1  ;;  %4708 = vmatprep.mubr.bf16.mxu0 %v5748_v58  ;;  %v8766_v6 = vrot.slane %v3104_v13, 4  ;;  %v2741_v29 = vrot.slane %v2739_v55, 5  ;;  %v2745_v32 = vshll.u32 %v2667_v53, 16  ;;  %v2759_v16 = vshll.u32 %v2668_v14, 16  ;;  %v8801_v58 = vld [vmem:[#allocation2 + $0x38] sm:$0xf] }
 0x1df   :  { %6389 = vmatprep.subr.bf16.mxu1 %v6721_v39  ;;  %v8768_v40 = vrot.slane %v3107_v8, 5  ;;  %v2752_v46 = vrot.slane %v2750_v4, 4  ;;  %v2755_v50 = vrot.slane %v2753_v60, 5  ;;  %v5695_v34 = vrot.slane %v2907_v41, 9  ;;  %v2669_v4 = vld [vmem:[#allocation2 + $0x34] sm:$0x1] }
 0x1e0   :  { %v8770_v59 = vrot.slane %v3118_v0, 4  ;;  %v8772_v20 = vrot.slane %v3121_v2, 5  ;;  %v2742_v36 = vor.u32 %v2741_v29, %v2738_v3  ;;  %6318 = vmatpush3.bf16.msra.mxu0 %v6698_v62  ;;  %v2969_v35 = vrot.slane %v2667_v53, 5  ;;  %v6710_v0 = vld [vmem:[%s9637_s2 + $0x120] sm:$0xff]   ;;  %v6714_v2 = vld [vmem:[%s9637_s2 + $0x158] sm:$0xff]  }
 0x1e1   :  { %v5740_v44 = vcombine.low %v8671_v43, %v8673_v56  ;;  %v2756_v25 = vor.u32 %v2755_v50, %v2752_v46  ;;  %v5696_v12 = vrot.slane %v2908_v30, 9  ;;  %v2973_v42 = vrot.slane %v2668_v14, 5  ;;  %6319 = vmatprep.subr.bf16.mxu0 %v6702_v31  ;;  %v6731_v43 = vld [vmem:[%s9637_s2 + $0x1c0] sm:$0xff]   ;;  %v2670_v60 = vld [vmem:[#allocation2 + $0x3c] sm:$0x1] }
 0x1e2   :  { %6390 = vmatpush3.bf16.msra.mxu1 %v6723_v38  ;;  %v2743_v17 = vrot.slane %v2742_v36, 4  ;;  %v2747_v15 = vrot.slane %v2745_v32, 5  ;;  %v2761_v1 = vrot.slane %v2759_v16, 5  ;;  %v3132_v26 = vshrl.u32 %v3021_v11, 16  ;;  %v6734_v31 = vld [vmem:[%s9637_s2 + $0x180] sm:$0xff]   ;;  %v6716_v29 = vld [vmem:[%s9637_s2 + $0x118] sm:$0xff]  }
 0x1e3   :  { %6391 = vmatprep.subr.bf16.mxu1 %v6727_v37  ;;  %4709 = vmatmul.mubr.bf16.gmra.mxu0 %v5740_v44  ;;  %v2757_v56 = vrot.slane %v2756_v25, 4  ;;  %v2970_v13 = vsel %vm7051_vm6, %v5695_v34, %v2969_v35  ;;  %v2974_v7 = vsel %vm7051_vm6, %v5696_v12, %v2973_v42  ;;  %v3135_v39 = vshll.u32 %v3021_v11, 16  ;;  %v2910_v37 = vld [vmem:[#allocation2 + $0x38] sm:$0xe]  ;;  %v2909_v34 = vld [vmem:[#allocation2 + $0x30] sm:$0xe] }
 0x1e4   :  { %v3110_v8 = vor.u32 %v8768_v40, %v8766_v6  ;;  %v3124_v53 = vor.u32 %v8772_v20, %v8770_v59  ;;  %v5757_v14 = vcombine.low %v2970_v13, %v2974_v7  ;;  %v3146_v24 = vshrl.u32 %v8779_v51, 16  ;;  %6320 = vmatpush3.bf16.msra.mxu0 %v6704_v57  ;;  %v8831_v32 = vld [vmem:[%s9637_s2 + $0x238] sm:$0xff]   ;;  %v6735_v59 = vld [vmem:[%s9637_s2 + $0x100] sm:$0xff]  }
 0x1e5   :  { %v8812_v55 = vrot.slane %v3082_v10, 4  ;;  %v2748_v62 = vsel %vm7035_vm5, %v2743_v17, %v2747_v15  ;;  %v2762_v41 = vsel %vm7035_vm5, %v2757_v56, %v2761_v1  ;;  %v5766_v3 = vcombine.low %v3021_v11, %v8779_v51  ;;  %6321 = vmatprep.subr.bf16.mxu0 %v6708_v18  ;;  %v3023_v44 = vld [vmem:[#allocation2 + $0x58] sm:$0xf]  ;;  %v6720_v18 = vld [vmem:[%s9637_s2 + $0x150] sm:$0xff]  }
 0x1e6   :  { %6392 = vmatpush3.bf16.msra.mxu1 %v6729_v5  ;;  %v5749_v38 = vcombine.low %v2748_v62, %v2762_v41  ;;  %v3149_v9 = vshll.u32 %v8779_v51, 16  ;;  %v2764_v48 = vshrl.u32 %v8794_v28, 16  ;;  %v2767_v10 = vshll.u32 %v8794_v28, 16 }
 0x1e7   :  { %4814 = vmatmul.mubr.bf16.gmra.mxu1 %v5757_v14  ;;  %6393 = vmatprep.subr.bf16.mxu1 %v6731_v43  ;;  %v8833_v16 = vrot.slane %v3132_v26, 4  ;;  %v8835_v30 = vrot.slane %v3135_v39, 5  ;;  %v2778_v46 = vshrl.u32 %v8801_v58, 16  ;;  %v2781_v50 = vshll.u32 %v8801_v58, 16 }
 0x1e8   :  { %4821 = vmatprep.mubr.bf16.mxu1 %v5766_v3  ;;  %4716 = vmatprep.mubr.bf16.mxu0 %v5749_v38  ;;  %v8839_v11 = vrot.slane %v3146_v24, 4  ;;  %v2766_v36 = vrot.slane %v2764_v48, 4  ;;  %v2769_v35 = vrot.slane %v2767_v10, 5  ;;  %v2773_v57 = vshll.u32 %v2669_v4, 16  ;;  %v6722_v24 = vld [vmem:[%s9637_s2 + $0x110] sm:$0xff]  }
 0x1e9   :  { %6322 = vmatpush3.bf16.msra.mxu0 %v6710_v0  ;;  %v5741_v25 = vcombine.low %v8723_v22, %v8739_v52  ;;  %v2780_v12 = vrot.slane %v2778_v46, 4  ;;  %v2783_v42 = vrot.slane %v2781_v50, 5  ;;  %v2787_v51 = vshll.u32 %v2670_v60, 16  ;;  %v3024_v22 = vld [vmem:[#allocation2 + $0x60] sm:$0xf] }
 0x1ea   :  { %6323 = vmatprep.subr.bf16.mxu0 %v6714_v2  ;;  %6394 = vmatpush3.bf16.msra.mxu1 %v6734_v31  ;;  %v3151_v5 = vrot.slane %v3149_v9, 5  ;;  %v2770_v17 = vor.u32 %v2769_v35, %v2766_v36  ;;  %v5697_v15 = vrot.slane %v2909_v34, 9  ;;  %v2977_v1 = vrot.slane %v2669_v4, 5  ;;  %v8856_v3 = vld [vmem:[#allocation2 + $0x58] sm:$0xf]  ;;  %v6726_v4 = vld [vmem:[%s9637_s2 + $0x148] sm:$0xff]  }
 0x1eb   :  { %6555 = vmatprep.subr.bf16.mxu1 %v8831_v32  ;;  %4717 = vmatmul.mubr.bf16.gmra.mxu0 %v5741_v25  ;;  %v2784_v26 = vor.u32 %v2783_v42, %v2780_v12  ;;  %v5698_v43 = vrot.slane %v2910_v37, 9  ;;  %v2981_v56 = vrot.slane %v2670_v60, 5  ;;  %v3160_v52 = vshrl.u32 %v3023_v44, 16  ;;  %v2672_v48 = vld [vmem:[#allocation2 + $0x5c] sm:$0x1]  ;;  %v6728_v35 = vld [vmem:[%s9637_s2 + $0x108] sm:$0xff]  }
 0x1ec   :  { %v2771_v13 = vrot.slane %v2770_v17, 4  ;;  %v2775_v7 = vrot.slane %v2773_v57, 5  ;;  %v2978_v39 = vsel %vm7051_vm6, %v5697_v15, %v2977_v1  ;;  %v3163_v14 = vshll.u32 %v3023_v44, 16  ;;  %v2912_v10 = vld [vmem:[#allocation2 + $0x58] sm:$0xe]  ;;  %v6733_v42 = vld [vmem:[%s9637_s2 + $0x140] sm:$0xff]  }
 0x1ed   :  { %6324 = vmatpush3.bf16.msra.mxu0 %v6716_v29  ;;  %v3138_v0 = vor.u32 %v8835_v30, %v8833_v16  ;;  %v2785_v2 = vrot.slane %v2784_v26, 4  ;;  %v2789_v62 = vrot.slane %v2787_v51, 5  ;;  %v2982_v41 = vsel %vm7051_vm6, %v5698_v43, %v2981_v56  ;;  %v3025_v46 = vld [vmem:[#allocation2 + $0x68] sm:$0xf]  ;;  %v3026_v17 = vld [vmem:[#allocation2 + $0x70] sm:$0xf] }
 0x1ee   :  { %6325 = vmatprep.subr.bf16.mxu0 %v6720_v18  ;;  %v3152_v60 = vor.u32 %v3151_v5, %v8839_v11  ;;  %v2776_v31 = vsel %vm7035_vm5, %v2771_v13, %v2775_v7  ;;  %v5758_v38 = vcombine.low %v2978_v39, %v2982_v41  ;;  %v3174_v9 = vshrl.u32 %v3024_v22, 16  ;;  %v8885_v1 = vld [vmem:[#allocation2 + $0x68] sm:$0xf]  ;;  %v2674_v7 = vld [vmem:[#allocation2 + $0x6c] sm:$0x1] }
 0x1ef   :  { %v2790_v37 = vsel %vm7035_vm5, %v2785_v2, %v2789_v62  ;;  %v8866_v29 = vrot.slane %v3160_v52, 4  ;;  %v3177_v16 = vshll.u32 %v3024_v22, 16  ;;  %v5767_v30 = vcombine.low %v3023_v44, %v3024_v22  ;;  %v2914_v41 = vld [vmem:[#allocation2 + $0x68] sm:$0xe] }
 0x1f0   :  { %v5750_v50 = vcombine.low %v2776_v31, %v2790_v37  ;;  %4822 = vmatmul.mubr.bf16.gmra.mxu1 %v5758_v38  ;;  %v8868_v34 = vrot.slane %v3163_v14, 5  ;;  %v2806_v11 = vshrl.u32 %v8856_v3, 16  ;;  %v2809_v36 = vshll.u32 %v8856_v3, 16  ;;  %v2913_v38 = vld [vmem:[#allocation2 + $0x60] sm:$0xe] }
 0x1f1   :  { %6326 = vmatpush3.bf16.msra.mxu0 %v6722_v24  ;;  %4829 = vmatprep.mubr.bf16.mxu1 %v5767_v30  ;;  %v5742_v57 = vcombine.low %v8794_v28, %v8801_v58  ;;  %v2815_v25 = vshll.u32 %v2672_v48, 16  ;;  %v5700_v44 = vrot.slane %v2912_v10, 9  ;;  %v2989_v12 = vrot.slane %v2672_v48, 5  ;;  %v6752_v37 = vld [vmem:[#allocation2 + $0x50] sm:$0xf] }
 0x1f2   :  { %6327 = vmatprep.subr.bf16.mxu0 %v6726_v4  ;;  %v8883_v51 = vrot.slane %v3096_v63, 4  ;;  %4724 = vmatprep.mubr.bf16.mxu0 %v5750_v50  ;;  %v2808_v18 = vrot.slane %v2806_v11, 4  ;;  %v2811_v5 = vrot.slane %v2809_v36, 5  ;;  %v3188_v15 = vshrl.u32 %v3025_v46, 16  ;;  %v8901_v63 = vld [vmem:[#allocation2 + $0x60] sm:$0xf] }
 0x1f3   :  { %v8890_v28 = vrot.slane %v3110_v8, 4  ;;  %v8895_v58 = vrot.slane %v3124_v53, 4  ;;  %v8897_v21 = vrot.slane %v3138_v0, 4  ;;  %4725 = vmatmul.mubr.bf16.gmra.mxu0 %v5742_v57  ;;  %v2990_v61 = vsel %vm7051_vm6, %v5700_v44, %v2989_v12  ;;  %v2673_v8 = vld [vmem:[#allocation2 + $0x64] sm:$0x1] }
 0x1f4   :  { %v8903_v26 = vrot.slane %v3152_v60, 4  ;;  %v8905_v43 = vrot.slane %v3174_v9, 4  ;;  %v8907_v6 = vrot.slane %v3177_v16, 5  ;;  %v2812_v40 = vor.u32 %v2811_v5, %v2808_v18  ;;  %v3027_v36 = vld [vmem:[#allocation2 + $0x78] sm:$0xf] }
 0x1f5   :  { %6328 = vmatpush3.bf16.msra.mxu0 %v6728_v35  ;;  %v3166_v20 = vor.u32 %v8868_v34, %v8866_v29  ;;  %v2817_v53 = vrot.slane %v2815_v25, 5  ;;  %v5759_v56 = vcombine.low %v8651_v19, %v2990_v61  ;;  %v3191_v22 = vshll.u32 %v3025_v46, 16 }
 0x1f6   :  { %6329 = vmatprep.subr.bf16.mxu0 %v6733_v42  ;;  %v2813_v52 = vrot.slane %v2812_v40, 4  ;;  %v8915_v13 = vrot.slane %v3188_v15, 4  ;;  %v2820_v39 = vshrl.u32 %v8901_v63, 16  ;;  %v2823_v14 = vshll.u32 %v8901_v63, 16  ;;  %v3028_v42 = vld [vmem:[#allocation2 + $0x80] sm:$0xf] }
 0x1f7   :  { %v3202_v24 = vshrl.u32 %v3026_v17, 16  ;;  %v5768_v0 = vcombine.low %v3025_v46, %v3026_v17  ;;  %v2829_v2 = vshll.u32 %v2673_v8, 16  ;;  %v2834_v62 = vshrl.u32 %v8885_v1, 16 }
 0x1f8   :  { %v2818_v4 = vsel %vm7035_vm5, %v2813_v52, %v2817_v53  ;;  %4830 = vmatmul.mubr.bf16.gmra.mxu1 %v5759_v56  ;;  %v2822_v19 = vrot.slane %v2820_v39, 4  ;;  %v2825_v60 = vrot.slane %v2823_v14, 5  ;;  %v2837_v31 = vshll.u32 %v8885_v1, 16 }
 0x1f9   :  { %6330 = vmatpush3.bf16.msra.mxu0 %v6735_v59  ;;  %v5751_v9 = vcombine.low %v2804_v54, %v2818_v4  ;;  %v8928_v48 = vrot.slane %v3191_v22, 5  ;;  %v3205_v10 = vshll.u32 %v3026_v17, 16  ;;  %4837 = vmatprep.mubr.bf16.mxu1 %v5768_v0  ;;  %v5743_v16 = vcombine.low %v6752_v37, %v8856_v3  ;;  %v8940_v59 = vld [vmem:[#allocation2 + $0x70] sm:$0xf]  ;;  %v2676_v4 = vld [vmem:[#allocation2 + $0x7c] sm:$0x1] }
 0x1fa   :  { %6523 = vmatprep.subr.bf16.mxu0 %v8831_v32  ;;  %v2826_v30 = vor.u32 %v2825_v60, %v2822_v19  ;;  %v2836_v46 = vrot.slane %v2834_v62, 4  ;;  %v2839_v50 = vrot.slane %v2837_v31, 5  ;;  %v2843_v11 = vshll.u32 %v2674_v7, 16 }
 0x1fb   :  { %4732 = vmatprep.mubr.bf16.mxu0 %v5751_v9  ;;  %v8932_v35 = vrot.slane %v3202_v24, 4  ;;  %v5701_v57 = vrot.slane %v2913_v38, 9  ;;  %v2993_v33 = vrot.slane %v2673_v8, 5  ;;  %v5702_v45 = vrot.slane %v2914_v41, 9  ;;  %v2915_v38 = vld [vmem:[#allocation2 + $0x70] sm:$0xe] }
 0x1fc   :  { %4733 = vmatmul.mubr.bf16.gmra.mxu0 %v5743_v16  ;;  %v2827_v54 = vrot.slane %v2826_v30, 4  ;;  %v2831_v25 = vrot.slane %v2829_v2, 5  ;;  %v2840_v44 = vor.u32 %v2839_v50, %v2836_v46  ;;  %v2997_v12 = vrot.slane %v2674_v7, 5  ;;  %v8946_v7 = vld [vmem:[#allocation2 + $0x78] sm:$0xf] }
 0x1fd   :  { %v3207_v3 = vrot.slane %v3205_v10, 5  ;;  %v2994_v18 = vsel %vm7051_vm6, %v5701_v57, %v2993_v33  ;;  %v3216_v5 = vshrl.u32 %v3027_v36, 16  ;;  %v3219_v17 = vshll.u32 %v3027_v36, 16  ;;  %v2675_v2 = vld [vmem:[#allocation2 + $0x74] sm:$0x1] }
 0x1fe   :  { %v2832_v15 = vsel %vm7035_vm5, %v2827_v54, %v2831_v25  ;;  %v2841_v61 = vrot.slane %v2840_v44, 4  ;;  %v2845_v40 = vrot.slane %v2843_v11, 5  ;;  %v2998_v8 = vsel %vm7051_vm6, %v5702_v45, %v2997_v12  ;;  %v2916_v16 = vld [vmem:[#allocation2 + $0x78] sm:$0xe]  ;;  %v8966_v25 = vld [vmem:[#allocation2 + $0x88] sm:$0xf] }
 0x1ff   :  { %v3180_v53 = vor.u32 %v8907_v6, %v8905_v43  ;;  %v3194_v56 = vor.u32 %v8928_v48, %v8915_v13  ;;  %v5760_v22 = vcombine.low %v2994_v18, %v2998_v8  ;;  %v3230_v52 = vshrl.u32 %v3028_v42, 16  ;;  %v8972_v18 = vld [vmem:[#allocation2 + $0x90] sm:$0xf] }
 0x200   :  { %v2846_v39 = vsel %vm7035_vm5, %v2841_v61, %v2845_v40  ;;  %v3218_v14 = vrot.slane %v3216_v5, 4  ;;  %v3233_v24 = vshll.u32 %v3028_v42, 16  ;;  %v5769_v0 = vcombine.low %v3027_v36, %v3028_v42 }
 0x201   :  { %v5752_v62 = vcombine.low %v2832_v15, %v2846_v39  ;;  %4838 = vmatmul.mubr.bf16.gmra.mxu1 %v5760_v22  ;;  %v3221_v41 = vrot.slane %v3219_v17, 5  ;;  %v2848_v43 = vshrl.u32 %v8940_v59, 16  ;;  %v2851_v6 = vshll.u32 %v8940_v59, 16 }
 0x202   :  { %v3208_v13 = vor.u32 %v3207_v3, %v8932_v35  ;;  %4845 = vmatprep.mubr.bf16.mxu1 %v5769_v0  ;;  %v5744_v19 = vcombine.low %v8901_v63, %v8885_v1  ;;  %v2862_v60 = vshrl.u32 %v8946_v7, 16  ;;  %v2865_v31 = vshll.u32 %v8946_v7, 16 }
 0x203   :  { %4740 = vmatprep.mubr.bf16.mxu0 %v5752_v62  ;;  %v8957_v9 = vrot.slane %v3230_v52, 4  ;;  %v2850_v48 = vrot.slane %v2848_v43, 4  ;;  %v2853_v10 = vrot.slane %v2851_v6, 5  ;;  %v2857_v37 = vshll.u32 %v2675_v2, 16 }
 0x204   :  { %v8959_v30 = vrot.slane %v3233_v24, 5  ;;  %4741 = vmatmul.mubr.bf16.gmra.mxu0 %v5744_v19  ;;  %v2864_v46 = vrot.slane %v2862_v60, 4  ;;  %v2867_v50 = vrot.slane %v2865_v31, 5  ;;  %v2871_v11 = vshll.u32 %v2676_v4, 16  ;;  %v2678_v24 = vld [vmem:[#allocation2 + $0x8c] sm:$0x1] }
 0x205   :  { %v3222_v36 = vor.u32 %v3221_v41, %v3218_v14  ;;  %v2854_v1 = vor.u32 %v2853_v10, %v2850_v48  ;;  %v5703_v63 = vrot.slane %v2915_v38, 9  ;;  %v3001_v35 = vrot.slane %v2675_v2, 5  ;;  %v2917_v60 = vld [vmem:[#allocation2 + $0x80] sm:$0xe] }
 0x206   :  { %v8964_v57 = vrot.slane %v3166_v20, 4  ;;  %v2868_v33 = vor.u32 %v2867_v50, %v2864_v46  ;;  %v5704_v45 = vrot.slane %v2916_v16, 9  ;;  %v3005_v54 = vrot.slane %v2676_v4, 5  ;;  %v8978_v20 = vld [vmem:[#allocation2 + $0x80] sm:$0xf] }
 0x207   :  { %v8968_v44 = vrot.slane %v3180_v53, 4  ;;  %v8970_v12 = vrot.slane %v3194_v56, 4  ;;  %v2855_v42 = vrot.slane %v2854_v1, 4  ;;  %v2859_v3 = vrot.slane %v2857_v37, 5  ;;  %v8986_v53 = vld [vmem:[#allocation2 + $0x88] sm:$0xf] }
 0x208   :  { %v2869_v5 = vrot.slane %v2868_v33, 4  ;;  %v2873_v17 = vrot.slane %v2871_v11, 5  ;;  %v3002_v29 = vsel %vm7051_vm6, %v5703_v63, %v3001_v35  ;;  %v3006_v34 = vsel %vm7051_vm6, %v5704_v45, %v3005_v54  ;;  %v2677_v56 = vld [vmem:[#allocation2 + $0x84] sm:$0x1]  ;;  %v8998_v4 = vld [vmem:[#allocation2 + $0x10] sm:$0xf] }
 0x209   :  { %v8980_v15 = vrot.slane %v3208_v13, 4  ;;  %v8982_v61 = vrot.slane %v3222_v36, 4  ;;  %v3236_v40 = vor.u32 %v8959_v30, %v8957_v9  ;;  %v5761_v8 = vcombine.low %v3002_v29, %v3006_v34  ;;  %v2918_v37 = vld [vmem:[#allocation2 + $0x88] sm:$0xe]  ;;  %v9008_v63 = vld [vmem:[#allocation2 + $0x18] sm:$0xf] }
 0x20a   :  { %v2860_v22 = vsel %vm7035_vm5, %v2855_v42, %v2859_v3  ;;  %v2874_v52 = vsel %vm7035_vm5, %v2869_v5, %v2873_v17  ;;  %v3244_v39 = vshrl.u32 %v8966_v25, 16  ;;  %v5770_v14 = vcombine.low %v8966_v25, %v8972_v18  ;;  %v9010_v54 = vld [vmem:[#allocation2 + $0x14] sm:$0x1]  ;;  %v9015_v17 = vld [vmem:[#allocation2 + $0x1c] sm:$0x1] }
 0x20b   :  { %v5753_v0 = vcombine.low %v2860_v22, %v2874_v52  ;;  %4846 = vmatmul.mubr.bf16.gmra.mxu1 %v5761_v8  ;;  %v3247_v2 = vshll.u32 %v8966_v25, 16  ;;  %v2876_v62 = vshrl.u32 %v8978_v20, 16  ;;  %v2879_v41 = vshll.u32 %v8978_v20, 16  ;;  %v3031_v52 = vld [vmem:[#allocation2 + $0xc] sm:$0x1] }
 0x20c   :  { %4853 = vmatprep.mubr.bf16.mxu1 %v5770_v14  ;;  %v5745_v43 = vcombine.low %v8940_v59, %v8946_v7  ;;  %v2885_v6 = vshll.u32 %v2677_v56, 16  ;;  %v2890_v13 = vshrl.u32 %v8986_v53, 16  ;;  %v2893_v19 = vshll.u32 %v8986_v53, 16 }
 0x20d   :  { %4748 = vmatprep.mubr.bf16.mxu0 %v5753_v0  ;;  %v3258_v31 = vshrl.u32 %v8972_v18, 16  ;;  %v2878_v38 = vrot.slane %v2876_v62, 4  ;;  %v2881_v48 = vrot.slane %v2879_v41, 5  ;;  %v2899_v10 = vshll.u32 %v2678_v24, 16  ;;  %v3032_v62 = vld [vmem:[#allocation2 + $0x14] sm:$0x1] }
 0x20e   :  { %v9005_v16 = vrot.slane %v3244_v39, 4  ;;  %v3261_v46 = vshll.u32 %v8972_v18, 16  ;;  %4749 = vmatmul.mubr.bf16.gmra.mxu0 %v5745_v43  ;;  %v2892_v50 = vrot.slane %v2890_v13, 4  ;;  %v2895_v59 = vrot.slane %v2893_v19, 5  ;;  %v3271_v41 = vld [vmem:[#allocation2 + $0x8] sm:$0xe] }
 0x20f   :  { %v2882_v7 = vor.u32 %v2881_v48, %v2878_v38  ;;  %v2887_v11 = vrot.slane %v2885_v6, 5  ;;  %v5705_v36 = vrot.slane %v2917_v60, 9  ;;  %v3009_v1 = vrot.slane %v2677_v56, 5  ;;  %v3272_v60 = vld [vmem:[#allocation2 + $0x10] sm:$0xe] }
 0x210   :  { %v2896_v35 = vor.u32 %v2895_v59, %v2892_v50  ;;  %v5706_v33 = vrot.slane %v2918_v37, 9  ;;  %v3013_v45 = vrot.slane %v2678_v24, 5  ;;  %v3417_v25 = vshrl.u32 %v8998_v4, 16  ;;  %v6738_v18 = vld [vmem:[%s9637_s2 + $0x230] sm:$0xff]  }
 0x211   :  { %v2883_v42 = vrot.slane %v2882_v7, 4  ;;  %v2901_v3 = vrot.slane %v2899_v10, 5  ;;  %v3010_v5 = vsel %vm7051_vm6, %v5705_v36, %v3009_v1  ;;  %v3420_v29 = vshll.u32 %v8998_v4, 16  ;;  %v9034_v36 = vld [vmem:[#allocation2 + $0x20] sm:$0xf] }
 0x212   :  { %v2897_v34 = vrot.slane %v2896_v35, 4  ;;  %v3014_v8 = vsel %vm7051_vm6, %v5706_v33, %v3013_v45  ;;  %v3419_v56 = vrot.slane %v3417_v25, 4  ;;  %v3431_v22 = vshrl.u32 %v9008_v63, 16 }
 0x213   :  { %v2888_v39 = vsel %vm7035_vm5, %v2883_v42, %v2887_v11  ;;  %v5762_v14 = vcombine.low %v3010_v5, %v3014_v8  ;;  %v3422_v24 = vrot.slane %v3420_v29, 5  ;;  %v3426_v0 = vshll.u32 %v9010_v54, 16 }
 0x214   :  { %v2902_v43 = vsel %vm7035_vm5, %v2897_v34, %v2901_v3  ;;  %v3433_v6 = vrot.slane %v3431_v22, 4  ;;  %v3434_v13 = vshll.u32 %v9008_v63, 16  ;;  %v3440_v19 = vshll.u32 %v9015_v17, 16  ;;  %v9036_v3 = vld [vmem:[#allocation2 + $0x28] sm:$0xf] }
 0x215   :  { %v9028_v38 = vrot.slane %v3247_v2, 5  ;;  %v9030_v48 = vrot.slane %v3258_v31, 4  ;;  %v5754_v10 = vcombine.low %v2888_v39, %v2902_v43  ;;  %4854 = vmatmul.mubr.bf16.gmra.mxu1 %v5762_v14  ;;  %v3423_v37 = vor.u32 %v3422_v24, %v3419_v56  ;;  %v9038_v34 = vld [vmem:[#allocation2 + $0x24] sm:$0x1]  ;;  %v9048_v39 = vld [vmem:[#allocation2 + $0x2c] sm:$0x1] }
 0x216   :  { %v3436_v50 = vrot.slane %v3434_v13, 5  ;;  %v5746_v59 = vcombine.low %v8978_v20, %v8986_v53  ;;  %v3057_v7 = vshll.u32 %v3031_v52, 16  ;;  %v3071_v11 = vshll.u32 %v3032_v62, 16 }
 0x217   :  { %4756 = vmatprep.mubr.bf16.mxu0 %v5754_v10  ;;  %v3424_v1 = vrot.slane %v3423_v37, 4  ;;  %v5707_v35 = vrot.slane %v3271_v41, 9  ;;  %v3321_v33 = vrot.slane %v3031_v52, 5  ;;  %v5708_v45 = vrot.slane %v3272_v60, 9  ;;  %v3033_v37 = vld [vmem:[#allocation2 + $0x1c] sm:$0x1] }
 0x218   :  { %v3428_v2 = vrot.slane %v3426_v0, 5  ;;  %v3437_v25 = vor.u32 %v3436_v50, %v3433_v6  ;;  %v3442_v31 = vrot.slane %v3440_v19, 5  ;;  %4757 = vmatmul.mubr.bf16.gmra.mxu0 %v5746_v59  ;;  %v3325_v42 = vrot.slane %v3032_v62, 5  ;;  %v3034_v50 = vld [vmem:[#allocation2 + $0x24] sm:$0x1] }
 0x219   :  { %v3059_v5 = vrot.slane %v3057_v7, 5  ;;  %v3073_v29 = vrot.slane %v3071_v11, 5  ;;  %v3445_v20 = vshrl.u32 %v9034_v36, 16  ;;  %v3448_v53 = vshll.u32 %v9034_v36, 16 }
 0x21a   :  { %v3429_v8 = vsel %vm7035_vm5, %v3424_v1, %v3428_v2  ;;  %v3438_v56 = vrot.slane %v3437_v25, 4  ;;  %v3322_v22 = vsel %vm7051_vm6, %v5707_v35, %v3321_v33  ;;  %v3326_v52 = vsel %vm7051_vm6, %v5708_v45, %v3325_v42  ;;  %v3273_v35 = vld [vmem:[#allocation2 + $0x18] sm:$0xe]  ;;  %v3274_v45 = vld [vmem:[#allocation2 + $0x20] sm:$0xe] }
 0x21b   :  { %v3074_v14 = vsel %vm7035_vm5, %v8735_v27, %v3073_v29  ;;  %v5779_v24 = vcombine.low %v3322_v22, %v3326_v52  ;;  %v3447_v0 = vrot.slane %v3445_v20, 4  ;;  %v3450_v62 = vrot.slane %v3448_v53, 5  ;;  %v9085_v20 = vld [vmem:[#allocation2 + $0x34] sm:$0x1]  ;;  %v6740_v52 = vld [vmem:[%s9637_s2 + $0x228] sm:$0xff]  }
 0x21c   :  { %v3443_v41 = vsel %vm7035_vm5, %v3438_v56, %v3442_v31  ;;  %v3454_v43 = vshll.u32 %v9038_v34, 16  ;;  %v3459_v6 = vshrl.u32 %v9036_v3, 16  ;;  %v3462_v13 = vshll.u32 %v9036_v3, 16 }
 0x21d   :  { %v9060_v19 = vrot.slane %v3261_v46, 5  ;;  %v5795_v60 = vcombine.low %v3429_v8, %v3443_v41  ;;  %4894 = vmatprep.mubr.bf16.mxu0 %v5779_v24  ;;  %v3451_v10 = vor.u32 %v3450_v62, %v3447_v0  ;;  %v3468_v27 = vshll.u32 %v9048_v39, 16 }
 0x21e   :  { %v5787_v59 = vcombine.low %v8998_v4, %v9008_v63  ;;  %v3060_v7 = vsel %vm7035_vm5, %v8653_v47, %v3059_v5  ;;  %v3461_v11 = vrot.slane %v3459_v6, 4  ;;  %v3464_v1 = vrot.slane %v3462_v13, 5  ;;  %v9078_v47 = vld [vmem:[#allocation2 + $0x30] sm:$0xf]  ;;  %v9080_v5 = vld [vmem:[#allocation2 + $0x38] sm:$0xf] }
 0x21f   :  { %v9074_v46 = vrot.slane %v3236_v40, 4  ;;  %v3250_v33 = vor.u32 %v9028_v38, %v9005_v16  ;;  %4991 = vmatprep.mubr.bf16.mxu1 %v5795_v60  ;;  %v3452_v4 = vrot.slane %v3451_v10, 4  ;;  %v5771_v63 = vcombine.low %v3060_v7, %v3074_v14  ;;  %v9162_v16 = vld [vmem:[#allocation2 + $0x60] sm:$0xf] }
 0x220   :  { %4992 = vmatmul.mubr.bf16.vlgmr.msra.gmra.mxu1 %v5787_v59  ;;  %v3456_v2 = vrot.slane %v3454_v43, 5  ;;  %v3465_v25 = vor.u32 %v3464_v1, %v3461_v11  ;;  %v3085_v31 = vshll.u32 %v3033_v37, 16  ;;  %v3099_v42 = vshll.u32 %v3034_v50, 16  ;;  %v9098_v43 = vld [vmem:[#allocation2 + $0x3c] sm:$0x1] }
 0x221   :  { %v3264_v9 = vor.u32 %v9060_v19, %v9030_v48  ;;  %v3470_v30 = vrot.slane %v3468_v27, 5  ;;  %4895 = vmatmul.mubr.bf16.vlgmr.msra.gmra.mxu0 %v5771_v63  ;;  %v5709_v40 = vrot.slane %v3273_v35, 9  ;;  %v3329_v29 = vrot.slane %v3033_v37, 5  ;;  %6563 = vmatpush3.bf16.msra.mxu1 %v8831_v32  ;;  %v3036_v59 = vld [vmem:[#allocation2 + $0x34] sm:$0x1]  ;;  %v6742_v63 = vld [vmem:[%s9637_s2 + $0x220] sm:$0xff]  }
 0x222   :  { %v3457_v53 = vsel %vm7035_vm5, %v3452_v4, %v3456_v2  ;;  %v3466_v8 = vrot.slane %v3465_v25, 4  ;;  %v3087_v56 = vrot.slane %v3085_v31, 5  ;;  %v5710_v22 = vrot.slane %v3274_v45, 9  ;;  %6524 = vmatpush3.bf16.msra.mxu0 %v8831_v32  ;;  %6556 = vmatprep.subr.bf16.mxu1 %v6738_v18  ;;  %v3275_v4 = vld [vmem:[#allocation2 + $0x28] sm:$0xe] }
 0x223   :  { %v3101_v14 = vrot.slane %v3099_v42, 5  ;;  %v3330_v24 = vsel %vm7051_vm6, %v5709_v40, %v3329_v29  ;;  %v3333_v0 = vrot.slane %v3034_v50, 5  ;;  %v3473_v62 = vshrl.u32 %v9078_v47, 16  ;;  %6525 = vmatprep.subr.bf16.mxu0 %v6738_v18  ;;  %v3035_v50 = vld [vmem:[#allocation2 + $0x2c] sm:$0x1] }
 0x224   :  { %v3471_v41 = vsel %vm7035_vm5, %v3466_v8, %v3470_v30  ;;  %v3476_v32 = vshll.u32 %v9078_v47, 16  ;;  %v3482_v6 = vshll.u32 %v9085_v20, 16  ;;  %v3487_v13 = vshrl.u32 %v9080_v5, 16  ;;  %v9118_v40 = vld [vmem:[#allocation2 + $0x40] sm:$0xf] }
 0x225   :  { %v5796_v60 = vcombine.low %v3457_v53, %v3471_v41  ;;  %v3334_v10 = vsel %vm7051_vm6, %v5710_v22, %v3333_v0  ;;  %v3475_v27 = vrot.slane %v3473_v62, 4  ;;  %v3490_v37 = vshll.u32 %v9080_v5, 16  ;;  %6564 = vmatpush3.bf16.msra.mxu1 %v6738_v18  ;;  %v9127_v62 = vld [vmem:[#allocation2 + $0x48] sm:$0xf]  ;;  %v3280_v19 = vld [vmem:[#allocation2 + $0x60] sm:$0xe] }
 0x226   :  { %v5780_v7 = vcombine.low %v3330_v24, %v3334_v10  ;;  %v5788_v11 = vcombine.low %v9034_v36, %v9036_v3  ;;  %v3478_v1 = vrot.slane %v3476_v32, 5  ;;  %v3489_v35 = vrot.slane %v3487_v13, 4  ;;  %6526 = vmatpush3.bf16.msra.mxu0 %v6738_v18  ;;  %6557 = vmatprep.subr.bf16.mxu1 %v6740_v52  ;;  %v3276_v3 = vld [vmem:[#allocation2 + $0x30] sm:$0xe]  ;;  %v9120_v24 = vld [vmem:[#allocation2 + $0x44] sm:$0x1] }
 0x227   :  { %4999 = vmatprep.mubr.bf16.mxu1 %v5796_v60  ;;  %v3492_v45 = vrot.slane %v3490_v37, 5  ;;  %v3496_v2 = vshll.u32 %v9098_v43, 16  ;;  %v3088_v25 = vsel %vm7035_vm5, %v8812_v55, %v3087_v56  ;;  %v3102_v36 = vsel %vm7035_vm5, %v8883_v51, %v3101_v14  ;;  %6527 = vmatprep.subr.bf16.mxu0 %v6740_v52  ;;  %v9125_v55 = vld [vmem:[%s9637_s2 + $0x218] sm:$0xff]  }
 0x228   :  { %4902 = vmatprep.mubr.bf16.mxu0 %v5780_v7  ;;  %5000 = vmatmul.mubr.bf16.gmra.mxu1 %v5788_v11  ;;  %v3479_v18 = vor.u32 %v3478_v1, %v3475_v27  ;;  %v5772_v31 = vcombine.low %v3088_v25, %v3102_v36  ;;  %v3113_v42 = vshll.u32 %v3035_v50, 16  ;;  %v3127_v30 = vshll.u32 %v3036_v59, 16  ;;  %v9140_v11 = vld [vmem:[#allocation2 + $0x4c] sm:$0x1]  ;;  %v3038_v25 = vld [vmem:[#allocation2 + $0x44] sm:$0x1] }
 0x229   :  { %v3484_v29 = vrot.slane %v3482_v6, 5  ;;  %v3493_v53 = vor.u32 %v3492_v45, %v3489_v35  ;;  %v5711_v8 = vrot.slane %v3275_v4, 9  ;;  %v3337_v22 = vrot.slane %v3035_v50, 5  ;;  %6565 = vmatpush3.bf16.msra.mxu1 %v6740_v52 }
 0x22a   :  { %v3480_v51 = vrot.slane %v3479_v18, 4  ;;  %v3498_v56 = vrot.slane %v3496_v2, 5  ;;  %4903 = vmatmul.mubr.bf16.gmra.mxu0 %v5772_v31  ;;  %v3115_v14 = vrot.slane %v3113_v42, 5  ;;  %v5712_v0 = vrot.slane %v3276_v3, 9  ;;  %6558 = vmatprep.subr.bf16.mxu1 %v6742_v63  ;;  %v3037_v2 = vld [vmem:[#allocation2 + $0x3c] sm:$0x1] }
 0x22b   :  { %v3494_v41 = vrot.slane %v3493_v53, 4  ;;  %v3129_v32 = vrot.slane %v3127_v30, 5  ;;  %v3338_v6 = vsel %vm7051_vm6, %v5711_v8, %v3337_v22  ;;  %v3341_v13 = vrot.slane %v3036_v59, 5  ;;  %6528 = vmatpush3.bf16.msra.mxu0 %v6740_v52  ;;  %v3277_v42 = vld [vmem:[#allocation2 + $0x38] sm:$0xe]  ;;  %v6746_v30 = vld [vmem:[%s9637_s2 + $0x210] sm:$0xff]  }
 0x22c   :  { %v3485_v60 = vsel %vm7035_vm5, %v3480_v51, %v3484_v29  ;;  %v3501_v10 = vshrl.u32 %v9118_v40, 16  ;;  %v3504_v27 = vshll.u32 %v9118_v40, 16  ;;  %v3510_v37 = vshll.u32 %v9120_v24, 16  ;;  %6529 = vmatprep.subr.bf16.mxu0 %v6742_v63 }
 0x22d   :  { %v3499_v50 = vsel %vm7035_vm5, %v3494_v41, %v3498_v56  ;;  %v3342_v7 = vsel %vm7051_vm6, %v5712_v0, %v3341_v13  ;;  %v3515_v52 = vshrl.u32 %v9127_v62, 16  ;;  %v3518_v59 = vshll.u32 %v9127_v62, 16  ;;  %6566 = vmatpush3.bf16.msra.mxu1 %v6742_v63 }
 0x22e   :  { %v5797_v1 = vcombine.low %v3485_v60, %v3499_v50  ;;  %v5781_v35 = vcombine.low %v3338_v6, %v3342_v7  ;;  %v3503_v4 = vrot.slane %v3501_v10, 4  ;;  %v3506_v45 = vrot.slane %v3504_v27, 5  ;;  %6559 = vmatprep.subr.bf16.mxu1 %v9125_v55  ;;  %v9165_v6 = vld [vmem:[#allocation2 + $0x68] sm:$0xf]  ;;  %v9171_v60 = vld [vmem:[#allocation2 + $0x64] sm:$0x1] }
 0x22f   :  { %v5789_v36 = vcombine.low %v9078_v47, %v9080_v5  ;;  %v3517_v3 = vrot.slane %v3515_v52, 4  ;;  %v3520_v18 = vrot.slane %v3518_v59, 5  ;;  %v3524_v31 = vshll.u32 %v9140_v11, 16  ;;  %6530 = vmatpush3.bf16.msra.mxu0 %v6742_v63  ;;  %v3278_v5 = vld [vmem:[#allocation2 + $0x40] sm:$0xe] }
 0x230   :  { %v9154_v29 = vrot.slane %v3250_v33, 4  ;;  %5007 = vmatprep.mubr.bf16.mxu1 %v5797_v1  ;;  %4910 = vmatprep.mubr.bf16.mxu0 %v5781_v35  ;;  %v3507_v53 = vor.u32 %v3506_v45, %v3503_v4  ;;  %v3512_v8 = vrot.slane %v3510_v37, 5  ;;  %v3116_v47 = vsel %vm7035_vm5, %v8890_v28, %v3115_v14  ;;  %v6748_v28 = vld [vmem:[%s9637_s2 + $0x208] sm:$0xff]   ;;  %v9178_v7 = vld [vmem:[#allocation2 + $0x20] sm:$0xe] }
 0x231   :  { %5008 = vmatmul.mubr.bf16.gmra.mxu1 %v5789_v36  ;;  %v3521_v63 = vor.u32 %v3520_v18, %v3517_v3  ;;  %v3526_v22 = vrot.slane %v3524_v31, 5  ;;  %v3130_v51 = vsel %vm7035_vm5, %v8895_v58, %v3129_v32  ;;  %v3141_v56 = vshll.u32 %v3037_v2, 16  ;;  %6531 = vmatprep.subr.bf16.mxu0 %v9125_v55  ;;  %v3279_v31 = vld [vmem:[#allocation2 + $0x58] sm:$0xe] }
 0x232   :  { %v3508_v38 = vrot.slane %v3507_v53, 4  ;;  %v5773_v33 = vcombine.low %v3116_v47, %v3130_v51  ;;  %v3155_v0 = vshll.u32 %v3038_v25, 16  ;;  %v5713_v41 = vrot.slane %v3277_v42, 9  ;;  %6567 = vmatpush3.bf16.msra.mxu1 %v9125_v55  ;;  %v6750_v42 = vld [vmem:[%s9637_s2 + $0x200] sm:$0xff]  }
 0x233   :  { %v3522_v14 = vrot.slane %v3521_v63, 4  ;;  %v3143_v13 = vrot.slane %v3141_v56, 5  ;;  %v3345_v58 = vrot.slane %v3037_v2, 5  ;;  %v5714_v32 = vrot.slane %v3278_v5, 9  ;;  %6532 = vmatpush3.bf16.msra.mxu0 %v9125_v55  ;;  %6560 = vmatprep.subr.bf16.mxu1 %v6746_v30  ;;  %v9184_v55 = vld [vmem:[#allocation2 + $0x6c] sm:$0x1] }
 0x234   :  { %v3513_v10 = vsel %vm7035_vm5, %v3508_v38, %v3512_v8  ;;  %4911 = vmatmul.mubr.bf16.gmra.mxu0 %v5773_v33  ;;  %v3157_v27 = vrot.slane %v3155_v0, 5  ;;  %v3349_v37 = vrot.slane %v3038_v25, 5  ;;  %v5790_v50 = vcombine.low %v9118_v40, %v9127_v62  ;;  %6533 = vmatprep.subr.bf16.mxu0 %v6746_v30  ;;  %v3039_v2 = vld [vmem:[#allocation2 + $0x5c] sm:$0x1]  ;;  %v3040_v63 = vld [vmem:[#allocation2 + $0x64] sm:$0x1] }
 0x235   :  { %v3527_v52 = vsel %vm7035_vm5, %v3522_v14, %v3526_v22  ;;  %v3346_v59 = vsel %vm7051_vm6, %v5713_v41, %v3345_v58  ;;  %v3529_v1 = vshrl.u32 %v9162_v16, 16  ;;  %v3532_v35 = vshll.u32 %v9162_v16, 16  ;;  %v9212_v41 = vld [vmem:[#allocation2 + $0x78] sm:$0xf] }
 0x236   :  { %v5798_v4 = vcombine.low %v3513_v10, %v3527_v52  ;;  %v3350_v45 = vsel %vm7051_vm6, %v5714_v32, %v3349_v37  ;;  %v3538_v40 = vshll.u32 %v9171_v60, 16  ;;  %v3543_v62 = vshrl.u32 %v9165_v6, 16  ;;  %6568 = vmatpush3.bf16.msra.mxu1 %v6746_v30 }
 0x237   :  { %v5782_v25 = vcombine.low %v3346_v59, %v3350_v45  ;;  %v3531_v36 = vrot.slane %v3529_v1, 4  ;;  %v3534_v3 = vrot.slane %v3532_v35, 5  ;;  %v3546_v18 = vshll.u32 %v9165_v6, 16  ;;  %6534 = vmatpush3.bf16.msra.mxu0 %v6746_v30  ;;  %6561 = vmatprep.subr.bf16.mxu1 %v6748_v28  ;;  %v3643_v45 = vld [vmem:[#allocation2 + $0x28] sm:$0xe] }
 0x238   :  { %v9199_v53 = vrot.slane %v3264_v9, 4  ;;  %v5725_v8 = vrot.slane %v9178_v7, 9  ;;  %5015 = vmatprep.mubr.bf16.mxu1 %v5798_v4  ;;  %v3545_v47 = vrot.slane %v3543_v62, 4  ;;  %v3552_v5 = vshll.u32 %v9184_v55, 16  ;;  %6535 = vmatprep.subr.bf16.mxu0 %v6748_v28  ;;  %v9209_v9 = vld [vmem:[#allocation2 + $0x70] sm:$0xf] }
 0x239   :  { %4918 = vmatprep.mubr.bf16.mxu0 %v5782_v25  ;;  %5016 = vmatmul.mubr.bf16.gmra.mxu1 %v5790_v50  ;;  %v3535_v30 = vor.u32 %v3534_v3, %v3531_v36  ;;  %v3548_v22 = vrot.slane %v3546_v18, 5  ;;  %v3144_v51 = vsel %vm7035_vm5, %v8897_v21, %v3143_v13  ;;  %v3158_v48 = vsel %vm7035_vm5, %v8903_v26, %v3157_v27  ;;  %v9214_v21 = vld [vmem:[#allocation2 + $0x74] sm:$0x1] }
 0x23a   :  { %v3698_v56 = vrot.slane %v9038_v34, 5  ;;  %v3540_v38 = vrot.slane %v3538_v40, 5  ;;  %v5774_v33 = vcombine.low %v3144_v51, %v3158_v48  ;;  %v5715_v0 = vrot.slane %v3279_v31, 9  ;;  %6569 = vmatpush3.bf16.msra.mxu1 %v6748_v28 }
 0x23b   :  { %v3536_v14 = vrot.slane %v3535_v30, 4  ;;  %v3549_v58 = vor.u32 %v3548_v22, %v3545_v47  ;;  %v3169_v32 = vshll.u32 %v3039_v2, 16  ;;  %v3353_v10 = vrot.slane %v3039_v2, 5  ;;  %6536 = vmatpush3.bf16.msra.mxu0 %v6748_v28  ;;  %6562 = vmatprep.subr.bf16.mxu1 %v6750_v42  ;;  %v9223_v28 = vld [vmem:[#allocation2 + $0x7c] sm:$0x1] }
 0x23c   :  { %v3554_v26 = vrot.slane %v3552_v5, 5  ;;  %4919 = vmatmul.mubr.bf16.gmra.mxu0 %v5774_v33  ;;  %v3183_v13 = vshll.u32 %v3040_v63, 16  ;;  %v5716_v27 = vrot.slane %v3280_v19, 9  ;;  %v3357_v37 = vrot.slane %v3040_v63, 5  ;;  %6537 = vmatprep.subr.bf16.mxu0 %v6750_v42  ;;  %v3041_v22 = vld [vmem:[#allocation2 + $0x6c] sm:$0x1] }
 0x23d   :  { %v3541_v34 = vsel %vm7035_vm5, %v3536_v14, %v3540_v38  ;;  %v3550_v50 = vrot.slane %v3549_v58, 4  ;;  %v3354_v7 = vsel %vm7051_vm6, %v5715_v0, %v3353_v10  ;;  %v3557_v52 = vshrl.u32 %v9209_v9, 16  ;;  %v3042_v38 = vld [vmem:[#allocation2 + $0x74] sm:$0x1]  ;;  %v3281_v33 = vld [vmem:[#allocation2 + $0x68] sm:$0xe] }
 0x23e   :  { %v3358_v59 = vsel %vm7051_vm6, %v5716_v27, %v3357_v37  ;;  %v3560_v1 = vshll.u32 %v9209_v9, 16  ;;  %v3566_v35 = vshll.u32 %v9214_v21, 16  ;;  %v3571_v4 = vshrl.u32 %v9212_v41, 16  ;;  %6570 = vmatpush3.bf16.msra.mxu1 %v6750_v42  ;;  %v9245_v10 = vld [vmem:[#allocation2 + $0x80] sm:$0xf] }
 0x23f   :  { %v3555_v40 = vsel %vm7035_vm5, %v3550_v50, %v3554_v26  ;;  %v5783_v62 = vcombine.low %v3354_v7, %v3358_v59  ;;  %v3559_v2 = vrot.slane %v3557_v52, 4  ;;  %v3574_v25 = vshll.u32 %v9212_v41, 16  ;;  %6538 = vmatpush3.bf16.msra.mxu0 %v6750_v42  ;;  %v9251_v52 = vld [vmem:[#allocation2 + $0x84] sm:$0x1] }
 0x240   :  { %v5799_v36 = vcombine.low %v3541_v34, %v3555_v40  ;;  %v3171_v3 = vrot.slane %v3169_v32, 5  ;;  %v3562_v18 = vrot.slane %v3560_v1, 5  ;;  %v3573_v31 = vrot.slane %v3571_v4, 4  ;;  %v9247_v34 = vld [vmem:[#allocation2 + $0x88] sm:$0xf] }
 0x241   :  { %v3185_v47 = vrot.slane %v3183_v13, 5  ;;  %4926 = vmatprep.mubr.bf16.mxu0 %v5783_v62  ;;  %v5791_v5 = vcombine.low %v9162_v16, %v9165_v6  ;;  %v3576_v63 = vrot.slane %v3574_v25, 5  ;;  %v3580_v30 = vshll.u32 %v9223_v28, 16  ;;  %v9261_v40 = vld [vmem:[#allocation2 + $0x78] sm:$0xe] }
 0x242   :  { %v9236_v51 = vsel %vm7051_vm6, %v5725_v8, %v3698_v56  ;;  %v5726_v48 = vrot.slane %v3643_v45, 9  ;;  %v3702_v42 = vrot.slane %v9048_v39, 5  ;;  %5023 = vmatprep.mubr.bf16.mxu1 %v5799_v36  ;;  %v3563_v19 = vor.u32 %v3562_v18, %v3559_v2  ;;  %v3282_v8 = vld [vmem:[#allocation2 + $0x70] sm:$0xe]  ;;  %v9259_v45 = vld [vmem:[#allocation2 + $0x8c] sm:$0x1] }
 0x243   :  { %5024 = vmatmul.mubr.bf16.gmra.mxu1 %v5791_v5  ;;  %v3568_v0 = vrot.slane %v3566_v35, 5  ;;  %v3577_v14 = vor.u32 %v3576_v63, %v3573_v31  ;;  %v3172_v16 = vsel %vm7035_vm5, %v8964_v57, %v3171_v3  ;;  %v3186_v6 = vsel %vm7035_vm5, %v8968_v44, %v3185_v47 }
 0x244   :  { %v3564_v56 = vrot.slane %v3563_v19, 4  ;;  %v3582_v58 = vrot.slane %v3580_v30, 5  ;;  %v5775_v32 = vcombine.low %v3172_v16, %v3186_v6  ;;  %v3197_v39 = vshll.u32 %v3041_v22, 16 }
 0x245   :  { %v3578_v26 = vrot.slane %v3577_v14, 4  ;;  %v3211_v13 = vshll.u32 %v3042_v38, 16  ;;  %v5717_v27 = vrot.slane %v3281_v33, 9  ;;  %v3361_v37 = vrot.slane %v3041_v22, 5  ;;  %v3283_v22 = vld [vmem:[#allocation2 + $0x78] sm:$0xe] }
 0x246   :  { %v3569_v57 = vsel %vm7035_vm5, %v3564_v56, %v3568_v0  ;;  %4927 = vmatmul.mubr.bf16.gmra.mxu0 %v5775_v32  ;;  %v3199_v50 = vrot.slane %v3197_v39, 5  ;;  %v5718_v7 = vrot.slane %v3282_v8, 9  ;;  %v3365_v44 = vrot.slane %v3042_v38, 5  ;;  %v9282_v56 = vld [vmem:[#allocation2 + $0x90] sm:$0xf] }
 0x247   :  { %v3583_v59 = vsel %vm7035_vm5, %v3578_v26, %v3582_v58  ;;  %v3213_v1 = vrot.slane %v3211_v13, 5  ;;  %v3362_v35 = vsel %vm7051_vm6, %v5717_v27, %v3361_v37  ;;  %v5792_v4 = vcombine.low %v9209_v9, %v9212_v41  ;;  %v3043_v9 = vld [vmem:[#allocation2 + $0x7c] sm:$0x1]  ;;  %v9284_v58 = vpop.f32.mrf.mxu1 }
 0x248   :  { %v5800_v62 = vcombine.low %v3569_v57, %v3583_v59  ;;  %v3366_v2 = vsel %vm7051_vm6, %v5718_v7, %v3365_v44  ;;  %v3585_v25 = vshrl.u32 %v9245_v10, 16  ;;  %v3588_v36 = vshll.u32 %v9245_v10, 16 }
 0x249   :  { %v5784_v3 = vcombine.low %v3362_v35, %v3366_v2  ;;  %v3594_v18 = vshll.u32 %v9251_v52, 16  ;;  %v3599_v31 = vshrl.u32 %v9247_v34, 16  ;;  %v3602_v47 = vshll.u32 %v9247_v34, 16 }
 0x24a   :  { %v9272_v41 = vsel %vm7051_vm6, %v5726_v48, %v3702_v42  ;;  %5031 = vmatprep.mubr.bf16.mxu1 %v5800_v62  ;;  %v3587_v5 = vrot.slane %v3585_v25, 4  ;;  %v3590_v63 = vrot.slane %v3588_v36, 5  ;;  %v3608_v30 = vshll.u32 %v9259_v45, 16  ;;  %v3044_v48 = vld [vmem:[#allocation2 + $0x84] sm:$0x1]  ;;  %v9298_v25 = vpop.f32.mrf.mxu1 }
 0x24b   :  { %4934 = vmatprep.mubr.bf16.mxu0 %v5784_v3  ;;  %5032 = vmatmul.mubr.bf16.gmra.mxu1 %v5792_v4  ;;  %v3601_v19 = vrot.slane %v3599_v31, 4  ;;  %v3604_v38 = vrot.slane %v3602_v47, 5  ;;  %v3200_v33 = vsel %vm7035_vm5, %v8970_v12, %v3199_v50  ;;  %v3214_v0 = vsel %vm7035_vm5, %v8980_v15, %v3213_v1  ;;  %v3284_v42 = vld [vmem:[#allocation2 + $0x80] sm:$0xe]  ;;  %v9286_v12 = vld [vmem:[#allocation2 + $0x98] sm:$0xf] }
 0x24c   :  { %v5734_v14 = vrot.slane %v9261_v40, 9  ;;  %v3591_v16 = vor.u32 %v3590_v63, %v3587_v5  ;;  %v5776_v6 = vcombine.low %v3200_v33, %v3214_v0  ;;  %v3225_v8 = vshll.u32 %v3043_v9, 16  ;;  %v9288_v50 = vld [vmem:[#allocation2 + $0x94] sm:$0x1] }
 0x24d   :  { %v3596_v32 = vrot.slane %v3594_v18, 5  ;;  %v3605_v39 = vor.u32 %v3604_v38, %v3601_v19  ;;  %v5719_v26 = vrot.slane %v3283_v22, 9  ;;  %v3369_v13 = vrot.slane %v3043_v9, 5  ;;  %v9302_v18 = vld [vmem:[#allocation2 + $0x9c] sm:$0x1] }
 0x24e   :  { %v3592_v27 = vrot.slane %v3591_v16, 4  ;;  %v3610_v37 = vrot.slane %v3608_v30, 5  ;;  %4935 = vmatmul.mubr.bf16.gmra.mxu0 %v5776_v6  ;;  %v5720_v15 = vrot.slane %v3284_v42, 9  ;;  %v3373_v57 = vrot.slane %v3044_v48, 5  ;;  %v3045_v9 = vld [vmem:[#allocation2 + $0x8c] sm:$0x1] }
 0x24f   :  { %v3606_v7 = vrot.slane %v3605_v39, 4  ;;  %v3227_v44 = vrot.slane %v3225_v8, 5  ;;  %v3239_v59 = vshll.u32 %v3044_v48, 16  ;;  %v3370_v1 = vsel %vm7051_vm6, %v5719_v26, %v3369_v13  ;;  %v3046_v19 = vld [vmem:[#allocation2 + $0x94] sm:$0x1]  ;;  %v9313_v26 = vpop.f32.mrf.mxu1 }
 0x250   :  { %v3597_v35 = vsel %vm7035_vm5, %v3592_v27, %v3596_v32  ;;  %v3374_v4 = vsel %vm7051_vm6, %v5720_v15, %v3373_v57  ;;  %v3613_v62 = vshrl.u32 %v9282_v56, 16  ;;  %v3616_v2 = vshll.u32 %v9282_v56, 16  ;;  %v3285_v42 = vld [vmem:[#allocation2 + $0x88] sm:$0xe]  ;;  %v3286_v39 = vld [vmem:[#allocation2 + $0x90] sm:$0xe] }
 0x251   :  { %v3611_v36 = vsel %vm7035_vm5, %v3606_v7, %v3610_v37  ;;  %v5785_v3 = vcombine.low %v3370_v1, %v3374_v4  ;;  %v3622_v31 = vshll.u32 %v9288_v50, 16  ;;  %v3627_v47 = vshrl.u32 %v9286_v12, 16  ;;  %v3649_v1 = vld [vmem:[#allocation2 + $0x68] sm:$0xe] }
 0x252   :  { %v5801_v5 = vcombine.low %v3597_v35, %v3611_v36  ;;  %v3615_v63 = vrot.slane %v3613_v62, 4  ;;  %v3618_v30 = vrot.slane %v3616_v2, 5  ;;  %v3630_v22 = vshll.u32 %v9286_v12, 16 }
 0x253   :  { %v3241_v38 = vrot.slane %v3239_v59, 5  ;;  %4942 = vmatprep.mubr.bf16.mxu0 %v5785_v3  ;;  %v5793_v33 = vcombine.low %v9245_v10, %v9247_v34  ;;  %v3629_v0 = vrot.slane %v3627_v47, 4  ;;  %v3636_v48 = vshll.u32 %v9302_v18, 16  ;;  %v3648_v59 = vld [vmem:[#allocation2 + $0x60] sm:$0xe]  ;;  %v9322_v3 = vpop.f32.mrf.mxu1 }
 0x254   :  { %5039 = vmatprep.mubr.bf16.mxu1 %v5801_v5  ;;  %v3619_v16 = vor.u32 %v3618_v30, %v3615_v63  ;;  %v3624_v6 = vrot.slane %v3622_v31, 5  ;;  %v3632_v8 = vrot.slane %v3630_v22, 5  ;;  %v3228_v32 = vsel %vm7035_vm5, %v8982_v61, %v3227_v44 }
 0x255   :  { %5040 = vmatmul.mubr.bf16.gmra.mxu1 %v5793_v33  ;;  %v3638_v13 = vrot.slane %v3636_v48, 5  ;;  %v3242_v10 = vsel %vm7035_vm5, %v9074_v46, %v3241_v38  ;;  %v3253_v34 = vshll.u32 %v3045_v9, 16  ;;  %v3267_v27 = vshll.u32 %v3046_v19, 16  ;;  %v3650_v38 = vld [vmem:[#allocation2 + $0x70] sm:$0xe] }
 0x256   :  { %v3620_v37 = vrot.slane %v3619_v16, 4  ;;  %v3633_v15 = vor.u32 %v3632_v8, %v3629_v0  ;;  %v5777_v57 = vcombine.low %v3228_v32, %v3242_v10  ;;  %v5721_v7 = vrot.slane %v3285_v42, 9  ;;  %v3652_v42 = vld [vmem:[#allocation2 + $0x80] sm:$0xe]  ;;  %v9343_v32 = vpop.f32.mrf.mxu1 }
 0x257   :  { %v3255_v35 = vrot.slane %v3253_v34, 5  ;;  %v3269_v4 = vrot.slane %v3267_v27, 5  ;;  %v3377_v61 = vrot.slane %v3045_v9, 5  ;;  %v5722_v44 = vrot.slane %v3286_v39, 9  ;;  %v3640_v9 = vld [vmem:[#allocation2 + $0x10] sm:$0xe] }
 0x258   :  { %v3625_v62 = vsel %vm7035_vm5, %v3620_v37, %v3624_v6  ;;  %v3634_v2 = vrot.slane %v3633_v15, 4  ;;  %4943 = vmatmul.mubr.bf16.gmra.mxu0 %v5777_v57  ;;  %v3381_v36 = vrot.slane %v3046_v19, 5  ;;  %v5794_v46 = vcombine.low %v9282_v56, %v9286_v12  ;;  %v3641_v12 = vld [vmem:[#allocation2 + $0x18] sm:$0xe] }
 0x259   :  { %v3378_v31 = vsel %vm7051_vm6, %v5721_v7, %v3377_v61  ;;  %v5731_v47 = vrot.slane %v3648_v59, 9  ;;  %v3722_v5 = vrot.slane %v9171_v60, 5  ;;  %v5732_v63 = vrot.slane %v3649_v1, 9  ;;  %v9357_v61 = vpop.f32.mrf.mxu1 }
 0x25a   :  { %v3639_v30 = vsel %vm7035_vm5, %v3634_v2, %v3638_v13  ;;  %v3382_v22 = vsel %vm7051_vm6, %v5722_v44, %v3381_v36  ;;  %v3726_v19 = vrot.slane %v9184_v55, 5  ;;  %v3256_v56 = vsel %vm7035_vm5, %v9154_v29, %v3255_v35  ;;  %v3653_v29 = vld [vmem:[#allocation2 + $0x88] sm:$0xe]  ;;  %v3654_v44 = vld [vmem:[#allocation2 + $0x90] sm:$0xe] }
 0x25b   :  { %v5802_v33 = vcombine.low %v3625_v62, %v3639_v30  ;;  %v5786_v0 = vcombine.low %v3378_v31, %v3382_v22  ;;  %v3723_v60 = vsel %vm7051_vm6, %v5731_v47, %v3722_v5  ;;  %v3270_v48 = vsel %vm7035_vm5, %v9199_v53, %v3269_v4  ;;  %v3644_v53 = vld [vmem:[#allocation2 + $0x30] sm:$0xe]  ;;  %v3655_v62 = vld [vmem:[#allocation2 + $0x98] sm:$0xe]  ;;  %v3646_v36 = vld [vmem:[#allocation2 + $0x40] sm:$0xe]  ;;  %v9373_v31 = vpop.f32.mrf.mxu1 }
 0x25c   :  { %v3727_v16 = vsel %vm7051_vm6, %v5732_v63, %v3726_v19  ;;  %v5778_v55 = vcombine.low %v3256_v56, %v3270_v48  ;;  %v5723_v6 = vrot.slane %v3640_v9, 9  ;;  %v3690_v8 = vrot.slane %v9010_v54, 5 }
 0x25d   :  { %v3734_v39 = vrot.slane %v9223_v28, 5  ;;  %5047 = vmatprep.mubr.bf16.mxu1 %v5802_v33  ;;  %4950 = vmatprep.mubr.bf16.mxu0 %v5786_v0  ;;  %v5807_v13 = vcombine.low %v3723_v60, %v3727_v16  ;;  %v5724_v10 = vrot.slane %v3641_v12, 9  ;;  %v3694_v23 = vrot.slane %v9015_v17, 5  ;;  %v3645_v17 = vld [vmem:[#allocation2 + $0x38] sm:$0xe]  ;;  %v9380_v12 = vpop.f32.mrf.mxu1 }
 0x25e   :  { %v5733_v34 = vrot.slane %v3650_v38, 9  ;;  %5048 = vmatmul.mubr.bf16.gmra.mxu1 %v5794_v46  ;;  %v3691_v27 = vsel %vm7051_vm6, %v5723_v6, %v3690_v8  ;;  %v5735_v37 = vrot.slane %v3652_v42, 9  ;;  %v3738_v54 = vrot.slane %v9251_v52, 5  ;;  %v3647_v46 = vld [vmem:[#allocation2 + $0x48] sm:$0xe] }
 0x25f   :  { %v3730_v15 = vrot.slane %v9214_v21, 5  ;;  %6547 = vmatprep.mubr.bf16.mxu1 %v5807_v13  ;;  %v3695_v28 = vsel %vm7051_vm6, %v5724_v10, %v3694_v23  ;;  %v5736_v57 = vrot.slane %v3653_v29, 9  ;;  %v5804_v7 = vcombine.low %v9236_v51, %v9272_v41  ;;  %v9390_v0 = vpop.f32.mrf.mxu1 }
 0x260   :  { %4951 = vmatmul.mubr.bf16.gmra.mxu0 %v5778_v55  ;;  %v5803_v59 = vcombine.low %v3691_v27, %v3695_v28  ;;  %v3742_v1 = vrot.slane %v9259_v45, 5  ;;  %v5727_v35 = vrot.slane %v3644_v53, 9  ;;  %v3706_v4 = vrot.slane %v9085_v20, 5 }
 0x261   :  { %v3735_v21 = vsel %vm7051_vm6, %v5734_v14, %v3734_v39  ;;  %v3739_v52 = vsel %vm7051_vm6, %v5735_v37, %v3738_v54  ;;  %v5728_v51 = vrot.slane %v3645_v17, 9  ;;  %v3710_v41 = vrot.slane %v9098_v43, 5  ;;  %v9392_v48 = vpop.f32.mrf.mxu1 }
 0x262   :  { %6539 = vmatprep.mubr.bf16.mxu0 %v5803_v59  ;;  %v3731_v45 = vsel %vm7051_vm6, %v5733_v34, %v3730_v15  ;;  %v3746_v20 = vrot.slane %v9288_v50, 5  ;;  %v3743_v40 = vsel %vm7051_vm6, %v5736_v57, %v3742_v1  ;;  %v3707_v14 = vsel %vm7051_vm6, %v5727_v35, %v3706_v4  ;;  %v9733_v34 = vld [vmem:[#allocation11_spill] sm:$0xff]  ;;  %v9410_v15 = vld [vmem:[%s9639_s4] sm:$0x7]  ;;  %s6777_s4 = smov [#allocation3]  }
 0x263   :  { %v5808_v2 = vcombine.low %v3731_v45, %v3735_v21  ;;  %v3750_v43 = vrot.slane %v9302_v18, 5  ;;  %v5809_v47 = vcombine.low %v3739_v52, %v3743_v40  ;;  %v5737_v5 = vrot.slane %v3654_v44, 9  ;;  %v9394_v42 = vpop.f32.mrf.mxu1  ;;  %s5350_s26 = sshll.u32 %s6777_s4, 4  ;;  %s5351_s26 = int_to_ptr.vmem [resolvable:$true] %s5350_s26 }
 0x264   :  { %v5738_v63 = vrot.slane %v3655_v62, 9  ;;  %v3714_v9 = vrot.slane %v9120_v24, 5  ;;  %v3711_v50 = vsel %vm7051_vm6, %v5728_v51, %v3710_v41  ;;  %v3718_v30 = vrot.slane %v9140_v11, 5  ;;  %s6754_s27 = scalar_lea.vmem %s5351_s26, 2048  ;;  %p6759_p1 = scmp.lt.s32.totalorder %s5351_s26, %s5351_s26 }
 0x265   :  { %v5805_v22 = vcombine.low %v3707_v14, %v3711_v50  ;;  %v5729_v19 = vrot.slane %v3646_v36, 9  ;;  %v5730_v56 = vrot.slane %v3647_v46, 9  ;;  %v3747_v18 = vsel %vm7051_vm6, %v5737_v5, %v3746_v20  ;;  %v9396_v16 = vpop.f32.mrf.mxu1  ;;  %p6755_p0 = scmp.ne.s32.totalorder %s5351_s26, %s6754_s27  ;;  %p6760_p2 = scmp.lt.s32.totalorder %s6754_s27, %s6754_s27 }
 0x266   :  { %6548 = vmatmul.mubr.bf16.vlgmr.msra.gmra.mxu1 %v5808_v2  ;;  %v3751_v24 = vsel %vm7051_vm6, %v5738_v63, %v3750_v43  ;;  %v4234_v27 = vsub.s32 1, %v9733_v34 }
 0x267   :  { %6551 = vmatprep.mubr.bf16.mxu1 %v5809_v47  ;;  %v3715_v38 = vsel %vm7051_vm6, %v5729_v19, %v3714_v9  ;;  %v3719_v11 = vsel %vm7051_vm6, %v5730_v56, %v3718_v30  ;;  %v5810_v33 = vcombine.low %v3747_v18, %v3751_v24  ;;  %v9398_v55 = vpop.f32.mrf.mxu1  ;;  %p6761_p3 = por %p6760_p2, %p6759_p1 }
 0x268   :  { %6540 = vmatmul.mubr.bf16.vlgmr.msra.gmra.mxu0 %v5804_v7  ;;  %v5806_v60 = vcombine.low %v3715_v38, %v3719_v11  ;;  %v9413_v28 = vrot.slane %v9410_v15, %v4234_v27 }
 0x269   :  { %6543 = vmatprep.mubr.bf16.mxu0 %v5805_v22  ;;  %v9400_v6 = vpop.f32.mrf.mxu1  ;;  %p6762_p4 = pnand %p6761_p3, %p6755_p0 }
 0x26b   :  { %v9402_v8 = vpop.f32.mrf.mxu1 }
 0x26d   :  { %v9404_v49 = vpop.f32.mrf.mxu1 }
 0x26e   :  { %6552 = vmatmul.mubr.bf16.gmra.mxu1 %v5810_v33 }
 0x270   :  { %6544 = vmatmul.mubr.bf16.gmra.mxu0 %v5806_v60 }
 0x28c   :  { %v6267_v29 = vpop.f32.mrf.mxu1 }
 0x28e   :  { %v6268_v39 = vpop.f32.mrf.mxu1 }
 0x28f   :  { %v6269_v13 = vadd.f32 %v6268_v39, %v6267_v29 }
 0x290   :  { %v6270_v10 = vpop.f32.mrf.mxu1 }
 0x292   :  { %v6271_v23 = vpop.f32.mrf.mxu1 }
 0x293   :  { %v6272_v53 = vadd.f32 %v6271_v23, %v6270_v10 }
 0x29b   :  { %v6203_v37 = vpop.f32.mrf.mxu0 }
 0x29c   :  { %v6273_v54 = vpop.f32.mrf.mxu1 }
 0x29d   :  { %v6204_v57 = vpop.f32.mrf.mxu0 }
 0x29e   :  { %v6274_v7 = vpop.f32.mrf.mxu1  ;;  %v6205_v17 = vadd.f32 %v6204_v57, %v6203_v37 }
 0x29f   :  { %v6275_v59 = vadd.f32 %v6274_v7, %v6273_v54  ;;  %v6206_v1 = vpop.f32.mrf.mxu0 }
 0x2a0   :  { %v6276_v35 = vpop.f32.mrf.mxu1  ;;  %v4703_v4 = vadd.f32 %v6205_v17, %v9413_v28 }
 0x2a1   :  { %v6207_v21 = vpop.f32.mrf.mxu0 }
 0x2a2   :  { %v6277_v52 = vpop.f32.mrf.mxu1  ;;  %v6208_v51 = vadd.f32 %v6207_v21, %v6206_v1  ;;  %v9416_v44 = vadd.f32 %v6269_v13, %v4703_v4 }
 0x2a3   :  { %v6278_v41 = vadd.f32 %v6277_v52, %v6276_v35  ;;  %v6209_v62 = vpop.f32.mrf.mxu0 }
 0x2a4   :  { %v4706_v45 = vadd.f32 %v6208_v51, %v9413_v28 }
 0x2a5   :  { %v6210_v20 = vpop.f32.mrf.mxu0 }
 0x2a6   :  { %v6211_v2 = vadd.f32 %v6210_v20, %v6209_v62  ;;  %v9419_v14 = vadd.f32 %v6272_v53, %v4706_v45 }
 0x2a7   :  { %v6279_v40 = vpop.f32.mrf.mxu1  ;;  %v6212_v36 = vpop.f32.mrf.mxu0 }
 0x2a8   :  { %v4711_v46 = vadd.f32 %v6211_v2, %v9413_v28 }
 0x2a9   :  { %v6280_v43 = vpop.f32.mrf.mxu1  ;;  %v6213_v5 = vpop.f32.mrf.mxu0 }
 0x2aa   :  { %v6281_v47 = vadd.f32 %v6280_v43, %v6279_v40  ;;  %v6214_v63 = vadd.f32 %v6213_v5, %v6212_v36  ;;  %v9422_v50 = vadd.f32 %v6275_v59, %v4711_v46 }
 0x2ab   :  { %v6282_v9 = vpop.f32.mrf.mxu1  ;;  %v6215_v30 = vpop.f32.mrf.mxu0 }
 0x2ac   :  { %v4714_v22 = vadd.f32 %v6214_v63, %v9413_v28 }
 0x2ad   :  { %v6283_v19 = vpop.f32.mrf.mxu1  ;;  %v6216_v18 = vpop.f32.mrf.mxu0 }
 0x2ae   :  { %v6284_v56 = vadd.f32 %v6283_v19, %v6282_v9  ;;  %v6217_v24 = vadd.f32 %v6216_v18, %v6215_v30  ;;  %v9425_v38 = vadd.f32 %v6278_v41, %v4714_v22 }
 0x2af   :  { %v6218_v11 = vpop.f32.mrf.mxu0 }
 0x2b0   :  { %v4719_v33 = vadd.f32 %v6217_v24, %v9413_v28  ;;  %v6285_v60 = vpop.f32.mrf.mxu1 }
 0x2b1   :  { %v6219_v29 = vpop.f32.mrf.mxu0 }
 0x2b2   :  { %v6286_v39 = vpop.f32.mrf.mxu1  ;;  %v6220_v13 = vadd.f32 %v6219_v29, %v6218_v11  ;;  %v9428_v10 = vadd.f32 %v6281_v47, %v4719_v33 }
 0x2b3   :  { %v6287_v23 = vadd.f32 %v6286_v39, %v6285_v60  ;;  %v6221_v53 = vpop.f32.mrf.mxu0 }
 0x2b4   :  { %v4722_v27 = vadd.f32 %v6220_v13, %v9413_v28  ;;  %v6288_v37 = vpop.f32.mrf.mxu1 }
 0x2b5   :  { %v6222_v54 = vpop.f32.mrf.mxu0 }
 0x2b6   :  { %v6289_v57 = vpop.f32.mrf.mxu1  ;;  %v6223_v7 = vadd.f32 %v6222_v54, %v6221_v53  ;;  %v9431_v17 = vadd.f32 %v6284_v56, %v4722_v27 }
 0x2b7   :  { %v6290_v59 = vadd.f32 %v6289_v57, %v6288_v37  ;;  %v6224_v1 = vpop.f32.mrf.mxu0 }
 0x2b8   :  { %v4727_v35 = vadd.f32 %v6223_v7, %v9413_v28  ;;  %v6291_v4 = vpop.f32.mrf.mxu1 }
 0x2b9   :  { %v6225_v21 = vpop.f32.mrf.mxu0 }
 0x2ba   :  { %v6292_v52 = vpop.f32.mrf.mxu1  ;;  %v6226_v51 = vadd.f32 %v6225_v21, %v6224_v1  ;;  %v9434_v41 = vadd.f32 %v6287_v23, %v4727_v35 }
 0x2bb   :  { %v6293_v62 = vadd.f32 %v6292_v52, %v6291_v4 }
 0x2bc   :  { %v4730_v45 = vadd.f32 %v6226_v51, %v9413_v28  ;;  %v6294_v20 = vpop.f32.mrf.mxu1  ;;  %v6227_v2 = vpop.f32.mrf.mxu0 }
 0x2be   :  { %v6295_v40 = vpop.f32.mrf.mxu1  ;;  %v6228_v36 = vpop.f32.mrf.mxu0  ;;  %v9437_v46 = vadd.f32 %v6290_v59, %v4730_v45 }
 0x2bf   :  { %v6296_v43 = vadd.f32 %v6295_v40, %v6294_v20  ;;  %v6229_v47 = vadd.f32 %v6228_v36, %v6227_v2 }
 0x2c0   :  { %v6230_v5 = vpop.f32.mrf.mxu0 }
 0x2c1   :  { %v4735_v63 = vadd.f32 %v6229_v47, %v9413_v28  ;;  %v6297_v9 = vpop.f32.mrf.mxu1 }
 0x2c2   :  { %v6231_v30 = vpop.f32.mrf.mxu0 }
 0x2c3   :  { %v6298_v22 = vpop.f32.mrf.mxu1  ;;  %v6232_v19 = vadd.f32 %v6231_v30, %v6230_v5  ;;  %v9440_v56 = vadd.f32 %v6293_v62, %v4735_v63 }
 0x2c4   :  { %v6299_v18 = vadd.f32 %v6298_v22, %v6297_v9  ;;  %v6233_v24 = vpop.f32.mrf.mxu0 }
 0x2c5   :  { %v4738_v11 = vadd.f32 %v6232_v19, %v9413_v28  ;;  %v6300_v33 = vpop.f32.mrf.mxu1 }
 0x2c6   :  { %v6234_v60 = vpop.f32.mrf.mxu0 }
 0x2c7   :  { %v6301_v29 = vpop.f32.mrf.mxu1  ;;  %v6235_v39 = vadd.f32 %v6234_v60, %v6233_v24  ;;  %v9443_v13 = vadd.f32 %v6296_v43, %v4738_v11 }
 0x2c8   :  { %v6302_v23 = vadd.f32 %v6301_v29, %v6300_v33  ;;  %v6236_v53 = vpop.f32.mrf.mxu0 }
 0x2c9   :  { %v4743_v27 = vadd.f32 %v6235_v39, %v9413_v28 }
 0x2ca   :  { %v6237_v37 = vpop.f32.mrf.mxu0 }
 0x2cb   :  { %v6303_v54 = vpop.f32.mrf.mxu1  ;;  %v6238_v57 = vadd.f32 %v6237_v37, %v6236_v53  ;;  %v9446_v7 = vadd.f32 %v6299_v18, %v4743_v27 }
 0x2cd   :  { %v6304_v59 = vpop.f32.mrf.mxu1  ;;  %v4746_v1 = vadd.f32 %v6238_v57, %v9413_v28 }
 0x2ce   :  { %v6305_v35 = vadd.f32 %v6304_v59, %v6303_v54  ;;  %v6239_v4 = vpop.f32.mrf.mxu0 }
 0x2cf   :  { %v6306_v21 = vpop.f32.mrf.mxu1  ;;  %v9449_v52 = vadd.f32 %v6302_v23, %v4746_v1 }
 0x2d0   :  { %v6240_v51 = vpop.f32.mrf.mxu0 }
 0x2d1   :  { %v6307_v62 = vpop.f32.mrf.mxu1  ;;  %v6241_v45 = vadd.f32 %v6240_v51, %v6239_v4 }
 0x2d2   :  { %v6308_v20 = vadd.f32 %v6307_v62, %v6306_v21  ;;  %v6242_v2 = vpop.f32.mrf.mxu0 }
 0x2d3   :  { %v4751_v40 = vadd.f32 %v6241_v45, %v9413_v28 }
 0x2d4   :  { %v6243_v36 = vpop.f32.mrf.mxu0 }
 0x2d5   :  { %v6309_v43 = vpop.f32.mrf.mxu1  ;;  %v6244_v47 = vadd.f32 %v6243_v36, %v6242_v2  ;;  %v9452_v5 = vadd.f32 %v6305_v35, %v4751_v40 }
 0x2d7   :  { %v6310_v63 = vpop.f32.mrf.mxu1  ;;  %v4754_v9 = vadd.f32 %v6244_v47, %v9413_v28 }
 0x2d8   :  { %v6311_v30 = vadd.f32 %v6310_v63, %v6309_v43  ;;  %v6245_v22 = vpop.f32.mrf.mxu0 }
 0x2d9   :  { %v6312_v19 = vpop.f32.mrf.mxu1  ;;  %v9455_v18 = vadd.f32 %v6308_v20, %v4754_v9 }
 0x2da   :  { %v6246_v24 = vpop.f32.mrf.mxu0 }
 0x2db   :  { %9734 = vst [vmem:[#allocation14_spill] sm:$0xff] %v9455_v18  ;;  %v6313_v11 = vpop.f32.mrf.mxu1  ;;  %v6247_v33 = vadd.f32 %v6246_v24, %v6245_v22 }
 0x2dc   :  { %v6314_v60 = vadd.f32 %v6313_v11, %v6312_v19  ;;  %v6248_v29 = vpop.f32.mrf.mxu0 }
 0x2dd   :  { %v4759_v39 = vadd.f32 %v6247_v33, %v9413_v28 }
 0x2de   :  { %v6249_v23 = vpop.f32.mrf.mxu0 }
 0x2df   :  { %v6250_v53 = vadd.f32 %v6249_v23, %v6248_v29  ;;  %v9458_v27 = vadd.f32 %v6311_v30, %v4759_v39 }
 0x2e0   :  { %v6395_v37 = vpop.f32.mrf.mxu1 }
 0x2e1   :  { %9735 = vst [vmem:[#allocation12_spill] sm:$0xff] %v9458_v27  ;;  %v4762_v54 = vadd.f32 %v6250_v53, %v9413_v28  ;;  %v6331_v57 = vpop.f32.mrf.mxu0 }
 0x2e2   :  { %v6396_v59 = vpop.f32.mrf.mxu1 }
 0x2e3   :  { %v6332_v1 = vpop.f32.mrf.mxu0  ;;  %v9461_v35 = vadd.f32 %v6314_v60, %v4762_v54  ;;  %v6397_v62 = vadd.f32 %v6396_v59, %v6395_v37 }
 0x2e4   :  { %v6398_v4 = vpop.f32.mrf.mxu1  ;;  %v6333_v21 = vadd.f32 %v6332_v1, %v6331_v57 }
 0x2e5   :  { %9736 = vst [vmem:[#allocation16_spill] sm:$0xff] %v9461_v35  ;;  %v6334_v51 = vpop.f32.mrf.mxu0 }
 0x2e6   :  { %v6399_v45 = vpop.f32.mrf.mxu1  ;;  %v4897_v20 = vadd.f32 %v6333_v21, %v9416_v44 }
 0x2e7   :  { %v6400_v2 = vadd.f32 %v6399_v45, %v6398_v4  ;;  %v6335_v40 = vpop.f32.mrf.mxu0 }
 0x2e8   :  { %v9464_v36 = vpop.f32.mrf.mxu1  ;;  %v6336_v43 = vadd.f32 %v6335_v40, %v6334_v51  ;;  %v9466_v47 = vadd.f32 %v6397_v62, %v4897_v20 }
 0x2ea   :  { %9737 = vst [vmem:[#allocation17_spill] sm:$0xff] %v9466_v47  ;;  %v9468_v28 = vpop.f32.mrf.mxu1  ;;  %v4900_v63 = vadd.f32 %v6336_v43, %v9419_v14  ;;  %v9471_v9 = vpop.f32.mrf.mxu0 }
 0x2ec   :  { %v9473_v30 = vpop.f32.mrf.mxu1  ;;  %v9475_v22 = vpop.f32.mrf.mxu0  ;;  %v9477_v19 = vadd.f32 %v6400_v2, %v4900_v63 }
 0x2ee   :  { %9738 = vst [vmem:[#allocation15_spill] sm:$0xff] %v9477_v19  ;;  %v9479_v44 = vpop.f32.mrf.mxu1  ;;  %v9481_v24 = vpop.f32.mrf.mxu0 }
 0x2f0   :  { %v9483_v11 = vpop.f32.mrf.mxu0 }
 0x2f1   :  { %v6407_v33 = vpop.f32.mrf.mxu1 }
 0x2f3   :  { %v6408_v60 = vpop.f32.mrf.mxu1 }
 0x2f4   :  { %v6409_v29 = vadd.f32 %v6408_v60, %v6407_v33  ;;  %v6343_v39 = vpop.f32.mrf.mxu0 }
 0x2f5   :  { %v6410_v23 = vpop.f32.mrf.mxu1 }
 0x2f6   :  { %v6344_v14 = vpop.f32.mrf.mxu0 }
 0x2f7   :  { %v6411_v53 = vpop.f32.mrf.mxu1  ;;  %v6345_v37 = vadd.f32 %v6344_v14, %v6343_v39 }
 0x2f8   :  { %v6412_v54 = vadd.f32 %v6411_v53, %v6410_v23  ;;  %v6346_v57 = vpop.f32.mrf.mxu0 }
 0x2f9   :  { %v4913_v59 = vadd.f32 %v6345_v37, %v9428_v10  ;;  %v6413_v1 = vpop.f32.mrf.mxu1 }
 0x2fa   :  { %v6347_v4 = vpop.f32.mrf.mxu0 }
 0x2fb   :  { %v6414_v21 = vpop.f32.mrf.mxu1  ;;  %v6348_v51 = vadd.f32 %v6347_v4, %v6346_v57  ;;  %v9486_v62 = vadd.f32 %v6409_v29, %v4913_v59 }
 0x2fc   :  { %v6349_v45 = vpop.f32.mrf.mxu0  ;;  %v6415_v39 = vadd.f32 %v6414_v21, %v6413_v1 }
 0x2fd   :  { %9739 = vst [vmem:[#allocation18_spill] sm:$0xff] %v9486_v62  ;;  %v4916_v20 = vadd.f32 %v6348_v51, %v9431_v17  ;;  %v9489_v2 = vpop.f32.mrf.mxu1 }
 0x2fe   :  { %v6350_v40 = vpop.f32.mrf.mxu0 }
 0x2ff   :  { %v9491_v43 = vpop.f32.mrf.mxu1  ;;  %v6351_v63 = vadd.f32 %v6350_v40, %v6349_v45  ;;  %v9493_v33 = vadd.f32 %v6412_v54, %v4916_v20 }
 0x300   :  { %v6352_v60 = vpop.f32.mrf.mxu0 }
 0x301   :  { %9740 = vst [vmem:[#allocation19_spill] sm:$0xff] %v9493_v33  ;;  %v4921_v10 = vadd.f32 %v6351_v63, %v9434_v41  ;;  %v2189_v63 = vsub.s32 2, %v9733_v34 }
 0x302   :  { %v6353_v23 = vpop.f32.mrf.mxu0 }
 0x303   :  { %v9496_v14 = vpop.f32.mrf.mxu1  ;;  %v9498_v29 = vadd.f32 %v6415_v39, %v4921_v10  ;;  %v2190_v62 = vrot.slane %v9410_v15, %v2189_v63 }
 0x305   :  { %9741 = vst [vmem:[#allocation22_spill] sm:$0xff] %v9498_v29  ;;  %v9500_v53 = vpop.f32.mrf.mxu1  ;;  %v9521_v27 = vadd.f32 %v9284_v58, %v2190_v62  ;;  %v9524_v18 = vadd.f32 %v9298_v25, %v2190_v62  ;;  %v9527_v34 = vadd.f32 %v9313_v26, %v2190_v62  ;;  %v9533_v15 = vadd.f32 %v9343_v32, %v2190_v62 }
 0x306   :  { %v6355_v17 = vpop.f32.mrf.mxu0  ;;  %v9536_v63 = vadd.f32 %v9357_v61, %v2190_v62  ;;  %v6339_v58 = vadd.f32 %v9475_v22, %v9471_v9  ;;  %v9541_v25 = vadd.f32 %v9373_v31, %v2190_v62  ;;  %v9544_v26 = vadd.f32 %v9380_v12, %v2190_v62 }
 0x307   :  { %v9502_v37 = vpop.f32.mrf.mxu1  ;;  %9744 = vst [vmem:[#allocation25_spill] sm:$0xff] %v9521_v27  ;;  %9745 = vst [vmem:[#allocation27_spill] sm:$0xff] %v9527_v34  ;;  %v9552_v61 = vadd.f32 %v9392_v48, %v2190_v62  ;;  %v9555_v9 = vadd.f32 %v9394_v42, %v2190_v62  ;;  %v9558_v22 = vadd.f32 %v9396_v16, %v2190_v62 }
 0x308   :  { %v6356_v57 = vpop.f32.mrf.mxu0  ;;  %9747 = vst [vmem:[#allocation24_spill] sm:$0xff] %v9533_v15  ;;  %v9549_v15 = vadd.f32 %v9390_v0, %v2190_v62  ;;  %v9561_v12 = vadd.f32 %v9398_v55, %v2190_v62  ;;  %v4905_v48 = vadd.f32 %v6339_v58, %v9422_v50  ;;  %v9572_v16 = vadd.f32 %v9404_v49, %v2190_v62  ;;  %v9751_v58 = vld [vmem:[#allocation12_spill] sm:$0xff] }
 0x309   :  { %v9504_v59 = vpop.f32.mrf.mxu1  ;;  %v6357_v31 = vadd.f32 %v6356_v57, %v6355_v17  ;;  %v6418_v49 = vadd.f32 %v9491_v43, %v9489_v2 }
 0x30a   :  { %v6358_v4 = vpop.f32.mrf.mxu0 }
 0x30b   :  { %v6425_v54 = vpop.f32.mrf.mxu1  ;;  %v4929_v50 = vadd.f32 %v6357_v31, %v9440_v56  ;;  %v6424_v56 = vadd.f32 %v9504_v59, %v9502_v37 }
 0x30c   :  { %v6359_v51 = vpop.f32.mrf.mxu0 }
 0x30d   :  { %v6426_v45 = vpop.f32.mrf.mxu1 }
 0x30e   :  { %v6361_v1 = vpop.f32.mrf.mxu0 }
 0x30f   :  { %v9506_v21 = vpop.f32.mrf.mxu1 }
 0x310   :  { %v6362_v41 = vpop.f32.mrf.mxu0 }
 0x311   :  { %v9508_v20 = vpop.f32.mrf.mxu1  ;;  %v6363_v27 = vadd.f32 %v6362_v41, %v6361_v1 }
 0x312   :  { %v6364_v40 = vpop.f32.mrf.mxu0 }
 0x313   :  { %v4937_v42 = vadd.f32 %v6363_v27, %v9446_v7  ;;  %v6427_v7 = vadd.f32 %v6426_v45, %v6425_v54 }
 0x314   :  { %v6365_v39 = vpop.f32.mrf.mxu0 }
 0x315   :  { %v9511_v10 = vpop.f32.mrf.mxu1  ;;  %v6366_v17 = vadd.f32 %v6365_v39, %v6364_v40  ;;  %v9750_v39 = vld [vmem:[#allocation14_spill] sm:$0xff] }
 0x316   :  { %9742 = vst [vmem:[#allocation20_spill] sm:$0xff] %v9511_v10  ;;  %v9530_v10 = vadd.f32 %v9322_v3, %v2190_v62  ;;  %v6342_v3 = vadd.f32 %v9483_v11, %v9481_v24  ;;  %v9564_v24 = vadd.f32 %v9400_v6, %v2190_v62  ;;  %v6360_v11 = vadd.f32 %v6359_v51, %v6358_v4 }
 0x317   :  { %v9513_v33 = vpop.f32.mrf.mxu1  ;;  %v6403_v51 = vadd.f32 %v9468_v28, %v9464_v36  ;;  %v4940_v36 = vadd.f32 %v6366_v17, %v9449_v52  ;;  %v5034_v28 = vadd.f32 %v6427_v7, %v4937_v42 }
 0x318   :  { %9743 = vst [vmem:[#allocation21_spill] sm:$0xff] %v9513_v33  ;;  %v6367_v29 = vpop.f32.mrf.mxu0  ;;  %9746 = vst [vmem:[#allocation23_spill] sm:$0xff] %v9530_v10  ;;  %v6354_v10 = vadd.f32 %v6353_v23, %v6352_v60  ;;  %v9567_v23 = vadd.f32 %v9402_v8, %v2190_v62  ;;  %v4908_v55 = vadd.f32 %v6342_v3, %v9425_v38 }
 0x319   :  { %v9516_v19 = vpop.f32.mrf.mxu1  ;;  %v6406_v8 = vadd.f32 %v9479_v44, %v9473_v30  ;;  %v4932_v27 = vadd.f32 %v6360_v11, %v9443_v13  ;;  %v5002_v41 = vadd.f32 %v6403_v51, %v4905_v48  ;;  %v9752_v48 = vld [vmem:[#allocation16_spill] sm:$0xff] }
 0x31a   :  { %v6368_v47 = vpop.f32.mrf.mxu0  ;;  %v4924_v57 = vadd.f32 %v6354_v10, %v9437_v46 }
 0x31b   :  { %v9518_v35 = vpop.f32.mrf.mxu1  ;;  %v6369_v6 = vadd.f32 %v6368_v47, %v6367_v29  ;;  %v6421_v29 = vadd.f32 %v9500_v53, %v9496_v14  ;;  %v5005_v43 = vadd.f32 %v6406_v8, %v4908_v55  ;;  %v5029_v3 = vadd.f32 %v6424_v56, %v4932_v27 }
 0x31c   :  { %v6370_v33 = vpop.f32.mrf.mxu0  ;;  %v9590_v13 = vadd.f32 %v6418_v49, %v4924_v57  ;;  %v9753_v49 = vld [vmem:[#allocation17_spill] sm:$0xff] }
 0x31d   :  { %v4945_v30 = vadd.f32 %v6369_v6, %v9452_v5  ;;  %v5026_v45 = vadd.f32 %v6421_v29, %v4929_v50  ;;  %v9748_v53 = vld [vmem:[#allocation20_spill] sm:$0xff] }
 0x31e   :  { %v6437_v34 = vpop.f32.mrf.mxu1  ;;  %v6371_v32 = vpop.f32.mrf.mxu0 }
 0x31f   :  { %v6372_v38 = vadd.f32 %v6371_v32, %v6370_v33  ;;  %v6430_v33 = vadd.f32 %v9508_v20, %v9506_v21  ;;  %v9749_v52 = vld [vmem:[#allocation21_spill] sm:$0xff]  ;;  %v6436_v21 = vadd.f32 %v9518_v35, %v9516_v19 }
 0x320   :  { %v6438_v60 = vpop.f32.mrf.mxu1  ;;  %v6373_v0 = vpop.f32.mrf.mxu0  ;;  %v6433_v40 = vadd.f32 %v9749_v52, %v9748_v53 }
 0x321   :  { %v4948_v10 = vadd.f32 %v6372_v38, %v9750_v39  ;;  %v5037_v11 = vadd.f32 %v6430_v33, %v4940_v36  ;;  %v6439_v20 = vadd.f32 %v6438_v60, %v6437_v34 }
 0x322   :  { %v6440_v1 = vpop.f32.mrf.mxu1  ;;  %v6374_v4 = vpop.f32.mrf.mxu0  ;;  %v9601_v57 = vadd.f32 %v6433_v40, %v4945_v30 }
 0x323   :  { %v6375_v46 = vadd.f32 %v6374_v4, %v6373_v0 }
 0x324   :  { %v6441_v62 = vpop.f32.mrf.mxu1  ;;  %v6376_v47 = vpop.f32.mrf.mxu0 }
 0x325   :  { %v4953_v37 = vadd.f32 %v6375_v46, %v9751_v58  ;;  %v6442_v50 = vadd.f32 %v6441_v62, %v6440_v1 }
 0x326   :  { %v6549_v44 = vpop.f32.mrf.mxu1  ;;  %v6377_v2 = vpop.f32.mrf.mxu0 }
 0x327   :  { %v5131_v54 = vadd.f32 %v6549_v44, %v5034_v28  ;;  %v6378_v14 = vadd.f32 %v6377_v2, %v6376_v47  ;;  %v5050_v38 = vadd.f32 %v6439_v20, %v4953_v37  ;;  %v9604_v47 = vadd.f32 %v6436_v21, %v4948_v10 }
 0x328   :  { %v5122_v59 = vpop.f32.mrf.mxu1  ;;  %v6541_v5 = vpop.f32.mrf.mxu0 }
 0x329   :  { %v5163_v32 = vadd.f32 3.0, %v5131_v54  ;;  %v5123_v31 = vadd.f32 %v5122_v59, %v5026_v45  ;;  %v5099_v0 = vadd.f32 %v6541_v5, %v5002_v41  ;;  %v4956_v42 = vadd.f32 %v6378_v14, %v9752_v48 }
 0x32a   :  { %v6550_v17 = vpop.f32.mrf.mxu1  ;;  %v5090_v55 = vpop.f32.mrf.mxu0 }
 0x32b   :  { %v5179_v6 = vmax.f32 %v5163_v32, 0.0  ;;  %v5161_v4 = vadd.f32 3.0, %v5123_v31  ;;  %v5134_v51 = vadd.f32 %v6550_v17, %v5037_v11  ;;  %v5155_v8 = vadd.f32 3.0, %v5099_v0 }
 0x32c   :  { %v5125_v7 = vpop.f32.mrf.mxu1  ;;  %v5091_v27 = vadd.f32 %v5090_v55, %v9753_v49  ;;  %v6542_v46 = vpop.f32.mrf.mxu0  ;;  %v9606_v56 = vadd.f32 %v6442_v50, %v4956_v42 }
 0x32d   :  { %v5195_v35 = vmin.f32 %v5179_v6, 6.0  ;;  %v5177_v19 = vmax.f32 %v5161_v4, 0.0  ;;  %v5164_v34 = vadd.f32 3.0, %v5134_v51  ;;  %v5171_v60 = vmax.f32 %v5155_v8, 0.0 }
 0x32e   :  { %v5126_v29 = vadd.f32 %v5125_v7, %v5029_v3  ;;  %v5153_v36 = vadd.f32 3.0, %v5091_v27  ;;  %v6553_v28 = vpop.f32.mrf.mxu1  ;;  %v5102_v41 = vadd.f32 %v6542_v46, %v5005_v43 }
 0x32f   :  { %v5211_v30 = vmul.f32 %v5195_v35, %v5131_v54  ;;  %v5193_v44 = vmin.f32 %v5177_v19, 6.0  ;;  %v5180_v1 = vmax.f32 %v5164_v34, 0.0  ;;  %v5187_v62 = vmin.f32 %v5171_v60, 6.0 }
 0x330   :  { %v5162_v2 = vadd.f32 3.0, %v5126_v29  ;;  %v5169_v33 = vmax.f32 %v5153_v36, 0.0  ;;  %v5147_v45 = vadd.f32 %v6553_v28, %v5050_v38  ;;  %v5156_v14 = vadd.f32 3.0, %v5102_v41  ;;  %v5138_v36 = vpop.f32.mrf.mxu1 }
 0x331   :  { %v5227_v53 = vmul.f32 0.16666667, %v5211_v30  ;;  %v5209_v52 = vmul.f32 %v5193_v44, %v5123_v31  ;;  %v5196_v40 = vmin.f32 %v5180_v1, 6.0  ;;  %v5203_v39 = vmul.f32 %v5187_v62, %v5099_v0  ;;  %v9754_v31 = vld [vmem:[#allocation25_spill] sm:$0xff]  ;;  %v5093_v0 = vpop.f32.mrf.mxu0  ;;  %v9755_v44 = vld [vmem:[#allocation27_spill] sm:$0xff] }
 0x332   :  { %v5178_v10 = vmax.f32 %v5162_v2, 0.0  ;;  %v5185_v58 = vmin.f32 %v5169_v33, 6.0  ;;  %v5167_v37 = vadd.f32 3.0, %v5147_v45  ;;  %v5172_v59 = vmax.f32 %v5156_v14, 0.0 }
 0x333   :  { %v5243_v43 = vadd.f32 %v5227_v53, %v9549_v15  ;;  %v5225_v5 = vmul.f32 0.16666667, %v5209_v52  ;;  %v5212_v3 = vmul.f32 %v5196_v40, %v5134_v51  ;;  %v5219_v54 = vmul.f32 0.16666667, %v5203_v39  ;;  %v6545_v28 = vpop.f32.mrf.mxu0 }
 0x334   :  { %v5194_v32 = vmin.f32 %v5178_v10, 6.0  ;;  %v5201_v11 = vmul.f32 %v5185_v58, %v5091_v27  ;;  %v5183_v21 = vmax.f32 %v5167_v37, 0.0  ;;  %v5188_v20 = vmin.f32 %v5172_v59, 6.0  ;;  %v6554_v58 = vpop.f32.mrf.mxu1 }
 0x335   :  { %v5259_v48 = vadd.f32 3.0, %v5243_v43  ;;  %v5241_v42 = vadd.f32 %v5225_v5, %v9552_v61  ;;  %v5228_v17 = vmul.f32 0.16666667, %v5212_v3  ;;  %v5235_v55 = vadd.f32 %v5219_v54, %v9754_v31  ;;  %v5106_v37 = vpop.f32.mrf.mxu0  ;;  %v9756_v31 = vld [vmem:[#allocation15_spill] sm:$0xff] }
 0x336   :  { %v5210_v6 = vmul.f32 %v5194_v32, %v5126_v29  ;;  %v5217_v4 = vmul.f32 0.16666667, %v5201_v11  ;;  %v5199_v8 = vmin.f32 %v5183_v21, 6.0  ;;  %v5204_v50 = vmul.f32 %v5188_v20, %v5102_v41 }
 0x337   :  { %v5275_v7 = vmax.f32 %v5259_v48, 0.0  ;;  %v5257_v15 = vadd.f32 3.0, %v5241_v42  ;;  %v5244_v51 = vadd.f32 %v5228_v17, %v9555_v9  ;;  %v5251_v49 = vadd.f32 3.0, %v5235_v55 }
 0x338   :  { %v5226_v38 = vmul.f32 0.16666667, %v5210_v6  ;;  %v5233_v27 = vadd.f32 %v5217_v4, %v9524_v18  ;;  %v5215_v46 = vmul.f32 %v5199_v8, %v5147_v45  ;;  %v5220_v35 = vmul.f32 0.16666667, %v5204_v50  ;;  %v5141_v4 = vpop.f32.mrf.mxu1  ;;  %v6546_v8 = vpop.f32.mrf.mxu0 }
 0x339   :  { %v5291_v19 = vmin.f32 %v5275_v7, 6.0  ;;  %v5273_v61 = vmax.f32 %v5257_v15, 0.0  ;;  %v5260_v34 = vadd.f32 3.0, %v5244_v51  ;;  %v5267_v60 = vmax.f32 %v5251_v49, 0.0 }
 0x33a   :  { %v5242_v29 = vadd.f32 %v5226_v38, %v9558_v22  ;;  %v5249_v30 = vadd.f32 3.0, %v5233_v27  ;;  %v5231_v41 = vmul.f32 0.16666667, %v5215_v46  ;;  %v5236_v1 = vadd.f32 %v5220_v35, %v9755_v44  ;;  %v9758_v44 = vld [vmem:[#allocation18_spill] sm:$0xff] }
 0x33b   :  { %v5307_v62 = vmul.f32 %v5291_v19, %v5243_v43  ;;  %v5289_v9 = vmin.f32 %v5273_v61, 6.0  ;;  %v5276_v2 = vmax.f32 %v5260_v34, 0.0  ;;  %v5283_v33 = vmin.f32 %v5267_v60, 6.0 }
 0x33c   :  { %v5258_v14 = vadd.f32 3.0, %v5242_v29  ;;  %v5265_v18 = vmax.f32 %v5249_v30, 0.0  ;;  %v5247_v45 = vadd.f32 %v5231_v41, %v9561_v12  ;;  %v5252_v53 = vadd.f32 3.0, %v5236_v1 }
 0x33d   :  { %v5323_v52 = vmul.f32 0.16666667, %v5307_v62  ;;  %v5305_v40 = vmul.f32 %v5289_v9, %v5241_v42  ;;  %v5292_v39 = vmin.f32 %v5276_v2, 6.0  ;;  %v5299_v10 = vmul.f32 %v5283_v33, %v5235_v55 }
 0x33e   :  { %v5274_v22 = vmax.f32 %v5258_v14, 0.0  ;;  %v5281_v59 = vmin.f32 %v5265_v18, 6.0  ;;  %v5263_v5 = vadd.f32 3.0, %v5247_v45  ;;  %v5268_v3 = vmax.f32 %v5252_v53, 0.0 }
 0x33f   :  { %5339 = vst [vmem:[#allocation3 + $0x50] sm:$0xff] %v5323_v52  ;;  %v5321_v43 = vmul.f32 0.16666667, %v5305_v40  ;;  %v5308_v54 = vmul.f32 %v5292_v39, %v5244_v51  ;;  %v5315_v32 = vmul.f32 0.16666667, %v5299_v10  ;;  %v5139_v11 = vadd.f32 %v5138_v36, %v9601_v57 }
 0x340   :  { %v5290_v21 = vmin.f32 %v5274_v22, 6.0  ;;  %v5297_v20 = vmul.f32 %v5281_v59, %v5233_v27  ;;  %v5279_v12 = vmax.f32 %v5263_v5, 0.0  ;;  %v5284_v48 = vmin.f32 %v5268_v3, 6.0  ;;  %v9757_v27 = vld [vmem:[#allocation22_spill] sm:$0xff] }
 0x341   :  { %5337 = vst [vmem:[#allocation3 + $0x40] sm:$0xff] %v5321_v43  ;;  %v5324_v42 = vmul.f32 0.16666667, %v5308_v54  ;;  %5331 = vst [vmem:[#allocation3 + $0x10] sm:$0xff] %v5315_v32  ;;  %v5165_v17 = vadd.f32 3.0, %v5139_v11  ;;  %v5094_v55 = vadd.f32 %v5093_v0, %v9756_v31  ;;  %v5150_v6 = vadd.f32 %v6554_v58, %v9606_v56 }
 0x342   :  { %v5306_v50 = vmul.f32 %v5290_v21, %v5242_v29  ;;  %v5313_v7 = vmul.f32 0.16666667, %v5297_v20  ;;  %v5295_v15 = vmin.f32 %v5279_v12, 6.0  ;;  %v5300_v51 = vmul.f32 %v5284_v48, %v5236_v1  ;;  %v5109_v29 = vpop.f32.mrf.mxu0  ;;  %v9760_v12 = vld [vmem:[#allocation23_spill] sm:$0xff] }
 0x343   :  { %5340 = vst [vmem:[#allocation3 + $0x58] sm:$0xff] %v5324_v42  ;;  %v5181_v57 = vmax.f32 %v5165_v17, 0.0  ;;  %v5154_v49 = vadd.f32 3.0, %v5094_v55  ;;  %v5168_v38 = vadd.f32 3.0, %v5150_v6  ;;  %v5115_v46 = vadd.f32 %v6545_v28, %v9757_v27 }
 0x344   :  { %v5322_v35 = vmul.f32 0.16666667, %v5306_v50  ;;  %5329 = vst [vmem:[#allocation3] sm:$0xff] %v5313_v7  ;;  %v5311_v19 = vmul.f32 %v5295_v15, %v5247_v45  ;;  %v5316_v61 = vmul.f32 0.16666667, %v5300_v51  ;;  %v5142_v0 = vadd.f32 %v5141_v4, %v9604_v47  ;;  %v9759_v45 = vld [vmem:[#allocation19_spill] sm:$0xff] }
 0x345   :  { %v5197_v34 = vmin.f32 %v5181_v57, 6.0  ;;  %v5170_v56 = vmax.f32 %v5154_v49, 0.0  ;;  %v5184_v60 = vmax.f32 %v5168_v38, 0.0  ;;  %v5159_v36 = vadd.f32 3.0, %v5115_v46  ;;  %v9761_v7 = vld [vmem:[#allocation24_spill] sm:$0xff] }
 0x346   :  { %5338 = vst [vmem:[#allocation3 + $0x48] sm:$0xff] %v5322_v35  ;;  %v5327_v30 = vmul.f32 0.16666667, %v5311_v19  ;;  %5332 = vst [vmem:[#allocation3 + $0x18] sm:$0xff] %v5316_v61  ;;  %v5166_v41 = vadd.f32 3.0, %v5142_v0  ;;  %v5107_v1 = vadd.f32 %v5106_v37, %v9758_v44  ;;  %v5118_v62 = vadd.f32 %v6546_v8, %v9590_v13 }
 0x347   :  { %v5213_v28 = vmul.f32 %v5197_v34, %v5139_v11  ;;  %v5186_v9 = vmin.f32 %v5170_v56, 6.0  ;;  %v5200_v2 = vmin.f32 %v5184_v60, 6.0  ;;  %v5175_v33 = vmax.f32 %v5159_v36, 0.0 }
 0x348   :  { %5343 = vst [vmem:[#allocation3 + $0x70] sm:$0xff] %v5327_v30  ;;  %v5182_v14 = vmax.f32 %v5166_v41, 0.0  ;;  %v5157_v47 = vadd.f32 3.0, %v5107_v1  ;;  %v5160_v18 = vadd.f32 3.0, %v5118_v62  ;;  %v5110_v53 = vadd.f32 %v5109_v29, %v9759_v45 }
 0x349   :  { %v5229_v52 = vmul.f32 0.16666667, %v5213_v28  ;;  %v5202_v40 = vmul.f32 %v5186_v9, %v5094_v55  ;;  %v5216_v39 = vmul.f32 %v5200_v2, %v5150_v6  ;;  %v5191_v10 = vmin.f32 %v5175_v33, 6.0 }
 0x34a   :  { %v5198_v58 = vmin.f32 %v5182_v14, 6.0  ;;  %v5173_v22 = vmax.f32 %v5157_v47, 0.0  ;;  %v5176_v59 = vmax.f32 %v5160_v18, 0.0  ;;  %v5158_v37 = vadd.f32 3.0, %v5110_v53 }
 0x34b   :  { %v5245_v13 = vadd.f32 %v5229_v52, %v9564_v24  ;;  %v5218_v5 = vmul.f32 0.16666667, %v5202_v40  ;;  %v5232_v3 = vmul.f32 0.16666667, %v5216_v39  ;;  %v5207_v43 = vmul.f32 %v5191_v10, %v5115_v46 }
 0x34c   :  { %v5214_v54 = vmul.f32 %v5198_v58, %v5142_v0  ;;  %v5189_v32 = vmin.f32 %v5173_v22, 6.0  ;;  %v5192_v11 = vmin.f32 %v5176_v59, 6.0  ;;  %v5174_v21 = vmax.f32 %v5158_v37, 0.0 }
 0x34d   :  { %v5261_v20 = vadd.f32 3.0, %v5245_v13  ;;  %v5234_v48 = vadd.f32 %v5218_v5, %v9760_v12  ;;  %v5248_v42 = vadd.f32 %v5232_v3, %v9567_v23  ;;  %v5223_v17 = vmul.f32 0.16666667, %v5207_v43 }
 0x34e   :  { %v5230_v31 = vmul.f32 0.16666667, %v5214_v54  ;;  %v5205_v55 = vmul.f32 %v5189_v32, %v5107_v1  ;;  %v5208_v6 = vmul.f32 %v5192_v11, %v5118_v62  ;;  %v5190_v4 = vmin.f32 %v5174_v21, 6.0 }
 0x34f   :  { %v5277_v8 = vmax.f32 %v5261_v20, 0.0  ;;  %v5250_v50 = vadd.f32 3.0, %v5234_v48  ;;  %v5264_v24 = vadd.f32 3.0, %v5248_v42  ;;  %v5239_v15 = vadd.f32 %v5223_v17, %v9761_v7 }
 0x350   :  { %v5246_v51 = vadd.f32 %v5230_v31, %v9572_v16  ;;  %v5221_v57 = vmul.f32 0.16666667, %v5205_v55  ;;  %v5224_v49 = vmul.f32 0.16666667, %v5208_v6  ;;  %v5206_v38 = vmul.f32 %v5190_v4, %v5110_v53 }
 0x351   :  { %v5293_v27 = vmin.f32 %v5277_v8, 6.0  ;;  %v5266_v46 = vmax.f32 %v5250_v50, 0.0  ;;  %v5280_v35 = vmax.f32 %v5264_v24, 0.0  ;;  %v5255_v19 = vadd.f32 3.0, %v5239_v15 }
 0x352   :  { %v5262_v23 = vadd.f32 3.0, %v5246_v51  ;;  %v5237_v61 = vadd.f32 %v5221_v57, %v9536_v63  ;;  %v5240_v0 = vadd.f32 %v5224_v49, %v9541_v25  ;;  %v5222_v34 = vmul.f32 0.16666667, %v5206_v38 }
 0x353   :  { %v5309_v56 = vmul.f32 %v5293_v27, %v5245_v13  ;;  %v5282_v60 = vmin.f32 %v5266_v46, 6.0  ;;  %v5296_v36 = vmin.f32 %v5280_v35, 6.0  ;;  %v5271_v29 = vmax.f32 %v5255_v19, 0.0 }
 0x354   :  { %v5278_v30 = vmax.f32 %v5262_v23, 0.0  ;;  %v5253_v41 = vadd.f32 3.0, %v5237_v61  ;;  %v5256_v16 = vadd.f32 3.0, %v5240_v0  ;;  %v5238_v44 = vadd.f32 %v5222_v34, %v9544_v26 }
 0x355   :  { %v5325_v1 = vmul.f32 0.16666667, %v5309_v56  ;;  %v5298_v62 = vmul.f32 %v5282_v60, %v5234_v48  ;;  %v5312_v28 = vmul.f32 %v5296_v36, %v5248_v42  ;;  %v5287_v9 = vmin.f32 %v5271_v29, 6.0 }
 0x356   :  { %v5294_v2 = vmin.f32 %v5278_v30, 6.0  ;;  %v5269_v33 = vmax.f32 %v5253_v41, 0.0  ;;  %v5272_v14 = vmax.f32 %v5256_v16, 0.0  ;;  %v5254_v63 = vadd.f32 3.0, %v5238_v44 }
 0x357   :  { %5341 = vst [vmem:[#allocation3 + $0x60] sm:$0xff] %v5325_v1  ;;  %v5314_v25 = vmul.f32 0.16666667, %v5298_v62  ;;  %v5328_v47 = vmul.f32 0.16666667, %v5312_v28  ;;  %v5303_v18 = vmul.f32 %v5287_v9, %v5239_v15 }
 0x358   :  { %v5310_v45 = vmul.f32 %v5294_v2, %v5246_v51  ;;  %v5285_v53 = vmin.f32 %v5269_v33, 6.0  ;;  %v5288_v52 = vmin.f32 %v5272_v14, 6.0  ;;  %v5270_v40 = vmax.f32 %v5254_v63, 0.0 }
 0x359   :  { %5330 = vst [vmem:[#allocation3 + $0x8] sm:$0xff] %v5314_v25  ;;  %5344 = vst [vmem:[#allocation3 + $0x78] sm:$0xff] %v5328_v47  ;;  %v5319_v39 = vmul.f32 0.16666667, %v5303_v18 }
 0x35a   :  { %v5326_v26 = vmul.f32 0.16666667, %v5310_v45  ;;  %v5301_v10 = vmul.f32 %v5285_v53, %v5237_v61  ;;  %v5304_v58 = vmul.f32 %v5288_v52, %v5240_v0  ;;  %v5286_v22 = vmin.f32 %v5270_v40, 6.0 }
 0x35b   :  { %5335 = vst [vmem:[#allocation3 + $0x30] sm:$0xff] %v5319_v39 }
 0x35c   :  { %5342 = vst [vmem:[#allocation3 + $0x68] sm:$0xff] %v5326_v26  ;;  %v5317_v59 = vmul.f32 0.16666667, %v5301_v10  ;;  %v5320_v37 = vmul.f32 0.16666667, %v5304_v58  ;;  %v5302_v13 = vmul.f32 %v5286_v22, %v5238_v44 }
 0x35e   :  { %5333 = vst [vmem:[#allocation3 + $0x20] sm:$0xff] %v5317_v59  ;;  %5336 = vst [vmem:[#allocation3 + $0x38] sm:$0xff] %v5320_v37  ;;  %v5318_v5 = vmul.f32 0.16666667, %v5302_v13 }
 0x360   :  { %5334 = vst [vmem:[#allocation3 + $0x28] sm:$0xff] %v5318_v5 }
 0x361   :  { %6765 = shalt.err (!%p6762_p4)
}
 0x362   :  { %s6778_s28 = smov 128   ;;  %s6779_s29 = smov 8  }
 0x363   :  { %5356 = dma.vmem_to_hbm [thread:$0]  %s5351_s26, 2048, %s9640_s5, [#allocation4], %s6778_s28, %s6778_s28, %s6779_s29  }
 0x364   :  { %6774 = dma.done.wait [#allocation4], 2048  }
 0x365   :  { %6775 = vsyncadd [#allocation4], 4294965248 }
 0x366   :  { %5360 = vsyncpa [#allocation4], 1 }

</bundles_post_ra>
